<compile_context>
chip_gen: v5e
topology: v5e:2x2
jax: 0.10.0
libtpu: 0.0.40
codegen_flags: <defaults>
</compile_context>

<pallas_src>
import math

import jax
import jax.numpy as jnp
from jax.experimental import pallas as pl
from jax.experimental.pallas import tpu as pltpu  # noqa: F401  (TPU backend assumed)

# ----------------------------- model config -----------------------------
B = 2                 # batch
S = 8                 # sequence length
BS = B * S            # flattened token count
V = 32                # pos_vocab_size
E = 128               # embedding_dim
HEADS = 8
HEAD_DIM = E // HEADS  # 16
QKV = 3 * HEAD_DIM     # 48 per-head q|k|v columns
L = 3                 # num_attention_layers
F = 512               # dim_feedforward
C = 6                 # num_classes
OUT_PAD = 128         # lane-dense padded logits width
EPS = 1e-5


# ------------------------------- kernel ---------------------------------
def model_kernel(x_ref, pe_ref, wqkv_ref, bqkv_ref, wfc_ref, bfc_ref,
                 gamma_ref, beta_ref, w1_ref, b1_ref, w2_ref, b2_ref,
                 out_ref):
    scale = HEAD_DIM ** -0.5

    # embedding + positional encoding for the whole batch, flattened to (B*S, E)
    x = (x_ref[...] + pe_ref[...][None, :, :]).reshape(BS, E)

    # hoisted LayerNorm affine params (broadcast once, reused by all layers)
    gamma = jnp.broadcast_to(gamma_ref[...], (BS, E))
    beta = jnp.broadcast_to(beta_ref[...], (BS, E))

    # Cross-batch mask: token i may only attend to token j from the same batch
    # element.  S is a power of two, so same-batch <=> (i ^ j) < S.
    row_i = jax.lax.broadcasted_iota(jnp.int32, (BS, BS), 0)
    col_i = jax.lax.broadcasted_iota(jnp.int32, (BS, BS), 1)
    same_batch = (row_i ^ col_i) < S
    neg_mask = jnp.where(same_batch, 0.0, -1e30).astype(jnp.float32)[None]

    for l in range(L):
        # ---- QKV projection, batched over heads --------------------------
        xb = jnp.broadcast_to(x.astype(jnp.bfloat16)[None], (HEADS, BS, E))
        qkv = jnp.einsum("hse,hfe->hsf", xb, wqkv_ref[l],
                         preferred_element_type=jnp.float32)
        qkv = qkv + bqkv_ref[l]                           # (H, BS, 3*HEAD_DIM)
        q = qkv[..., 0:HEAD_DIM]
        k = qkv[..., HEAD_DIM:2 * HEAD_DIM]
        v = qkv[..., 2 * HEAD_DIM:3 * HEAD_DIM]

        # ---- attention: one batched matmul pair + one softmax ------------
        s = jnp.einsum("hqd,hkd->hqk", q, k,
                       preferred_element_type=jnp.float32) * scale
        s = s + neg_mask
        s = s - jnp.max(s, axis=-1, keepdims=True)
        p = jnp.exp(s)
        p = p * pl.reciprocal(jnp.sum(p, axis=-1, keepdims=True), approx=True)
        o = jnp.einsum("hqk,hkd->hqd", p, v,
                       preferred_element_type=jnp.float32)  # (H, BS, HEAD_DIM)

        # ---- output projection: per-head matmul, summed over heads -------
        # (equivalent to concat(heads) @ Wfc, without any lane concatenation)
        attn = jnp.sum(
            jnp.einsum("hqd,hdf->hqf", o.astype(jnp.bfloat16), wfc_ref[l],
                       preferred_element_type=jnp.float32),
            axis=0) + bfc_ref[l]                          # (BS, E)

        # ---- residual + shared LayerNorm ----------------------------------
        y = attn + x
        mu = jnp.mean(y, axis=-1, keepdims=True)
        var = jnp.mean((y - mu) ** 2, axis=-1, keepdims=True)
        x = (y - mu) * jax.lax.rsqrt(var + EPS) * gamma + beta

    # ---- mean-pool over the sequence axis (per batch element) ------------
    pooled = jnp.concatenate(
        [jnp.mean(x[b * S:(b + 1) * S, :], axis=0, keepdims=True)
         for b in range(B)], axis=0)                      # (B, E)

    # ---- MLP head ---------------------------------------------------------
    h1 = jnp.dot(pooled.astype(jnp.bfloat16), w1_ref[...],
                 preferred_element_type=jnp.float32) + b1_ref[...]
    h1 = jnp.maximum(h1, 0.0)
    # TODO(synk): nn.Dropout(0.5) is identity in eval mode; omitted.
    logits = jnp.dot(h1.astype(jnp.bfloat16), w2_ref[...],
                     preferred_element_type=jnp.float32) + b2_ref[...]
    out_ref[...] = logits                                 # (B, OUT_PAD); cols >= C are 0


# ------------------------------ wrapper ---------------------------------
def prepare_kernel_params(p):
    """Host-side repack of PyTorch-layout params into kernel layouts (bf16 weights)."""
    # qkv Linear weight (L, 3E, E); output column j = h*(3*HEAD_DIM) + t*HEAD_DIM + d
    wqkv = p["wqkv"].reshape(L, HEADS, QKV, E).astype(jnp.bfloat16)      # (L,H,3D,E)
    # bias pre-broadcast over tokens so the kernel never reshapes a bias slab
    bqkv = jnp.broadcast_to(p["bqkv"].reshape(L, HEADS, 1, QKV),
                            (L, HEADS, BS, QKV)).astype(jnp.bfloat16)    # (L,H,BS,3D)
    # fc Linear: out = a @ Wfc.T, with a columns ordered (h, d)
    wfc = jnp.transpose(p["wfc"], (0, 2, 1)).reshape(L, HEADS, HEAD_DIM, E)
    wfc = wfc.astype(jnp.bfloat16)                                       # (L,H,D,E)
    bfc = p["bfc"].reshape(L, 1, E)
    w1 = jnp.transpose(p["w1"]).astype(jnp.bfloat16)                     # (E, F)
    b1 = p["b1"].reshape(1, F)
    w2 = jnp.zeros((F, OUT_PAD), jnp.float32).at[:, :C].set(jnp.transpose(p["w2"]))
    w2 = w2.astype(jnp.bfloat16)                                         # (F, 128) zero-padded
    b2 = jnp.zeros((1, OUT_PAD), jnp.float32).at[:, :C].set(p["b2"])
    return dict(emb=p["emb"], pe=p["pe"],
                wqkv=wqkv, bqkv=bqkv, wfc=wfc, bfc=bfc,
                gamma=p["gamma"].reshape(1, E), beta=p["beta"].reshape(1, E),
                w1=w1, b1=b1, w2=w2, b2=b2)


@jax.jit
def attention_model_forward(tokens, kp):
    # embedding lookup (data-dependent gather) stays in plain JAX glue
    x_emb = kp["emb"][tokens]                             # (B, S, E) f32
    out_pad = pl.pallas_call(
        model_kernel,
        out_shape=jax.ShapeDtypeStruct((B, OUT_PAD), jnp.float32),
    )(x_emb, kp["pe"], kp["wqkv"], kp["bqkv"], kp["wfc"], kp["bfc"],
      kp["gamma"], kp["beta"], kp["w1"], kp["b1"], kp["w2"], kp["b2"])
    return out_pad[:, :C]


# ------------------------- parameter construction -----------------------
def make_positional_encoding(max_len, dim):
    pos = jnp.arange(max_len, dtype=jnp.float32)[:, None]
    div = jnp.exp(jnp.arange(0, dim, 2, dtype=jnp.float32)
                  * (-math.log(10000.0) / dim))
    pe = jnp.zeros((max_len, dim), dtype=jnp.float32)
    pe = pe.at[:, 0::2].set(jnp.sin(pos * div))
    pe = pe.at[:, 1::2].set(jnp.cos(pos * div))
    return pe


def init_params(key):
    ks = jax.random.split(key, 10)
    std = 0.05
    return dict(
        emb=jax.random.normal(ks[0], (V, E), jnp.float32) * std,
        pe=make_positional_encoding(S, E),
        wqkv=jax.random.normal(ks[1], (L, 3 * E, E), jnp.float32) * std,   # PyTorch (out,in)
        bqkv=jax.random.normal(ks[2], (L, 3 * E), jnp.float32) * std,
        wfc=jax.random.normal(ks[3], (L, E, E), jnp.float32) * std,        # PyTorch (out,in)
        bfc=jax.random.normal(ks[4], (L, E), jnp.float32) * std,
        gamma=jnp.ones((E,), jnp.float32),
        beta=jnp.zeros((E,), jnp.float32),
        w1=jax.random.normal(ks[5], (F, E), jnp.float32) * std,            # PyTorch (out,in)
        b1=jax.random.normal(ks[6], (F,), jnp.float32) * std,
        w2=jax.random.normal(ks[7], (C, F), jnp.float32) * std,            # PyTorch (out,in)
        b2=jax.random.normal(ks[8], (C,), jnp.float32) * std,
    )


# ---------------------- pure-JAX reference (checking) --------------------
def reference_forward(tokens, p):
    x = p["emb"][tokens] + p["pe"][None]                   # (B, S, E)
    scale = HEAD_DIM ** -0.5
    for l in range(L):
        qkv = x @ p["wqkv"][l].T + p["bqkv"][l]            # (B, S, 3E)
        qkv = qkv.reshape(B, S, HEADS, 3, HEAD_DIM)
        q = qkv[..., 0, :].transpose(0, 2, 1, 3)
        k = qkv[..., 1, :].transpose(0, 2, 1, 3)
        v = qkv[..., 2, :].transpose(0, 2, 1, 3)
        s = jnp.einsum("bhqd,bhkd->bhqk", q, k) * scale
        a = jax.nn.softmax(s, axis=-1)
        o = jnp.einsum("bhqk,bhkd->bhqd", a, v)
        o = o.transpose(0, 2, 1, 3).reshape(B, S, E)
        attn = o @ p["wfc"][l].T + p["bfc"][l]
        y = attn + x
        mu = jnp.mean(y, axis=-1, keepdims=True)
        var = jnp.mean((y - mu) ** 2, axis=-1, keepdims=True)
        x = (y - mu) / jnp.sqrt(var + EPS) * p["gamma"] + p["beta"]
    pooled = jnp.mean(x, axis=1)
    h1 = jax.nn.relu(pooled @ p["w1"].T + p["b1"])
    return h1 @ p["w2"].T + p["b2"]


# --------------------------------- main ----------------------------------
if __name__ == "__main__":
    key = jax.random.PRNGKey(0)
    k_tok, k_par = jax.random.split(key)
    tokens = jax.random.randint(k_tok, (B, S), 0, V, dtype=jnp.int32)
    params = init_params(k_par)
    kparams = prepare_kernel_params(params)

    out = attention_model_forward(tokens, kparams)
    out = jax.block_until_ready(out)

    ref = reference_forward(tokens, params)
    assert out.shape == (B, C)
    assert jnp.allclose(out, ref, atol=2e-2, rtol=2e-2), (out, ref)

    print("KERNEL_OK")
</pallas_src>

<mosaic_0001>
module attributes {stable_mosaic.version = 11 : i64} {
  func.func @model_kernel(%arg0: memref<2x8x128xf32, #tpu.memory_space<vmem>>, %arg1: memref<8x128xf32, #tpu.memory_space<vmem>>, %arg2: memref<3x8x48x128xbf16, #tpu.memory_space<vmem>>, %arg3: memref<3x8x16x48xbf16, #tpu.memory_space<vmem>>, %arg4: memref<3x8x16x128xbf16, #tpu.memory_space<vmem>>, %arg5: memref<3x1x128xf32, #tpu.memory_space<vmem>>, %arg6: memref<1x128xf32, #tpu.memory_space<vmem>>, %arg7: memref<1x128xf32, #tpu.memory_space<vmem>>, %arg8: memref<128x512xbf16, #tpu.memory_space<vmem>>, %arg9: memref<1x512xf32, #tpu.memory_space<vmem>>, %arg10: memref<512x128xbf16, #tpu.memory_space<vmem>>, %arg11: memref<1x128xf32, #tpu.memory_space<vmem>>, %arg12: memref<2x128xf32, #tpu.memory_space<vmem>>) attributes {dimension_semantics = [], scalar_prefetch = 0 : i64, scratch_operands = 0 : i64, tpu.core_type = #tpu.core_type<tc>} {
    %c0 = arith.constant 0 : index
    %c0_0 = arith.constant 0 : index
    %c0_1 = arith.constant 0 : index
    %0 = vector.load %arg0[%c0, %c0_0, %c0_1] : memref<2x8x128xf32, #tpu.memory_space<vmem>>, vector<2x8x128xf32>
    %c0_2 = arith.constant 0 : index
    %c0_3 = arith.constant 0 : index
    %1 = vector.load %arg1[%c0_2, %c0_3] : memref<8x128xf32, #tpu.memory_space<vmem>>, vector<8x128xf32>
    %2 = vector.shape_cast %1 : vector<8x128xf32> to vector<1x8x128xf32>
    %3 = vector.broadcast %2 : vector<1x8x128xf32> to vector<2x8x128xf32>
    %4 = arith.addf %0, %3 : vector<2x8x128xf32>
    %5 = vector.shape_cast %4 : vector<2x8x128xf32> to vector<16x128xf32>
    %c0_4 = arith.constant 0 : index
    %c0_5 = arith.constant 0 : index
    %6 = vector.load %arg6[%c0_4, %c0_5] : memref<1x128xf32, #tpu.memory_space<vmem>>, vector<1x128xf32>
    %7 = vector.shape_cast %6 : vector<1x128xf32> to vector<1x128xf32>
    %8 = vector.broadcast %7 : vector<1x128xf32> to vector<16x128xf32>
    %c0_6 = arith.constant 0 : index
    %c0_7 = arith.constant 0 : index
    %9 = vector.load %arg7[%c0_6, %c0_7] : memref<1x128xf32, #tpu.memory_space<vmem>>, vector<1x128xf32>
    %10 = vector.shape_cast %9 : vector<1x128xf32> to vector<1x128xf32>
    %11 = vector.broadcast %10 : vector<1x128xf32> to vector<16x128xf32>
    %12 = tpu.iota {dimensions = array<i32: 0>} : vector<16x16xi32>
    %13 = tpu.iota {dimensions = array<i32: 1>} : vector<16x16xi32>
    %14 = arith.xori %12, %13 : vector<16x16xi32>
    %c8_i32 = arith.constant 8 : i32
    %15 = vector.broadcast %c8_i32 : i32 to vector<16x16xi32>
    %16 = arith.cmpi slt, %14, %15 : vector<16x16xi32>
    %cst = arith.constant 0.000000e+00 : f32
    %cst_8 = arith.constant -1.000000e+30 : f32
    %17 = vector.broadcast %cst : f32 to vector<16x16xf32>
    %18 = vector.broadcast %cst_8 : f32 to vector<16x16xf32>
    %19 = arith.select %16, %17, %18 : vector<16x16xi1>, vector<16x16xf32>
    %20 = vector.shape_cast %19 : vector<16x16xf32> to vector<1x16x16xf32>
    %21 = arith.truncf %5 : vector<16x128xf32> to vector<16x128xbf16>
    %22 = vector.shape_cast %21 : vector<16x128xbf16> to vector<1x16x128xbf16>
    %23 = vector.shape_cast %22 : vector<1x16x128xbf16> to vector<1x16x128xbf16>
    %24 = vector.broadcast %23 : vector<1x16x128xbf16> to vector<8x16x128xbf16>
    %c0_9 = arith.constant 0 : index
    %c0_10 = arith.constant 0 : index
    %c0_11 = arith.constant 0 : index
    %c0_12 = arith.constant 0 : index
    %25 = vector.load %arg2[%c0_9, %c0_10, %c0_11, %c0_12] : memref<3x8x48x128xbf16, #tpu.memory_space<vmem>>, vector<1x8x48x128xbf16>
    %26 = vector.shape_cast %25 : vector<1x8x48x128xbf16> to vector<8x48x128xbf16>
    "tpu.trace_start"() <{level = 10 : i32, message = "hse,hfe->hsf"}> : () -> ()
    %cst_13 = arith.constant dense<0.000000e+00> : vector<8x16x48xf32>
    %27 = tpu.matmul %24, %26, %cst_13 {dimension_numbers = #tpu.dot_dimension_numbers<[2], [2], [1], [1], [0, 0, 0, 1, 1, 1], [0], [0]>} : vector<8x16x128xbf16>, vector<8x48x128xbf16>, vector<8x16x48xf32> -> vector<8x16x48xf32>
    "tpu.trace_stop"() : () -> ()
    %c0_14 = arith.constant 0 : index
    %c0_15 = arith.constant 0 : index
    %c0_16 = arith.constant 0 : index
    %c0_17 = arith.constant 0 : index
    %28 = vector.load %arg3[%c0_14, %c0_15, %c0_16, %c0_17] : memref<3x8x16x48xbf16, #tpu.memory_space<vmem>>, vector<1x8x16x48xbf16>
    %29 = vector.shape_cast %28 : vector<1x8x16x48xbf16> to vector<8x16x48xbf16>
    %30 = arith.extf %29 : vector<8x16x48xbf16> to vector<8x16x48xf32>
    %31 = arith.addf %27, %30 : vector<8x16x48xf32>
    %32 = vector.extract_strided_slice %31 {offsets = [0, 0, 0], sizes = [8, 16, 16], strides = [1, 1, 1]} : vector<8x16x48xf32> to vector<8x16x16xf32>
    %33 = vector.extract_strided_slice %31 {offsets = [0, 0, 16], sizes = [8, 16, 16], strides = [1, 1, 1]} : vector<8x16x48xf32> to vector<8x16x16xf32>
    %34 = vector.extract_strided_slice %31 {offsets = [0, 0, 32], sizes = [8, 16, 16], strides = [1, 1, 1]} : vector<8x16x48xf32> to vector<8x16x16xf32>
    "tpu.trace_start"() <{level = 10 : i32, message = "hqd,hkd->hqk"}> : () -> ()
    %cst_18 = arith.constant dense<0.000000e+00> : vector<8x16x16xf32>
    %35 = tpu.matmul %32, %33, %cst_18 {dimension_numbers = #tpu.dot_dimension_numbers<[2], [2], [1], [1], [0, 0, 0, 1, 1, 1], [0], [0]>} : vector<8x16x16xf32>, vector<8x16x16xf32>, vector<8x16x16xf32> -> vector<8x16x16xf32>
    "tpu.trace_stop"() : () -> ()
    %cst_19 = arith.constant 2.500000e-01 : f32
    %36 = vector.broadcast %cst_19 : f32 to vector<8x16x16xf32>
    %37 = arith.mulf %35, %36 : vector<8x16x16xf32>
    %38 = vector.broadcast %20 : vector<1x16x16xf32> to vector<8x16x16xf32>
    %39 = arith.addf %37, %38 : vector<8x16x16xf32>
    %cst_20 = arith.constant dense<0xFF800000> : vector<8x16xf32>
    %40 = vector.multi_reduction <maximumf>, %39, %cst_20 [2] : vector<8x16x16xf32> to vector<8x16xf32>
    %41 = vector.shape_cast %40 : vector<8x16xf32> to vector<8x16x1xf32>
    %42 = vector.broadcast %41 : vector<8x16x1xf32> to vector<8x16x16xf32>
    %43 = arith.subf %39, %42 : vector<8x16x16xf32>
    %44 = math.exp %43 : vector<8x16x16xf32>
    %cst_21 = arith.constant dense<0.000000e+00> : vector<8x16xf32>
    %45 = vector.multi_reduction <add>, %44, %cst_21 [2] : vector<8x16x16xf32> to vector<8x16xf32>
    %46 = vector.shape_cast %45 : vector<8x16xf32> to vector<8x16x1xf32>
    %47 = tpu.reciprocal %46 {approx = true} : vector<8x16x1xf32> -> vector<8x16x1xf32>
    %48 = vector.broadcast %47 : vector<8x16x1xf32> to vector<8x16x16xf32>
    %49 = arith.mulf %44, %48 : vector<8x16x16xf32>
    "tpu.trace_start"() <{level = 10 : i32, message = "hqk,hkd->hqd"}> : () -> ()
    %cst_22 = arith.constant dense<0.000000e+00> : vector<8x16x16xf32>
    %50 = tpu.matmul %49, %34, %cst_22 {dimension_numbers = #tpu.dot_dimension_numbers<[2], [1], [1], [2], [0, 0, 0, 1, 1, 2], [0], [0]>} : vector<8x16x16xf32>, vector<8x16x16xf32>, vector<8x16x16xf32> -> vector<8x16x16xf32>
    "tpu.trace_stop"() : () -> ()
    %51 = arith.truncf %50 : vector<8x16x16xf32> to vector<8x16x16xbf16>
    %c0_23 = arith.constant 0 : index
    %c0_24 = arith.constant 0 : index
    %c0_25 = arith.constant 0 : index
    %c0_26 = arith.constant 0 : index
    %52 = vector.load %arg4[%c0_23, %c0_24, %c0_25, %c0_26] : memref<3x8x16x128xbf16, #tpu.memory_space<vmem>>, vector<1x8x16x128xbf16>
    %53 = vector.shape_cast %52 : vector<1x8x16x128xbf16> to vector<8x16x128xbf16>
    "tpu.trace_start"() <{level = 10 : i32, message = "hqd,hdf->hqf"}> : () -> ()
    %cst_27 = arith.constant dense<0.000000e+00> : vector<8x16x128xf32>
    %54 = tpu.matmul %51, %53, %cst_27 {dimension_numbers = #tpu.dot_dimension_numbers<[2], [1], [1], [2], [0, 0, 0, 1, 1, 2], [0], [0]>} : vector<8x16x16xbf16>, vector<8x16x128xbf16>, vector<8x16x128xf32> -> vector<8x16x128xf32>
    "tpu.trace_stop"() : () -> ()
    %cst_28 = arith.constant dense<0.000000e+00> : vector<16x128xf32>
    %55 = vector.multi_reduction <add>, %54, %cst_28 [0] : vector<8x16x128xf32> to vector<16x128xf32>
    %c0_29 = arith.constant 0 : index
    %c0_30 = arith.constant 0 : index
    %c0_31 = arith.constant 0 : index
    %56 = vector.load %arg5[%c0_29, %c0_30, %c0_31] : memref<3x1x128xf32, #tpu.memory_space<vmem>>, vector<1x1x128xf32>
    %57 = vector.shape_cast %56 : vector<1x1x128xf32> to vector<1x128xf32>
    %58 = vector.broadcast %57 : vector<1x128xf32> to vector<16x128xf32>
    %59 = arith.addf %55, %58 : vector<16x128xf32>
    %60 = arith.addf %59, %5 : vector<16x128xf32>
    %cst_32 = arith.constant dense<0.000000e+00> : vector<16xf32>
    %61 = vector.multi_reduction <add>, %60, %cst_32 [1] : vector<16x128xf32> to vector<16xf32>
    %62 = vector.shape_cast %61 : vector<16xf32> to vector<16x1xf32>
    %cst_33 = arith.constant 1.280000e+02 : f32
    %63 = vector.broadcast %cst_33 : f32 to vector<16x1xf32>
    %64 = arith.divf %62, %63 : vector<16x1xf32>
    %65 = vector.broadcast %64 : vector<16x1xf32> to vector<16x128xf32>
    %66 = arith.subf %60, %65 : vector<16x128xf32>
    %67 = arith.mulf %66, %66 : vector<16x128xf32>
    %cst_34 = arith.constant dense<0.000000e+00> : vector<16xf32>
    %68 = vector.multi_reduction <add>, %67, %cst_34 [1] : vector<16x128xf32> to vector<16xf32>
    %69 = vector.shape_cast %68 : vector<16xf32> to vector<16x1xf32>
    %cst_35 = arith.constant 1.280000e+02 : f32
    %70 = vector.broadcast %cst_35 : f32 to vector<16x1xf32>
    %71 = arith.divf %69, %70 : vector<16x1xf32>
    %72 = vector.broadcast %64 : vector<16x1xf32> to vector<16x128xf32>
    %73 = arith.subf %60, %72 : vector<16x128xf32>
    %cst_36 = arith.constant 9.99999974E-6 : f32
    %74 = vector.broadcast %cst_36 : f32 to vector<16x1xf32>
    %75 = arith.addf %71, %74 : vector<16x1xf32>
    %76 = math.rsqrt %75 : vector<16x1xf32>
    %77 = vector.broadcast %76 : vector<16x1xf32> to vector<16x128xf32>
    %78 = arith.mulf %73, %77 : vector<16x128xf32>
    %79 = arith.mulf %78, %8 : vector<16x128xf32>
    %80 = arith.addf %79, %11 : vector<16x128xf32>
    %81 = arith.truncf %80 : vector<16x128xf32> to vector<16x128xbf16>
    %82 = vector.shape_cast %81 : vector<16x128xbf16> to vector<1x16x128xbf16>
    %83 = vector.shape_cast %82 : vector<1x16x128xbf16> to vector<1x16x128xbf16>
    %84 = vector.broadcast %83 : vector<1x16x128xbf16> to vector<8x16x128xbf16>
    %c1 = arith.constant 1 : index
    %c0_37 = arith.constant 0 : index
    %c0_38 = arith.constant 0 : index
    %c0_39 = arith.constant 0 : index
    %85 = vector.load %arg2[%c1, %c0_37, %c0_38, %c0_39] : memref<3x8x48x128xbf16, #tpu.memory_space<vmem>>, vector<1x8x48x128xbf16>
    %86 = vector.shape_cast %85 : vector<1x8x48x128xbf16> to vector<8x48x128xbf16>
    "tpu.trace_start"() <{level = 10 : i32, message = "hse,hfe->hsf"}> : () -> ()
    %cst_40 = arith.constant dense<0.000000e+00> : vector<8x16x48xf32>
    %87 = tpu.matmul %84, %86, %cst_40 {dimension_numbers = #tpu.dot_dimension_numbers<[2], [2], [1], [1], [0, 0, 0, 1, 1, 1], [0], [0]>} : vector<8x16x128xbf16>, vector<8x48x128xbf16>, vector<8x16x48xf32> -> vector<8x16x48xf32>
    "tpu.trace_stop"() : () -> ()
    %c1_41 = arith.constant 1 : index
    %c0_42 = arith.constant 0 : index
    %c0_43 = arith.constant 0 : index
    %c0_44 = arith.constant 0 : index
    %88 = vector.load %arg3[%c1_41, %c0_42, %c0_43, %c0_44] : memref<3x8x16x48xbf16, #tpu.memory_space<vmem>>, vector<1x8x16x48xbf16>
    %89 = vector.shape_cast %88 : vector<1x8x16x48xbf16> to vector<8x16x48xbf16>
    %90 = arith.extf %89 : vector<8x16x48xbf16> to vector<8x16x48xf32>
    %91 = arith.addf %87, %90 : vector<8x16x48xf32>
    %92 = vector.extract_strided_slice %91 {offsets = [0, 0, 0], sizes = [8, 16, 16], strides = [1, 1, 1]} : vector<8x16x48xf32> to vector<8x16x16xf32>
    %93 = vector.extract_strided_slice %91 {offsets = [0, 0, 16], sizes = [8, 16, 16], strides = [1, 1, 1]} : vector<8x16x48xf32> to vector<8x16x16xf32>
    %94 = vector.extract_strided_slice %91 {offsets = [0, 0, 32], sizes = [8, 16, 16], strides = [1, 1, 1]} : vector<8x16x48xf32> to vector<8x16x16xf32>
    "tpu.trace_start"() <{level = 10 : i32, message = "hqd,hkd->hqk"}> : () -> ()
    %cst_45 = arith.constant dense<0.000000e+00> : vector<8x16x16xf32>
    %95 = tpu.matmul %92, %93, %cst_45 {dimension_numbers = #tpu.dot_dimension_numbers<[2], [2], [1], [1], [0, 0, 0, 1, 1, 1], [0], [0]>} : vector<8x16x16xf32>, vector<8x16x16xf32>, vector<8x16x16xf32> -> vector<8x16x16xf32>
    "tpu.trace_stop"() : () -> ()
    %cst_46 = arith.constant 2.500000e-01 : f32
    %96 = vector.broadcast %cst_46 : f32 to vector<8x16x16xf32>
    %97 = arith.mulf %95, %96 : vector<8x16x16xf32>
    %98 = vector.broadcast %20 : vector<1x16x16xf32> to vector<8x16x16xf32>
    %99 = arith.addf %97, %98 : vector<8x16x16xf32>
    %cst_47 = arith.constant dense<0xFF800000> : vector<8x16xf32>
    %100 = vector.multi_reduction <maximumf>, %99, %cst_47 [2] : vector<8x16x16xf32> to vector<8x16xf32>
    %101 = vector.shape_cast %100 : vector<8x16xf32> to vector<8x16x1xf32>
    %102 = vector.broadcast %101 : vector<8x16x1xf32> to vector<8x16x16xf32>
    %103 = arith.subf %99, %102 : vector<8x16x16xf32>
    %104 = math.exp %103 : vector<8x16x16xf32>
    %cst_48 = arith.constant dense<0.000000e+00> : vector<8x16xf32>
    %105 = vector.multi_reduction <add>, %104, %cst_48 [2] : vector<8x16x16xf32> to vector<8x16xf32>
    %106 = vector.shape_cast %105 : vector<8x16xf32> to vector<8x16x1xf32>
    %107 = tpu.reciprocal %106 {approx = true} : vector<8x16x1xf32> -> vector<8x16x1xf32>
    %108 = vector.broadcast %107 : vector<8x16x1xf32> to vector<8x16x16xf32>
    %109 = arith.mulf %104, %108 : vector<8x16x16xf32>
    "tpu.trace_start"() <{level = 10 : i32, message = "hqk,hkd->hqd"}> : () -> ()
    %cst_49 = arith.constant dense<0.000000e+00> : vector<8x16x16xf32>
    %110 = tpu.matmul %109, %94, %cst_49 {dimension_numbers = #tpu.dot_dimension_numbers<[2], [1], [1], [2], [0, 0, 0, 1, 1, 2], [0], [0]>} : vector<8x16x16xf32>, vector<8x16x16xf32>, vector<8x16x16xf32> -> vector<8x16x16xf32>
    "tpu.trace_stop"() : () -> ()
    %111 = arith.truncf %110 : vector<8x16x16xf32> to vector<8x16x16xbf16>
    %c1_50 = arith.constant 1 : index
    %c0_51 = arith.constant 0 : index
    %c0_52 = arith.constant 0 : index
    %c0_53 = arith.constant 0 : index
    %112 = vector.load %arg4[%c1_50, %c0_51, %c0_52, %c0_53] : memref<3x8x16x128xbf16, #tpu.memory_space<vmem>>, vector<1x8x16x128xbf16>
    %113 = vector.shape_cast %112 : vector<1x8x16x128xbf16> to vector<8x16x128xbf16>
    "tpu.trace_start"() <{level = 10 : i32, message = "hqd,hdf->hqf"}> : () -> ()
    %cst_54 = arith.constant dense<0.000000e+00> : vector<8x16x128xf32>
    %114 = tpu.matmul %111, %113, %cst_54 {dimension_numbers = #tpu.dot_dimension_numbers<[2], [1], [1], [2], [0, 0, 0, 1, 1, 2], [0], [0]>} : vector<8x16x16xbf16>, vector<8x16x128xbf16>, vector<8x16x128xf32> -> vector<8x16x128xf32>
    "tpu.trace_stop"() : () -> ()
    %cst_55 = arith.constant dense<0.000000e+00> : vector<16x128xf32>
    %115 = vector.multi_reduction <add>, %114, %cst_55 [0] : vector<8x16x128xf32> to vector<16x128xf32>
    %c1_56 = arith.constant 1 : index
    %c0_57 = arith.constant 0 : index
    %c0_58 = arith.constant 0 : index
    %116 = vector.load %arg5[%c1_56, %c0_57, %c0_58] : memref<3x1x128xf32, #tpu.memory_space<vmem>>, vector<1x1x128xf32>
    %117 = vector.shape_cast %116 : vector<1x1x128xf32> to vector<1x128xf32>
    %118 = vector.broadcast %117 : vector<1x128xf32> to vector<16x128xf32>
    %119 = arith.addf %115, %118 : vector<16x128xf32>
    %120 = arith.addf %119, %80 : vector<16x128xf32>
    %cst_59 = arith.constant dense<0.000000e+00> : vector<16xf32>
    %121 = vector.multi_reduction <add>, %120, %cst_59 [1] : vector<16x128xf32> to vector<16xf32>
    %122 = vector.shape_cast %121 : vector<16xf32> to vector<16x1xf32>
    %cst_60 = arith.constant 1.280000e+02 : f32
    %123 = vector.broadcast %cst_60 : f32 to vector<16x1xf32>
    %124 = arith.divf %122, %123 : vector<16x1xf32>
    %125 = vector.broadcast %124 : vector<16x1xf32> to vector<16x128xf32>
    %126 = arith.subf %120, %125 : vector<16x128xf32>
    %127 = arith.mulf %126, %126 : vector<16x128xf32>
    %cst_61 = arith.constant dense<0.000000e+00> : vector<16xf32>
    %128 = vector.multi_reduction <add>, %127, %cst_61 [1] : vector<16x128xf32> to vector<16xf32>
    %129 = vector.shape_cast %128 : vector<16xf32> to vector<16x1xf32>
    %cst_62 = arith.constant 1.280000e+02 : f32
    %130 = vector.broadcast %cst_62 : f32 to vector<16x1xf32>
    %131 = arith.divf %129, %130 : vector<16x1xf32>
    %132 = vector.broadcast %124 : vector<16x1xf32> to vector<16x128xf32>
    %133 = arith.subf %120, %132 : vector<16x128xf32>
    %cst_63 = arith.constant 9.99999974E-6 : f32
    %134 = vector.broadcast %cst_63 : f32 to vector<16x1xf32>
    %135 = arith.addf %131, %134 : vector<16x1xf32>
    %136 = math.rsqrt %135 : vector<16x1xf32>
    %137 = vector.broadcast %136 : vector<16x1xf32> to vector<16x128xf32>
    %138 = arith.mulf %133, %137 : vector<16x128xf32>
    %139 = arith.mulf %138, %8 : vector<16x128xf32>
    %140 = arith.addf %139, %11 : vector<16x128xf32>
    %141 = arith.truncf %140 : vector<16x128xf32> to vector<16x128xbf16>
    %142 = vector.shape_cast %141 : vector<16x128xbf16> to vector<1x16x128xbf16>
    %143 = vector.shape_cast %142 : vector<1x16x128xbf16> to vector<1x16x128xbf16>
    %144 = vector.broadcast %143 : vector<1x16x128xbf16> to vector<8x16x128xbf16>
    %c2 = arith.constant 2 : index
    %c0_64 = arith.constant 0 : index
    %c0_65 = arith.constant 0 : index
    %c0_66 = arith.constant 0 : index
    %145 = vector.load %arg2[%c2, %c0_64, %c0_65, %c0_66] : memref<3x8x48x128xbf16, #tpu.memory_space<vmem>>, vector<1x8x48x128xbf16>
    %146 = vector.shape_cast %145 : vector<1x8x48x128xbf16> to vector<8x48x128xbf16>
    "tpu.trace_start"() <{level = 10 : i32, message = "hse,hfe->hsf"}> : () -> ()
    %cst_67 = arith.constant dense<0.000000e+00> : vector<8x16x48xf32>
    %147 = tpu.matmul %144, %146, %cst_67 {dimension_numbers = #tpu.dot_dimension_numbers<[2], [2], [1], [1], [0, 0, 0, 1, 1, 1], [0], [0]>} : vector<8x16x128xbf16>, vector<8x48x128xbf16>, vector<8x16x48xf32> -> vector<8x16x48xf32>
    "tpu.trace_stop"() : () -> ()
    %c2_68 = arith.constant 2 : index
    %c0_69 = arith.constant 0 : index
    %c0_70 = arith.constant 0 : index
    %c0_71 = arith.constant 0 : index
    %148 = vector.load %arg3[%c2_68, %c0_69, %c0_70, %c0_71] : memref<3x8x16x48xbf16, #tpu.memory_space<vmem>>, vector<1x8x16x48xbf16>
    %149 = vector.shape_cast %148 : vector<1x8x16x48xbf16> to vector<8x16x48xbf16>
    %150 = arith.extf %149 : vector<8x16x48xbf16> to vector<8x16x48xf32>
    %151 = arith.addf %147, %150 : vector<8x16x48xf32>
    %152 = vector.extract_strided_slice %151 {offsets = [0, 0, 0], sizes = [8, 16, 16], strides = [1, 1, 1]} : vector<8x16x48xf32> to vector<8x16x16xf32>
    %153 = vector.extract_strided_slice %151 {offsets = [0, 0, 16], sizes = [8, 16, 16], strides = [1, 1, 1]} : vector<8x16x48xf32> to vector<8x16x16xf32>
    %154 = vector.extract_strided_slice %151 {offsets = [0, 0, 32], sizes = [8, 16, 16], strides = [1, 1, 1]} : vector<8x16x48xf32> to vector<8x16x16xf32>
    "tpu.trace_start"() <{level = 10 : i32, message = "hqd,hkd->hqk"}> : () -> ()
    %cst_72 = arith.constant dense<0.000000e+00> : vector<8x16x16xf32>
    %155 = tpu.matmul %152, %153, %cst_72 {dimension_numbers = #tpu.dot_dimension_numbers<[2], [2], [1], [1], [0, 0, 0, 1, 1, 1], [0], [0]>} : vector<8x16x16xf32>, vector<8x16x16xf32>, vector<8x16x16xf32> -> vector<8x16x16xf32>
    "tpu.trace_stop"() : () -> ()
    %cst_73 = arith.constant 2.500000e-01 : f32
    %156 = vector.broadcast %cst_73 : f32 to vector<8x16x16xf32>
    %157 = arith.mulf %155, %156 : vector<8x16x16xf32>
    %158 = vector.broadcast %20 : vector<1x16x16xf32> to vector<8x16x16xf32>
    %159 = arith.addf %157, %158 : vector<8x16x16xf32>
    %cst_74 = arith.constant dense<0xFF800000> : vector<8x16xf32>
    %160 = vector.multi_reduction <maximumf>, %159, %cst_74 [2] : vector<8x16x16xf32> to vector<8x16xf32>
    %161 = vector.shape_cast %160 : vector<8x16xf32> to vector<8x16x1xf32>
    %162 = vector.broadcast %161 : vector<8x16x1xf32> to vector<8x16x16xf32>
    %163 = arith.subf %159, %162 : vector<8x16x16xf32>
    %164 = math.exp %163 : vector<8x16x16xf32>
    %cst_75 = arith.constant dense<0.000000e+00> : vector<8x16xf32>
    %165 = vector.multi_reduction <add>, %164, %cst_75 [2] : vector<8x16x16xf32> to vector<8x16xf32>
    %166 = vector.shape_cast %165 : vector<8x16xf32> to vector<8x16x1xf32>
    %167 = tpu.reciprocal %166 {approx = true} : vector<8x16x1xf32> -> vector<8x16x1xf32>
    %168 = vector.broadcast %167 : vector<8x16x1xf32> to vector<8x16x16xf32>
    %169 = arith.mulf %164, %168 : vector<8x16x16xf32>
    "tpu.trace_start"() <{level = 10 : i32, message = "hqk,hkd->hqd"}> : () -> ()
    %cst_76 = arith.constant dense<0.000000e+00> : vector<8x16x16xf32>
    %170 = tpu.matmul %169, %154, %cst_76 {dimension_numbers = #tpu.dot_dimension_numbers<[2], [1], [1], [2], [0, 0, 0, 1, 1, 2], [0], [0]>} : vector<8x16x16xf32>, vector<8x16x16xf32>, vector<8x16x16xf32> -> vector<8x16x16xf32>
    "tpu.trace_stop"() : () -> ()
    %171 = arith.truncf %170 : vector<8x16x16xf32> to vector<8x16x16xbf16>
    %c2_77 = arith.constant 2 : index
    %c0_78 = arith.constant 0 : index
    %c0_79 = arith.constant 0 : index
    %c0_80 = arith.constant 0 : index
    %172 = vector.load %arg4[%c2_77, %c0_78, %c0_79, %c0_80] : memref<3x8x16x128xbf16, #tpu.memory_space<vmem>>, vector<1x8x16x128xbf16>
    %173 = vector.shape_cast %172 : vector<1x8x16x128xbf16> to vector<8x16x128xbf16>
    "tpu.trace_start"() <{level = 10 : i32, message = "hqd,hdf->hqf"}> : () -> ()
    %cst_81 = arith.constant dense<0.000000e+00> : vector<8x16x128xf32>
    %174 = tpu.matmul %171, %173, %cst_81 {dimension_numbers = #tpu.dot_dimension_numbers<[2], [1], [1], [2], [0, 0, 0, 1, 1, 2], [0], [0]>} : vector<8x16x16xbf16>, vector<8x16x128xbf16>, vector<8x16x128xf32> -> vector<8x16x128xf32>
    "tpu.trace_stop"() : () -> ()
    %cst_82 = arith.constant dense<0.000000e+00> : vector<16x128xf32>
    %175 = vector.multi_reduction <add>, %174, %cst_82 [0] : vector<8x16x128xf32> to vector<16x128xf32>
    %c2_83 = arith.constant 2 : index
    %c0_84 = arith.constant 0 : index
    %c0_85 = arith.constant 0 : index
    %176 = vector.load %arg5[%c2_83, %c0_84, %c0_85] : memref<3x1x128xf32, #tpu.memory_space<vmem>>, vector<1x1x128xf32>
    %177 = vector.shape_cast %176 : vector<1x1x128xf32> to vector<1x128xf32>
    %178 = vector.broadcast %177 : vector<1x128xf32> to vector<16x128xf32>
    %179 = arith.addf %175, %178 : vector<16x128xf32>
    %180 = arith.addf %179, %140 : vector<16x128xf32>
    %cst_86 = arith.constant dense<0.000000e+00> : vector<16xf32>
    %181 = vector.multi_reduction <add>, %180, %cst_86 [1] : vector<16x128xf32> to vector<16xf32>
    %182 = vector.shape_cast %181 : vector<16xf32> to vector<16x1xf32>
    %cst_87 = arith.constant 1.280000e+02 : f32
    %183 = vector.broadcast %cst_87 : f32 to vector<16x1xf32>
    %184 = arith.divf %182, %183 : vector<16x1xf32>
    %185 = vector.broadcast %184 : vector<16x1xf32> to vector<16x128xf32>
    %186 = arith.subf %180, %185 : vector<16x128xf32>
    %187 = arith.mulf %186, %186 : vector<16x128xf32>
    %cst_88 = arith.constant dense<0.000000e+00> : vector<16xf32>
    %188 = vector.multi_reduction <add>, %187, %cst_88 [1] : vector<16x128xf32> to vector<16xf32>
    %189 = vector.shape_cast %188 : vector<16xf32> to vector<16x1xf32>
    %cst_89 = arith.constant 1.280000e+02 : f32
    %190 = vector.broadcast %cst_89 : f32 to vector<16x1xf32>
    %191 = arith.divf %189, %190 : vector<16x1xf32>
    %192 = vector.broadcast %184 : vector<16x1xf32> to vector<16x128xf32>
    %193 = arith.subf %180, %192 : vector<16x128xf32>
    %cst_90 = arith.constant 9.99999974E-6 : f32
    %194 = vector.broadcast %cst_90 : f32 to vector<16x1xf32>
    %195 = arith.addf %191, %194 : vector<16x1xf32>
    %196 = math.rsqrt %195 : vector<16x1xf32>
    %197 = vector.broadcast %196 : vector<16x1xf32> to vector<16x128xf32>
    %198 = arith.mulf %193, %197 : vector<16x128xf32>
    %199 = arith.mulf %198, %8 : vector<16x128xf32>
    %200 = arith.addf %199, %11 : vector<16x128xf32>
    %201 = vector.extract_strided_slice %200 {offsets = [0, 0], sizes = [8, 128], strides = [1, 1]} : vector<16x128xf32> to vector<8x128xf32>
    %cst_91 = arith.constant dense<0.000000e+00> : vector<128xf32>
    %202 = vector.multi_reduction <add>, %201, %cst_91 [0] : vector<8x128xf32> to vector<128xf32>
    %203 = vector.shape_cast %202 : vector<128xf32> to vector<1x128xf32>
    %cst_92 = arith.constant 8.000000e+00 : f32
    %204 = vector.broadcast %cst_92 : f32 to vector<1x128xf32>
    %205 = arith.divf %203, %204 : vector<1x128xf32>
    %206 = vector.extract_strided_slice %200 {offsets = [8, 0], sizes = [8, 128], strides = [1, 1]} : vector<16x128xf32> to vector<8x128xf32>
    %cst_93 = arith.constant dense<0.000000e+00> : vector<128xf32>
    %207 = vector.multi_reduction <add>, %206, %cst_93 [0] : vector<8x128xf32> to vector<128xf32>
    %208 = vector.shape_cast %207 : vector<128xf32> to vector<1x128xf32>
    %cst_94 = arith.constant 8.000000e+00 : f32
    %209 = vector.broadcast %cst_94 : f32 to vector<1x128xf32>
    %210 = arith.divf %208, %209 : vector<1x128xf32>
    %211 = tpu.concatenate %205, %210 in 0 : vector<1x128xf32>, vector<1x128xf32> -> vector<2x128xf32>
    %212 = arith.truncf %211 : vector<2x128xf32> to vector<2x128xbf16>
    %c0_95 = arith.constant 0 : index
    %c0_96 = arith.constant 0 : index
    %213 = vector.load %arg8[%c0_95, %c0_96] : memref<128x512xbf16, #tpu.memory_space<vmem>>, vector<128x512xbf16>
    %cst_97 = arith.constant dense<0.000000e+00> : vector<2x512xf32>
    %214 = tpu.matmul %212, %213, %cst_97 {dimension_numbers = #tpu.dot_dimension_numbers<[1], [0], [0], [1], [0, 0, 1, 1], [], []>} : vector<2x128xbf16>, vector<128x512xbf16>, vector<2x512xf32> -> vector<2x512xf32>
    %c0_98 = arith.constant 0 : index
    %c0_99 = arith.constant 0 : index
    %215 = vector.load %arg9[%c0_98, %c0_99] : memref<1x512xf32, #tpu.memory_space<vmem>>, vector<1x512xf32>
    %216 = vector.broadcast %215 : vector<1x512xf32> to vector<2x512xf32>
    %217 = arith.addf %214, %216 : vector<2x512xf32>
    %cst_100 = arith.constant 0.000000e+00 : f32
    %218 = vector.broadcast %cst_100 : f32 to vector<2x512xf32>
    %219 = arith.maximumf %217, %218 : vector<2x512xf32>
    %220 = arith.truncf %219 : vector<2x512xf32> to vector<2x512xbf16>
    %c0_101 = arith.constant 0 : index
    %c0_102 = arith.constant 0 : index
    %221 = vector.load %arg10[%c0_101, %c0_102] : memref<512x128xbf16, #tpu.memory_space<vmem>>, vector<512x128xbf16>
    %cst_103 = arith.constant dense<0.000000e+00> : vector<2x128xf32>
    %222 = tpu.matmul %220, %221, %cst_103 {dimension_numbers = #tpu.dot_dimension_numbers<[1], [0], [0], [1], [0, 0, 1, 1], [], []>} : vector<2x512xbf16>, vector<512x128xbf16>, vector<2x128xf32> -> vector<2x128xf32>
    %c0_104 = arith.constant 0 : index
    %c0_105 = arith.constant 0 : index
    %223 = vector.load %arg11[%c0_104, %c0_105] : memref<1x128xf32, #tpu.memory_space<vmem>>, vector<1x128xf32>
    %224 = vector.broadcast %223 : vector<1x128xf32> to vector<2x128xf32>
    %225 = arith.addf %222, %224 : vector<2x128xf32>
    %c0_106 = arith.constant 0 : index
    %c0_107 = arith.constant 0 : index
    %226 = vector.load %arg12[%c0_106, %c0_107] : memref<2x128xf32, #tpu.memory_space<vmem>>, vector<2x128xf32>
    tpu.vector_store %arg12[%c0_106, %c0_107], %225 {strides = array<i32>} : memref<2x128xf32, #tpu.memory_space<vmem>>, vector<2x128xf32>,
    return
  }
}

</mosaic_0001>

<bundles_post_ra>
// kernel: attention_model_forward.1
= control target key start
LH: loop header
LB: loop body
LE: loop exit
PB: predicated region body
PF: predicated region fallthrough
CT: control target
= control target key end

     0   :  { %17 = vsyncpa [#allocation3], 0  ;;  %s7964_s0 = inlined_call_operand.vmem [shape: f32[2,8,128], index: 0, kind: input, shape index: {}]   ;;  %s7965_s1 = inlined_call_operand.vmem [shape: f32[8,128], index: 1, kind: input, shape index: {}]   ;;  %s7966_s2 = inlined_call_operand.hbm [shape: bf16[3,8,48,128], index: 2, kind: input, shape index: {}]   ;;  %s7967_s3 = inlined_call_operand.hbm [shape: bf16[3,8,16,48], index: 3, kind: input, shape index: {}]   ;;  %s7968_s4 = inlined_call_operand.hbm [shape: bf16[3,8,16,128], index: 4, kind: input, shape index: {}]   ;;  %s7969_s5 = inlined_call_operand.vmem [shape: f32[3,1,128], index: 5, kind: input, shape index: {}]   ;;  %s7970_s6 = inlined_call_operand.vmem [shape: f32[1,128], index: 6, kind: input, shape index: {}]   ;;  %s7971_s7 = inlined_call_operand.vmem [shape: f32[1,128], index: 7, kind: input, shape index: {}]   ;;  %s7972_s8 = inlined_call_operand.hbm [shape: bf16[128,512], index: 8, kind: input, shape index: {}]   ;;  %s7973_s9 = inlined_call_operand.vmem [shape: f32[1,512], index: 9, kind: input, shape index: {}]   ;;  %s7974_s10 = inlined_call_operand.hbm [shape: bf16[512,128], index: 10, kind: input, shape index: {}]   ;;  %s7975_s11 = inlined_call_operand.vmem [shape: f32[1,128], index: 11, kind: input, shape index: {}]   ;;  %s7976_s12 = inlined_call_operand.hbm [shape: f32[2,128], index: 12, kind: output, shape index: {}]  }
   0x1   :  { %18 = vsyncpa [#allocation6], 0 }
   0x2   :  { %19 = vsyncpa [#allocation9], 0 }
   0x3   :  { %20 = vsyncpa [#allocation4], 0  ;;  %s42_s23 = sshll.u32 %s7967_s3, 4  ;;  %s6721_s24 = smov [#allocation5]   ;;  %s43_s23 = int_to_ptr.hbm [resolvable:$true] %s42_s23 }
   0x4   :  { %s44_s25 = sshll.u32 %s6721_s24, 4  ;;  %s74_s28 = sshll.u32 %s7972_s8, 4  ;;  %s45_s25 = int_to_ptr.vmem [resolvable:$true] %s44_s25  ;;  %s75_s28 = int_to_ptr.hbm [resolvable:$true] %s74_s28 }
   0x5   :  { %s6722_s29 = smov 64   ;;  %s6723_s30 = smov 4  }
   0x6   :  { %50 = dma.hbm_to_vmem [thread:$0]  %s43_s23, 3072, %s45_s25, [#allocation6], %s6722_s29, %s6722_s29, %s6723_s30  }
   0x7   :  { %s6724_s13 = smov [#allocation8]   ;;  %s6725_s15 = smov 256  }
   0x8   :  { %s76_s14 = sshll.u32 %s6724_s13, 4  ;;  %s6726_s3 = smov 16   ;;  %s77_s14 = int_to_ptr.vmem [resolvable:$true] %s76_s14 }
   0x9   :  { %82 = dma.hbm_to_vmem [thread:$0]  %s75_s28, 4096, %s77_s14, [#allocation9], %s6725_s15, %s6725_s15, %s6726_s3  }
   0xa   :  { %s29_s18 = sshll.u32 %s7966_s2, 4  ;;  %s6727_s19 = smov [#allocation2]   ;;  %s30_s18 = int_to_ptr.hbm [resolvable:$true] %s29_s18 }
   0xb   :  { %s31_s8 = sshll.u32 %s6727_s19, 4  ;;  %s55_s22 = sshll.u32 %s7968_s4, 4  ;;  %s32_s8 = int_to_ptr.vmem [resolvable:$true] %s31_s8  ;;  %s56_s22 = int_to_ptr.hbm [resolvable:$true] %s55_s22 }
   0xc   :  { %37 = dma.hbm_to_vmem [thread:$0]  %s30_s18, 9216, %s32_s8, [#allocation3], %s6722_s29, %s6722_s29, %s6723_s30  }
   0xd   :  { %s6728_s23 = smov [#allocation7]   ;;  %s89_s27 = sshll.u32 %s7974_s10, 4  ;;  %s90_s27 = int_to_ptr.hbm [resolvable:$true] %s89_s27 }
   0xe   :  { %s57_s24 = sshll.u32 %s6728_s23, 4  ;;  %s6729_s2 = smov [#allocation10]   ;;  %s58_s24 = int_to_ptr.vmem [resolvable:$true] %s57_s24 }
   0xf   :  { %63 = dma.hbm_to_vmem [thread:$0]  %s56_s22, 3072, %s58_s24, [#allocation6], %s6722_s29, %s6722_s29, %s6723_s30  }
  0x10   :  { %s91_s28 = sshll.u32 %s6729_s2, 4  ;;  %s92_s28 = int_to_ptr.vmem [resolvable:$true] %s91_s28 }
  0x11   :  { %97 = dma.hbm_to_vmem [thread:$0]  %s90_s27, 4096, %s92_s28, [#allocation9], %s6722_s29, %s6722_s29, %s6723_s30  }
  0x12   :  { %6713 = dma.done.wait [#allocation3], 9216  }
  0x13   :  { %6714 = vsyncadd [#allocation3], 4294958080 }
  0x14   :  { %6715 = dma.done.wait [#allocation6], 6144  }
  0x15   :  { %6716 = vsyncadd [#allocation6], 4294961152 }
  0x16   :  { %6717 = dma.done.wait [#allocation9], 8192  }
  0x17   :  { %6718 = vsyncadd [#allocation9], 4294959104  ;;  %v5947_v0 = vld [vmem:[#allocation2 + $0x40] sm:$0xff]  ;;  %v5950_v1 = vld [vmem:[#allocation2 + $0x58] sm:$0xff]  ;;  %vm495_vm0 = vcmask 130048   ;;  %s6735_s10 = smov [#allocation11]  }
  0x18   :  { %v5941_v2 = vld [vmem:[#allocation2 + $0x10] sm:$0xff]  ;;  %320 = vmatpush.bf16.xpose.msra.mxu2 %v5947_v0  ;;  %352 = vmatpush.bf16.xpose.msra.mxu3 %v5950_v1  ;;  %v5944_v3 = vld [vmem:[#allocation2 + $0x28] sm:$0xff]  ;;  %v5946_v4 = vld [vmem:[#allocation2 + $0x38] sm:$0xff]  ;;  %s5115_s29 = sshll.u32 %s6735_s10, 4  ;;  %s5117_s14 = sshll.u32 %s7976_s12, 4  ;;  %s5116_s29 = int_to_ptr.vmem [resolvable:$true] %s5115_s29  ;;  %s5118_s14 = int_to_ptr.hbm [resolvable:$true] %s5117_s14 }
  0x19   :  { %256 = vmatpush.bf16.xpose.msra.mxu0 %v5941_v2  ;;  %288 = vmatpush.bf16.xpose.msra.mxu1 %v5944_v3  ;;  %v5949_v5 = vld [vmem:[#allocation2 + $0x50] sm:$0xff]  ;;  %v121_v6 = vld [vmem:[%s7964_s0] sm:$0xff]  ;;  %v122_v7 = vld [vmem:[%s7964_s0 + $0x8] sm:$0xff]  ;;  %s6730_s0 = smov 112  }
  0x1a   :  { %v123_v8 = vld [vmem:[%s7965_s1] sm:$0xff]  ;;  %v5940_v9 = vld [vmem:[#allocation2 + $0x8] sm:$0xff]  ;;  %v5945_v15 = vld [vmem:[#allocation2 + $0x30] sm:$0xff]  ;;  %s6731_s1 = smov 96  }
  0x1b   :  { %v5943_v10 = vld [vmem:[#allocation2 + $0x20] sm:$0xff]  ;;  %v6837_v11 = vadd.f32 %v123_v8, %v121_v6  ;;  %v6839_v12 = vadd.f32 %v123_v8, %v122_v7  ;;  %v5948_v16 = vld [vmem:[#allocation2 + $0x48] sm:$0xff]  ;;  %v5962_v19 = vld [vmem:[#allocation2 + $0xb8] sm:$0xff] }
  0x1c   :  { %v5959_v17 = vld [vmem:[#allocation2 + $0xa0] sm:$0xff]  ;;  %v5942_v20 = vld [vmem:[#allocation2 + $0x18] sm:$0xff]  ;;  %v5956_v23 = vld [vmem:[#allocation2 + $0x88] sm:$0xff] }
  0x1d   :  { %v145_v13 = vpack.c.bf16 %v6837_v11, %v6837_v11  ;;  %v146_v14 = vpack.c.bf16 %v6839_v12, %v6839_v12  ;;  %v5939_v18 = vld [vmem:[#allocation2] sm:$0xff]  ;;  %v5953_v24 = vld [vmem:[#allocation2 + $0x70] sm:$0xff]  ;;  %v5958_v26 = vld [vmem:[#allocation2 + $0x98] sm:$0xff] }
  0x1e   :  { %v5961_v27 = vld [vmem:[#allocation2 + $0xb0] sm:$0xff]  ;;  %v5955_v28 = vld [vmem:[#allocation2 + $0x80] sm:$0xff]  ;;  %v5952_v29 = vld [vmem:[#allocation2 + $0x68] sm:$0xff] }
  0x1f   :  { %v229_v21 = vunpack.c.l.b16 %v145_v13  ;;  %v230_v22 = vunpack.c.l.b16 %v146_v14  ;;  %v5957_v30 = vld [vmem:[#allocation2 + $0x90] sm:$0xff]  ;;  %v5960_v31 = vld [vmem:[#allocation2 + $0xa8] sm:$0xff]  ;;  %v5954_v32 = vld [vmem:[#allocation2 + $0x78] sm:$0xff] }
  0x20   :  { %321 = vmatpush.bf16.xpose.msra.mxu2 %v5946_v4  ;;  %353 = vmatpush.bf16.xpose.msra.mxu3 %v5949_v5  ;;  %v5951_v33 = vld [vmem:[#allocation2 + $0x60] sm:$0xff]  ;;  %v6196_v34 = vld [vmem:[#allocation5 + $0x10] sm:$0xff]   ;;  %v6197_v40 = vld [vmem:[#allocation5 + $0x18] sm:$0xff]  }
  0x21   :  { %257 = vmatpush.bf16.xpose.msra.mxu0 %v5940_v9  ;;  %289 = vmatpush.bf16.xpose.msra.mxu1 %v5943_v10  ;;  %v231_v25 = vpack.c.b16 %v230_v22, %v229_v21  ;;  %v6100_v36 = vld [vmem:[#allocation5] sm:$0xff]   ;;  %v6109_v37 = vunpack.c.l.bf16 %v6196_v34  ;;  %v6113_v44 = vunpack.c.l.bf16 %v6197_v40  ;;  %v6195_v46 = vld [vmem:[#allocation5 + $0x8] sm:$0xff]   ;;  %v6110_v48 = vunpack.c.h.bf16 %v6196_v34  ;;  %v6201_v57 = vld [vmem:[#allocation5 + $0x38] sm:$0xff]  }
  0x22   :  { %v6102_v42 = vunpack.c.h.bf16 %v6100_v36  ;;  %v6106_v49 = vunpack.c.h.bf16 %v6195_v46  ;;  %v6101_v56 = vunpack.c.l.bf16 %v6100_v36  ;;  %v6114_v58 = vunpack.c.h.bf16 %v6197_v40  ;;  %v6200_v63 = vld [vmem:[#allocation5 + $0x30] sm:$0xff]   ;;  %v6198_v3 = vld [vmem:[#allocation5 + $0x20] sm:$0xff]   ;;  %v6199_v8 = vld [vmem:[#allocation5 + $0x28] sm:$0xff]  }
  0x23   :  { %v6129_v60 = vunpack.c.l.bf16 %v6201_v57  ;;  %v6125_v4 = vunpack.c.l.bf16 %v6200_v63  ;;  %v6126_v5 = vunpack.c.h.bf16 %v6200_v63  ;;  %v6117_v6 = vunpack.c.l.bf16 %v6198_v3 }
  0x24   :  { %v6118_v21 = vunpack.c.h.bf16 %v6198_v3  ;;  %v6732_v63 = vmov -1e+30  }
  0x28   :  { %322 = vmatpush.bf16.xpose.msra.mxu2 %v5945_v15  ;;  %354 = vmatpush.bf16.xpose.msra.mxu3 %v5948_v16  ;;  %v6122_v15 = vunpack.c.h.bf16 %v6199_v8  ;;  %v6105_v16 = vunpack.c.l.bf16 %v6195_v46 }
  0x29   :  { %258 = vmatpush.bf16.xpose.msra.mxu0 %v5939_v18  ;;  %290 = vmatpush.bf16.xpose.msra.mxu1 %v5942_v20 }
  0x2f   :  { %323 = vmatmul.bf16.vlgmr.msra.gmra.mxu2 %v231_v25  ;;  %355 = vmatmul.bf16.vlgmr.msra.gmra.mxu3 %v231_v25 }
  0x30   :  { %448 = vmatpush.bf16.xpose.msrb.mxu2 %v5959_v17  ;;  %480 = vmatpush.bf16.xpose.msrb.mxu3 %v5962_v19 }
  0x31   :  { %416 = vmatpush.bf16.xpose.msrb.mxu1 %v5956_v23  ;;  %384 = vmatpush.bf16.xpose.msrb.mxu0 %v5953_v24  ;;  %v6130_v23 = vunpack.c.h.bf16 %v6201_v57  ;;  %v134_v57 = vlaneseq }
  0x32   :  { %259 = vmatmul.bf16.vlgmr.msra.gmra.mxu0 %v231_v25  ;;  %291 = vmatmul.bf16.vlgmr.msra.gmra.mxu1 %v231_v25 }
  0x38   :  { %449 = vmatpush.bf16.xpose.msrb.mxu2 %v5958_v26  ;;  %481 = vmatpush.bf16.xpose.msrb.mxu3 %v5961_v27 }
  0x39   :  { %417 = vmatpush.bf16.xpose.msrb.mxu1 %v5955_v28  ;;  %385 = vmatpush.bf16.xpose.msrb.mxu0 %v5952_v29  ;;  %v6121_v28 = vunpack.c.l.bf16 %v6199_v8 }
  0x40   :  { %450 = vmatpush.bf16.xpose.msrb.mxu2 %v5957_v30  ;;  %482 = vmatpush.bf16.xpose.msrb.mxu3 %v5960_v31 }
  0x41   :  { %418 = vmatpush.bf16.xpose.msrb.mxu1 %v5954_v32  ;;  %386 = vmatpush.bf16.xpose.msrb.mxu0 %v5951_v33 }
  0x47   :  { %451 = vmatmul.bf16.vlgmr.msrb.gmra.mxu2 %v231_v25  ;;  %483 = vmatmul.bf16.vlgmr.msrb.gmra.mxu3 %v231_v25 }
  0x48   :  { %419 = vmatmul.bf16.vlgmr.msrb.gmra.mxu1 %v231_v25  ;;  %387 = vmatmul.bf16.vlgmr.msrb.gmra.mxu0 %v231_v25 }
  0xaf   :  { %v260_v35 = vpop.f32.mrf.mxu0  ;;  %v292_v38 = vpop.f32.mrf.mxu1 }
  0xb0   :  { %v6865_v59 = vadd.f32 %v6101_v56, %v260_v35  ;;  %v6891_v19 = vadd.f32 %v6105_v16, %v292_v38 }
  0xb2   :  { %v324_v39 = vpop.f32.mrf.mxu2  ;;  %v356_v41 = vpop.f32.mrf.mxu3 }
  0xb3   :  { %v6845_v43 = vadd.f32 %v6109_v37, %v324_v39  ;;  %v6853_v50 = vadd.f32 %v6113_v44, %v356_v41 }
  0xb5   :  { %566 = vrot.lane.b32.xlu1 %v6845_v43, %s6730_s0 }
  0xb7   :  { %v262_v45 = vpop.f32.mrf.mxu0  ;;  %v294_v51 = vpop.f32.mrf.mxu1 }
  0xb8   :  { %v6849_v47 = vadd.f32 %v6102_v42, %v262_v45  ;;  %v6857_v55 = vadd.f32 %v6106_v49, %v294_v51 }
  0xba   :  { %493 = vrot.lane.b32.xlu2 %v6849_v47, %s6730_s0  ;;  %v326_v52 = vpop.f32.mrf.mxu2  ;;  %v358_v54 = vpop.f32.mrf.mxu3  ;;  %v6241_v20 = vpack.i.bf16 %v6865_v59, %v6849_v47 }
  0xbb   :  { %v6855_v53 = vadd.f32 %v6110_v48, %v326_v52  ;;  %v6867_v61 = vadd.f32 %v6114_v58, %v358_v54  ;;  %v135_v58 = vshrl.u32 %v134_v57, 7 }
  0xbd   :  { %568 = vrot.lane.b32.xlu0 %v6855_v53, %s6730_s0  ;;  %603 = vrot.lane.b32.xlu1 %v6853_v50, %s6730_s0  ;;  %v6236_v26 = vpack.i.bf16 %v6853_v50, %v6867_v61  ;;  %v6231_v30 = vpack.i.bf16 %v6845_v43, %v6855_v53 }
  0xc2   :  { %531 = vrot.lane.b32.xlu2 %v6857_v55, %s6730_s0 }
  0xc5   :  { %v420_v1 = vpop.f32.mrf.mxu1  ;;  %605 = vrot.lane.b32.xlu0 %v6867_v61, %s6730_s0  ;;  %491 = vrot.lane.b32.xlu1 %v6865_v59, %s6730_s0  ;;  %v388_v7 = vpop.f32.mrf.mxu0 }
  0xc6   :  { %v6881_v14 = vadd.f32 %v6117_v6, %v388_v7  ;;  %v6911_v29 = vadd.f32 %v6121_v28, %v420_v1 }
  0xca   :  { %v452_v62 = vpop.f32.mrf.mxu2  ;;  %v484_v0 = vpop.f32.mrf.mxu3 }
  0xcb   :  { %v6873_v2 = vadd.f32 %v6129_v60, %v484_v0  ;;  %v6877_v9 = vadd.f32 %v6125_v4, %v452_v62 }
  0xcd   :  { %751 = vrot.lane.b32.xlu2 %v6873_v2, %s6730_s0  ;;  %714 = vrot.lane.b32.xlu1 %v6877_v9, %s6730_s0  ;;  %v422_v17 = vpop.f32.mrf.mxu1  ;;  %v390_v22 = vpop.f32.mrf.mxu0 }
  0xce   :  { %v6889_v18 = vadd.f32 %v6122_v15, %v422_v17  ;;  %v6900_v25 = vadd.f32 %v6118_v21, %v390_v22 }
  0xd2   :  { %v454_v10 = vpop.f32.mrf.mxu2  ;;  %v486_v24 = vpop.f32.mrf.mxu3 }
  0xd3   :  { %v6879_v13 = vadd.f32 %v6126_v5, %v454_v10  ;;  %v6904_v27 = vadd.f32 %v6130_v23, %v486_v24 }
  0xd5   :  { %716 = vrot.lane.b32.xlu0 %v6879_v13, %s6730_s0  ;;  %640 = vrot.lane.b32.xlu2 %v6881_v14, %s6730_s0 }
  0xd6   :  { %679 = vrot.lane.b32.xlu1 %v6889_v18, %s6730_s0 }
  0xdd   :  { %529 = vrot.lane.b32.xlu0 %v6891_v19, %s6730_s0  ;;  %6242 = vrot.lane.b32.xlu2 %v6241_v20, %s6731_s1 }
  0xde   :  { %6237 = vrot.lane.b32.xlu1 %v6236_v26, %s6731_s1 }
  0xe5   :  { %642 = vrot.lane.b32.xlu0 %v6900_v25, %s6730_s0  ;;  %753 = vrot.lane.b32.xlu2 %v6904_v27, %s6730_s0 }
  0xed   :  { %677 = vrot.lane.b32.xlu0 %v6911_v29, %s6730_s0 }
  0xf5   :  { %6232 = vrot.lane.b32.xlu0 %v6231_v30, %s6731_s1 }
 0x114   :  { %v494_v31 = vpop.permute.xlu2 %493 }
 0x115   :  { %5225 = vmatpush.xpose.msk.msra.mxu0 %vm495_vm0, %v494_v31 }
 0x11c   :  { %v532_v32 = vpop.permute.xlu2 %531 }
 0x11d   :  { %5229 = vmatpush.xpose.msk.msra.mxu1 %vm495_vm0, %v532_v32 }
 0x127   :  { %v752_v33 = vpop.permute.xlu2 %751  ;;  %v567_v34 = vpop.permute.xlu1 %566 }
 0x12f   :  { %v641_v35 = vpop.permute.xlu2 %640  ;;  %v569_v36 = vpop.permute.xlu0 %568 }
 0x130   :  { %v604_v37 = vpop.permute.xlu1 %603  ;;  %5233 = vmatpush.xpose.msk.msra.mxu2 %vm495_vm0, %v569_v36 }
 0x134   :  { %5234 = vmatpush.xpose.msk.msra.mxu2 %vm495_vm0, %v567_v34 }
 0x137   :  { %v6243_v38 = vpop.permute.xlu2 %6242  ;;  %v606_v39 = vpop.permute.xlu0 %605  ;;  %5235 = vmatmul.msk.f32.vlgmr.msra.gmra.mxu2 %vm495_vm0, %v6845_v43 }
 0x138   :  { %v492_v40 = vpop.permute.xlu1 %491  ;;  %5237 = vmatpush.xpose.msk.msra.mxu3 %vm495_vm0, %v606_v39  ;;  %v6245_v51 = vunpack.i.h.bf16 %v6243_v38 }
 0x139   :  { %5226 = vmatpush.xpose.msk.msra.mxu0 %vm495_vm0, %v492_v40 }
 0x13c   :  { %5227 = vmatmul.msk.f32.vlgmr.msra.gmra.mxu0 %vm495_vm0, %v6865_v59  ;;  %5238 = vmatpush.xpose.msk.msra.mxu3 %vm495_vm0, %v604_v37  ;;  %v138_v59 = vand.u32 127, %v134_v57 }
 0x13e   :  { %v139_v60 = vxor.u32 %v138_v59, %v135_v58 }
 0x13f   :  { %v754_v41 = vpop.permute.xlu2 %753  ;;  %5236 = vmatmul.msk.f32.gmra.mxu2 %vm495_vm0, %v6855_v53  ;;  %5239 = vmatmul.msk.f32.vlgmr.msra.gmra.mxu3 %vm495_vm0, %v6853_v50  ;;  %v6244_v50 = vunpack.i.l.bf16 %v6243_v38 }
 0x140   :  { %5253 = vmatpush.xpose.msk.msrb.mxu3 %vm495_vm0, %v754_v41  ;;  %v715_v42 = vpop.permute.xlu1 %714  ;;  %vm141_vm1 = vcmp.lt.s32.totalorder %v139_v60, 8 }
 0x141   :  { %v6966_v0 = vsel %vm141_vm1, 0.0, %v6732_v63 }
 0x144   :  { %5254 = vmatpush.xpose.msk.msrb.mxu3 %vm495_vm0, %v752_v33  ;;  %5228 = vmatmul.msk.f32.gmra.mxu0 %vm495_vm0, %v6849_v47 }
 0x147   :  { %v717_v43 = vpop.permute.xlu0 %716  ;;  %5240 = vmatmul.msk.f32.gmra.mxu3 %vm495_vm0, %v6867_v61  ;;  %v136_v61 = vadd.s32 8, %v135_v58 }
 0x148   :  { %5249 = vmatpush.xpose.msk.msrb.mxu2 %vm495_vm0, %v717_v43  ;;  %v680_v44 = vpop.permute.xlu1 %679 }
 0x149   :  { %v140_v3 = vxor.u32 %v138_v59, %v136_v61 }
 0x14b   :  { %vm142_vm2 = vcmp.lt.s32.totalorder %v140_v3, 8 }
 0x14c   :  { %5250 = vmatpush.xpose.msk.msrb.mxu2 %vm495_vm0, %v715_v42  ;;  %v6973_v7 = vsel %vm142_vm2, 0.0, %v6732_v63 }
 0x14f   :  { %v530_v45 = vpop.permute.xlu0 %529  ;;  %5251 = vmatmul.msk.f32.vlgmr.msrb.gmra.mxu2 %vm495_vm0, %v6877_v9  ;;  %5255 = vmatmul.msk.f32.vlgmr.msrb.gmra.mxu3 %vm495_vm0, %v6873_v2 }
 0x150   :  { %5230 = vmatpush.xpose.msk.msra.mxu1 %vm495_vm0, %v530_v45  ;;  %v6238_v46 = vpop.permute.xlu1 %6237 }
 0x151   :  { %v6239_v47 = vunpack.i.l.bf16 %v6238_v46  ;;  %v6240_v49 = vunpack.i.h.bf16 %v6238_v46 }
 0x153   :  { %5231 = vmatmul.msk.f32.vlgmr.msra.gmra.mxu1 %vm495_vm0, %v6891_v19  ;;  %1125 = vmatpush.msra.mxu3 %v6239_v47 }
 0x154   :  { %5245 = vmatpush.xpose.msk.msrb.mxu1 %vm495_vm0, %v680_v44 }
 0x155   :  { %1126 = vmatpush.msra.mxu3 %v6240_v49 }
 0x157   :  { %v643_v48 = vpop.permute.xlu0 %642  ;;  %5252 = vmatmul.msk.f32.gmra.mxu2 %vm495_vm0, %v6879_v13  ;;  %5256 = vmatmul.msk.f32.gmra.mxu3 %vm495_vm0, %v6904_v27 }
 0x158   :  { %5241 = vmatpush.xpose.msk.msrb.mxu0 %vm495_vm0, %v643_v48 }
 0x15b   :  { %5232 = vmatmul.msk.f32.gmra.mxu1 %vm495_vm0, %v6857_v55 }
 0x15c   :  { %5242 = vmatpush.xpose.msk.msrb.mxu0 %vm495_vm0, %v641_v35 }
 0x15f   :  { %v678_v52 = vpop.permute.xlu0 %677  ;;  %5243 = vmatmul.msk.f32.vlgmr.msrb.gmra.mxu0 %vm495_vm0, %v6881_v14 }
 0x160   :  { %1020 = vmatpush.msra.mxu0 %v6244_v50  ;;  %5246 = vmatpush.xpose.msk.msrb.mxu1 %vm495_vm0, %v678_v52 }
 0x162   :  { %1021 = vmatpush.msra.mxu0 %v6245_v51 }
 0x163   :  { %5247 = vmatmul.msk.f32.vlgmr.msrb.gmra.mxu1 %vm495_vm0, %v6911_v29 }
 0x167   :  { %v6233_v53 = vpop.permute.xlu0 %6232  ;;  %5244 = vmatmul.msk.f32.gmra.mxu0 %vm495_vm0, %v6900_v25 }
 0x168   :  { %v6234_v54 = vunpack.i.l.bf16 %v6233_v53  ;;  %v6235_v56 = vunpack.i.h.bf16 %v6233_v53 }
 0x16a   :  { %1090 = vmatpush.msra.mxu2 %v6234_v54 }
 0x16b   :  { %5248 = vmatmul.msk.f32.gmra.mxu1 %vm495_vm0, %v6889_v18 }
 0x16c   :  { %1091 = vmatpush.msra.mxu2 %v6235_v56 }
 0x1b9   :  { %v521_v62 = vpop.f32.mrf.mxu0 }
 0x1ba   :  { %v786_v1 = vmul.f32 0.25, %v521_v62  ;;  %v595_v17 = vpop.f32.mrf.mxu2 }
 0x1bb   :  { %v790_v23 = vmul.f32 0.25, %v595_v17 }
 0x1bc   :  { %v6969_v4 = vadd.f32 %v786_v1, %v6966_v0 }
 0x1bd   :  { %v6986_v32 = vadd.f32 %v790_v23, %v6966_v0 }
 0x1be   :  { %v818_v5 = vsel %vm495_vm0, %v6969_v4, -inf }
 0x1bf   :  { %819 = vmax.xlane.f32.xlu0 %v818_v5  ;;  %v830_v38 = vsel %vm495_vm0, %v6986_v32, -inf }
 0x1c1   :  { %v524_v6 = vpop.f32.mrf.mxu0 }
 0x1c2   :  { %v787_v8 = vmul.f32 0.25, %v524_v6  ;;  %v632_v15 = vpop.f32.mrf.mxu3  ;;  %v598_v28 = vpop.f32.mrf.mxu2 }
 0x1c3   :  { %v792_v35 = vmul.f32 0.25, %v632_v15  ;;  %v791_v46 = vmul.f32 0.25, %v598_v28 }
 0x1c4   :  { %v6976_v10 = vadd.f32 %v787_v8, %v6973_v7 }
 0x1c5   :  { %v6996_v42 = vadd.f32 %v792_v35, %v6966_v0  ;;  %v7011_v52 = vadd.f32 %v791_v46, %v6973_v7 }
 0x1c6   :  { %v821_v16 = vsel %vm495_vm0, %v6976_v10, -inf }
 0x1c7   :  { %822 = vmax.xlane.f32.xlu0 %v821_v16  ;;  %v836_v48 = vsel %vm495_vm0, %v6996_v42, -inf  ;;  %v833_v58 = vsel %vm495_vm0, %v7011_v52, -inf }
 0x1ca   :  { %v635_v26 = vpop.f32.mrf.mxu3 }
 0x1cb   :  { %v793_v59 = vmul.f32 0.25, %v635_v26 }
 0x1cd   :  { %v7026_v1 = vadd.f32 %v793_v59, %v6973_v7 }
 0x1cf   :  { %v839_v15 = vsel %vm495_vm0, %v7026_v1, -inf }
 0x1d0   :  { %v558_v20 = vpop.f32.mrf.mxu1 }
 0x1d1   :  { %v788_v21 = vmul.f32 0.25, %v558_v20 }
 0x1d2   :  { %v780_v39 = vpop.f32.mrf.mxu3  ;;  %v743_v44 = vpop.f32.mrf.mxu2 }
 0x1d3   :  { %v6981_v22 = vadd.f32 %v788_v21, %v6966_v0  ;;  %v798_v47 = vmul.f32 0.25, %v743_v44  ;;  %v800_v63 = vmul.f32 0.25, %v780_v39 }
 0x1d5   :  { %v824_v24 = vsel %vm495_vm0, %v6981_v22, -inf  ;;  %v7014_v54 = vadd.f32 %v798_v47, %v6966_v0  ;;  %v7032_v6 = vadd.f32 %v800_v63, %v6966_v0 }
 0x1d6   :  { %825 = vmax.xlane.f32.xlu1 %v824_v24 }
 0x1d7   :  { %v854_v61 = vsel %vm495_vm0, %v7014_v54, -inf  ;;  %v860_v17 = vsel %vm495_vm0, %v7032_v6, -inf }
 0x1d8   :  { %v561_v30 = vpop.f32.mrf.mxu1 }
 0x1d9   :  { %v789_v31 = vmul.f32 0.25, %v561_v30  ;;  %v6246_v30 = vpack.i.bf16 %v6891_v19, %v6857_v55 }
 0x1da   :  { %v783_v56 = vpop.f32.mrf.mxu3  ;;  %v746_v21 = vpop.f32.mrf.mxu2 }
 0x1db   :  { %v6989_v33 = vadd.f32 %v789_v31, %v6973_v7  ;;  %v801_v60 = vmul.f32 0.25, %v783_v56  ;;  %v799_v23 = vmul.f32 0.25, %v746_v21 }
 0x1dc   :  { %v669_v34 = vpop.f32.mrf.mxu0 }
 0x1dd   :  { %v794_v36 = vmul.f32 0.25, %v669_v34  ;;  %v827_v37 = vsel %vm495_vm0, %v6989_v33, -inf  ;;  %v7029_v3 = vadd.f32 %v801_v60, %v6973_v7  ;;  %v7043_v26 = vadd.f32 %v799_v23, %v6973_v7 }
 0x1de   :  { %828 = vmax.xlane.f32.xlu2 %v827_v37  ;;  %831 = vmax.xlane.f32.xlu1 %v830_v38 }
 0x1df   :  { %v6999_v43 = vadd.f32 %v794_v36, %v6966_v0  ;;  %v863_v16 = vsel %vm495_vm0, %v7029_v3, -inf  ;;  %v857_v28 = vsel %vm495_vm0, %v7043_v26, -inf }
 0x1e0   :  { %v706_v40 = vpop.f32.mrf.mxu1 }
 0x1e1   :  { %v796_v41 = vmul.f32 0.25, %v706_v40  ;;  %v842_v49 = vsel %vm495_vm0, %v6999_v43, -inf }
 0x1e3   :  { %v7002_v45 = vadd.f32 %v796_v41, %v6966_v0 }
 0x1e4   :  { %v672_v5 = vpop.f32.mrf.mxu0 }
 0x1e5   :  { %v848_v50 = vsel %vm495_vm0, %v7002_v45, -inf  ;;  %v795_v8 = vmul.f32 0.25, %v672_v5 }
 0x1e6   :  { %837 = vmax.xlane.f32.xlu2 %v836_v48  ;;  %843 = vmax.xlane.f32.xlu1 %v842_v49 }
 0x1e7   :  { %849 = vmax.xlane.f32.xlu0 %v848_v50  ;;  %v811_v20 = vadd.f32 %v795_v8, %v6973_v7 }
 0x1e8   :  { %v709_v51 = vpop.f32.mrf.mxu1 }
 0x1e9   :  { %v797_v53 = vmul.f32 0.25, %v709_v51  ;;  %v845_v24 = vsel %vm495_vm0, %v811_v20, -inf }
 0x1eb   :  { %v7017_v57 = vadd.f32 %v797_v53, %v6973_v7 }
 0x1ed   :  { %v851_v62 = vsel %vm495_vm0, %v7017_v57, -inf }
 0x1ee   :  { %834 = vmax.xlane.f32.xlu2 %v833_v58  ;;  %855 = vmax.xlane.f32.xlu1 %v854_v61 }
 0x1ef   :  { %852 = vmax.xlane.f32.xlu0 %v851_v62 }
 0x1f6   :  { %840 = vmax.xlane.f32.xlu2 %v839_v15  ;;  %864 = vmax.xlane.f32.xlu1 %v863_v16  ;;  %v6256_v15 = vpack.i.bf16 %v6873_v2, %v6904_v27 }
 0x1f7   :  { %861 = vmax.xlane.f32.xlu0 %v860_v17 }
 0x1fe   :  { %846 = vmax.xlane.f32.xlu2 %v845_v24 }
 0x206   :  { %858 = vmax.xlane.f32.xlu2 %v857_v28 }
 0x20b   :  { %6247 = vrot.lane.b32.xlu0 %v6246_v30, %s6731_s1 }
 0x232   :  { %v820_v31 = vpop.xlane.xlu0 %819 }
 0x233   :  { %v866_v34 = vsub.f32 %v6969_v4, %v820_v31 }
 0x235   :  { %v882_v35 = vmul.f32 1.442695, %v866_v34 }
 0x237   :  { %6357 = vpow2.f32 %v882_v35 }
 0x23a   :  { %v823_v36 = vpop.xlane.xlu0 %822 }
 0x23b   :  { %v867_v37 = vsub.f32 %v6976_v10, %v823_v36 }
 0x23d   :  { %v7052_v38 = vpop.eup %6357  ;;  %v884_v39 = vmul.f32 1.442695, %v867_v37 }
 0x23e   :  { %v914_v40 = vsel %vm495_vm0, %v7052_v38, 0.0 }
 0x23f   :  { %6359 = vpow2.f32 %v884_v39  ;;  %915 = vadd.xlane.f32.xlu1 %v914_v40 }
 0x245   :  { %v7057_v19 = vpop.eup %6359 }
 0x246   :  { %v917_v4 = vsel %vm495_vm0, %v7057_v19, 0.0 }
 0x247   :  { %918 = vadd.xlane.f32.xlu1 %v917_v4 }
 0x249   :  { %v826_v41 = vpop.xlane.xlu1 %825 }
 0x24a   :  { %v868_v55 = vsub.f32 %v6981_v22, %v826_v41 }
 0x24c   :  { %v886_v44 = vmul.f32 1.442695, %v868_v55 }
 0x24e   :  { %6361 = vpow2.f32 %v886_v44 }
 0x251   :  { %v829_v10 = vpop.xlane.xlu2 %828  ;;  %v832_v46 = vpop.xlane.xlu1 %831 }
 0x252   :  { %v869_v47 = vsub.f32 %v6989_v33, %v829_v10  ;;  %v870_v50 = vsub.f32 %v6986_v32, %v832_v46 }
 0x254   :  { %v7062_v48 = vpop.eup %6361  ;;  %v888_v49 = vmul.f32 1.442695, %v869_v47  ;;  %v890_v51 = vmul.f32 1.442695, %v870_v50 }
 0x255   :  { %v920_v22 = vsel %vm495_vm0, %v7062_v48, 0.0 }
 0x256   :  { %6363 = vpow2.f32 %v888_v49  ;;  %921 = vadd.xlane.f32.xlu2 %v920_v22 }
 0x257   :  { %6365 = vpow2.f32 %v890_v51 }
 0x259   :  { %v838_v53 = vpop.xlane.xlu2 %837  ;;  %v844_v32 = vpop.xlane.xlu1 %843 }
 0x25a   :  { %v7069_v58 = vpop.xlane.xlu0 %849  ;;  %v874_v4 = vsub.f32 %v6999_v43, %v844_v32  ;;  %v6261_v32 = vpack.i.bf16 %v6881_v14, %v6900_v25 }
 0x25b   :  { %v876_v43 = vsub.f32 %v7002_v45, %v7069_v58 }
 0x25c   :  { %v7067_v56 = vpop.eup %6363 }
 0x25d   :  { %v923_v33 = vsel %vm495_vm0, %v7067_v56, 0.0  ;;  %v7075_v60 = vpop.eup %6365  ;;  %v902_v22 = vmul.f32 1.442695, %v876_v43 }
 0x25e   :  { %924 = vadd.xlane.f32.xlu1 %v923_v33  ;;  %v926_v61 = vsel %vm495_vm0, %v7075_v60, 0.0 }
 0x261   :  { %v7073_v59 = vpop.xlane.xlu2 %834  ;;  %v7083_v16 = vpop.xlane.xlu1 %855 }
 0x262   :  { %v853_v62 = vpop.xlane.xlu0 %852  ;;  %v871_v14 = vsub.f32 %v7011_v52, %v7073_v59 }
 0x263   :  { %v877_v41 = vsub.f32 %v7017_v57, %v853_v62  ;;  %v898_v57 = vmul.f32 1.442695, %v874_v4 }
 0x266   :  { %927 = vadd.xlane.f32.xlu1 %v926_v61 }
 0x269   :  { %v841_v63 = vpop.xlane.xlu2 %840  ;;  %v865_v2 = vpop.xlane.xlu1 %864 }
 0x26a   :  { %v873_v5 = vsub.f32 %v7026_v1, %v841_v63  ;;  %v862_v17 = vpop.xlane.xlu0 %861  ;;  %v881_v34 = vsub.f32 %v7029_v3, %v865_v2  ;;  %v872_v3 = vsub.f32 %v6996_v42, %v838_v53 }
 0x26b   :  { %v880_v28 = vsub.f32 %v7032_v6, %v862_v17  ;;  %v6251_v6 = vpack.i.bf16 %v6877_v9, %v6879_v13  ;;  %v904_v9 = vmul.f32 1.442695, %v877_v41  ;;  %v6266_v41 = vpack.i.bf16 %v6911_v29, %v6889_v18 }
 0x26c   :  { %v896_v8 = vmul.f32 1.442695, %v873_v5  ;;  %v912_v37 = vmul.f32 1.442695, %v881_v34  ;;  %v894_v13 = vmul.f32 1.442695, %v872_v3 }
 0x26d   :  { %v910_v31 = vmul.f32 1.442695, %v880_v28 }
 0x26e   :  { %6367 = vpow2.f32 %v896_v8  ;;  %6257 = vrot.lane.b32.xlu2 %v6256_v15, %s6731_s1 }
 0x271   :  { %v847_v21 = vpop.xlane.xlu2 %846 }
 0x272   :  { %v875_v23 = vsub.f32 %v811_v20, %v847_v21 }
 0x274   :  { %v7085_v24 = vpop.eup %6367  ;;  %v900_v30 = vmul.f32 1.442695, %v875_v23  ;;  %v892_v23 = vmul.f32 1.442695, %v871_v14 }
 0x275   :  { %v935_v1 = vsel %vm495_vm0, %v7085_v24, 0.0 }
 0x276   :  { %6369 = vpow2.f32 %v900_v30  ;;  %936 = vadd.xlane.f32.xlu0 %v935_v1 }
 0x277   :  { %6371 = vpow2.f32 %v910_v31 }
 0x278   :  { %6373 = vpow2.f32 %v912_v37 }
 0x279   :  { %6375 = vpow2.f32 %v904_v9  ;;  %v859_v63 = vpop.xlane.xlu2 %858 }
 0x27a   :  { %6377 = vpow2.f32 %v894_v13  ;;  %v879_v2 = vsub.f32 %v7043_v26, %v859_v63 }
 0x27b   :  { %6379 = vpow2.f32 %v898_v57 }
 0x27c   :  { %v7090_v27 = vpop.eup %6369  ;;  %6381 = vpow2.f32 %v902_v22 }
 0x27d   :  { %v6248_v35 = vpop.permute.xlu0 %6247  ;;  %v941_v20 = vsel %vm495_vm0, %v7090_v27, 0.0  ;;  %v7098_v40 = vpop.eup %6371 }
 0x27e   :  { %v6249_v36 = vunpack.i.l.bf16 %v6248_v35  ;;  %942 = vadd.xlane.f32.xlu0 %v941_v20  ;;  %v6250_v39 = vunpack.i.h.bf16 %v6248_v35  ;;  %v956_v55 = vsel %vm495_vm0, %v7098_v40, 0.0  ;;  %v7104_v44 = vpop.eup %6373 }
 0x27f   :  { %6252 = vrot.lane.b32.xlu1 %v6251_v6, %s6731_s1  ;;  %v959_v10 = vsel %vm495_vm0, %v7104_v44, 0.0  ;;  %v7109_v46 = vpop.eup %6375 }
 0x280   :  { %1055 = vmatpush.msra.mxu1 %v6249_v36  ;;  %v7111_v42 = vpop.eup %6377  ;;  %v947_v47 = vsel %vm495_vm0, %v7109_v46, 0.0 }
 0x281   :  { %v932_v49 = vsel %vm495_vm0, %v7111_v42, 0.0  ;;  %v7119_v50 = vpop.eup %6379 }
 0x282   :  { %1056 = vmatpush.msra.mxu1 %v6250_v39  ;;  %v938_v51 = vsel %vm495_vm0, %v7119_v50, 0.0  ;;  %v7123_v53 = vpop.eup %6381 }
 0x283   :  { %v944_v33 = vsel %vm495_vm0, %v7123_v53, 0.0 }
 0x286   :  { %957 = vadd.xlane.f32.xlu0 %v956_v55 }
 0x28e   :  { %960 = vadd.xlane.f32.xlu0 %v959_v10 }
 0x296   :  { %948 = vadd.xlane.f32.xlu0 %v947_v47 }
 0x297   :  { %933 = vadd.xlane.f32.xlu2 %v932_v49 }
 0x29f   :  { %939 = vadd.xlane.f32.xlu2 %v938_v51 }
 0x2a9   :  { %945 = vadd.xlane.f32.xlu1 %v944_v33 }
 0x2b2   :  { %v916_v45 = vpop.xlane.xlu1 %915 }
 0x2b3   :  { %6383 = vrcp.f32 %v916_v45 }
 0x2b7   :  { %6262 = vrot.lane.b32.xlu2 %v6261_v32, %s6731_s1 }
 0x2b9   :  { %v6384_v58 = vpop.eup %6383 }
 0x2ba   :  { %v978_v61 = vmul.f32 %v6384_v58, %v7052_v38  ;;  %v919_v62 = vpop.xlane.xlu1 %918 }
 0x2bb   :  { %6385 = vrcp.f32 %v919_v62 }
 0x2bc   :  { %5257 = vmatmul.msk.f32.vlgmr.msra.gmra.mxu0 %vm495_vm0, %v978_v61  ;;  %v5963_v61 = vld [vmem:[#allocation7] sm:$0xff] }
 0x2c1   :  { %v6386_v5 = vpop.eup %6385 }
 0x2c2   :  { %v979_v8 = vmul.f32 %v6386_v5, %v7057_v19  ;;  %v878_v19 = vsub.f32 %v7014_v54, %v7083_v16  ;;  %v908_v16 = vmul.f32 1.442695, %v879_v2  ;;  %v5964_v2 = vld [vmem:[#allocation7 + $0x8] sm:$0xff] }
 0x2c4   :  { %5258 = vmatmul.msk.f32.gmra.mxu0 %vm495_vm0, %v979_v8  ;;  %v906_v59 = vmul.f32 1.442695, %v878_v19 }
 0x2c9   :  { %v922_v15 = vpop.xlane.xlu2 %921 }
 0x2ca   :  { %6387 = vrcp.f32 %v922_v15 }
 0x2d0   :  { %v6388_v25 = vpop.eup %6387 }
 0x2d1   :  { %v980_v17 = vmul.f32 %v6388_v25, %v7062_v48  ;;  %v6258_v21 = vpop.permute.xlu2 %6257  ;;  %v925_v38 = vpop.xlane.xlu1 %924 }
 0x2d2   :  { %v6259_v28 = vunpack.i.l.bf16 %v6258_v21  ;;  %6389 = vrcp.f32 %v925_v38  ;;  %v6260_v30 = vunpack.i.h.bf16 %v6258_v21 }
 0x2d3   :  { %5259 = vmatmul.msk.f32.vlgmr.msra.gmra.mxu1 %vm495_vm0, %v980_v17  ;;  %6391 = vpow2.f32 %v892_v23 }
 0x2d4   :  { %1265 = vmatpush.msrb.mxu3 %v6259_v28 }
 0x2d6   :  { %1266 = vmatpush.msrb.mxu3 %v6260_v30 }
 0x2d8   :  { %v6390_v1 = vpop.eup %6389 }
 0x2d9   :  { %v928_v31 = vpop.xlane.xlu1 %927  ;;  %v981_v52 = vmul.f32 %v6390_v1, %v7067_v56  ;;  %v7142_v48 = vpop.eup %6391 }
 0x2da   :  { %6393 = vrcp.f32 %v928_v31  ;;  %v929_v34 = vsel %vm495_vm0, %v7142_v48, 0.0 }
 0x2db   :  { %5260 = vmatmul.msk.f32.gmra.mxu1 %vm495_vm0, %v981_v52  ;;  %6395 = vpow2.f32 %v906_v59 }
 0x2dc   :  { %6397 = vpow2.f32 %v908_v16 }
 0x2e0   :  { %v6394_v35 = vpop.eup %6393  ;;  %930 = vadd.xlane.f32.xlu2 %v929_v34 }
 0x2e1   :  { %v982_v54 = vmul.f32 %v6394_v35, %v7075_v60  ;;  %v7149_v56 = vpop.eup %6395 }
 0x2e2   :  { %v950_v20 = vsel %vm495_vm0, %v7149_v56, 0.0  ;;  %v7153_v6 = vpop.eup %6397 }
 0x2e3   :  { %5261 = vmatmul.msk.f32.vlgmr.msra.gmra.mxu2 %vm495_vm0, %v982_v54  ;;  %v953_v26 = vsel %vm495_vm0, %v7153_v6, 0.0 }
 0x2e8   :  { %951 = vadd.xlane.f32.xlu2 %v950_v20 }
 0x2e9   :  { %v937_v60 = vpop.xlane.xlu0 %936 }
 0x2f0   :  { %954 = vadd.xlane.f32.xlu2 %v953_v26 }
 0x2f1   :  { %v6253_v36 = vpop.permute.xlu1 %6252  ;;  %v943_v3 = vpop.xlane.xlu0 %942 }
 0x2f2   :  { %v6254_v37 = vunpack.i.l.bf16 %v6253_v36  ;;  %v6255_v39 = vunpack.i.h.bf16 %v6253_v36 }
 0x2f4   :  { %1230 = vmatpush.msrb.mxu2 %v6254_v37  ;;  %v5966_v37 = vld [vmem:[#allocation7 + $0x18] sm:$0xff] }
 0x2f6   :  { %1231 = vmatpush.msrb.mxu2 %v6255_v39  ;;  %v5970_v39 = vld [vmem:[#allocation7 + $0x38] sm:$0xff] }
 0x2f9   :  { %v958_v10 = vpop.xlane.xlu0 %957 }
 0x301   :  { %v961_v22 = vpop.xlane.xlu0 %960 }
 0x308   :  { %6267 = vrot.lane.b32.xlu2 %v6266_v41, %s6731_s1 }
 0x309   :  { %v949_v19 = vpop.xlane.xlu0 %948 }
 0x30a   :  { %v934_v55 = vpop.xlane.xlu2 %933 }
 0x30b   :  { %6399 = vrcp.f32 %v934_v55 }
 0x30c   :  { %6401 = vrcp.f32 %v937_v60 }
 0x311   :  { %v6400_v9 = vpop.eup %6399 }
 0x312   :  { %v984_v13 = vmul.f32 %v6400_v9, %v7111_v42  ;;  %v940_v4 = vpop.xlane.xlu2 %939  ;;  %v6402_v57 = vpop.eup %6401 }
 0x313   :  { %6403 = vrcp.f32 %v940_v4  ;;  %v985_v49 = vmul.f32 %v6402_v57, %v7085_v24 }
 0x314   :  { %5263 = vmatmul.msk.f32.vlgmr.msra.gmra.mxu3 %vm495_vm0, %v984_v13  ;;  %6405 = vrcp.f32 %v958_v10 }
 0x315   :  { %6407 = vrcp.f32 %v943_v3  ;;  %1411 = vmatpush.bf16.msra.mxu3 %v5966_v37 }
 0x316   :  { %6409 = vrcp.f32 %v961_v22 }
 0x319   :  { %v6404_v18 = vpop.eup %6403 }
 0x31a   :  { %v6263_v47 = vpop.permute.xlu2 %6262  ;;  %v986_v42 = vmul.f32 %v6404_v18, %v7119_v50  ;;  %v6406_v51 = vpop.eup %6405 }
 0x31b   :  { %v6264_v29 = vunpack.i.l.bf16 %v6263_v47  ;;  %v6265_v43 = vunpack.i.h.bf16 %v6263_v47  ;;  %v992_v33 = vmul.f32 %v6406_v51, %v7098_v40  ;;  %v6408_v32 = vpop.eup %6407 }
 0x31c   :  { %5264 = vmatmul.msk.f32.gmra.mxu3 %vm495_vm0, %v985_v49  ;;  %v987_v24 = vmul.f32 %v6408_v32, %v7090_v27  ;;  %v6410_v45 = vpop.eup %6409  ;;  %v946_v21 = vpop.xlane.xlu1 %945 }
 0x31d   :  { %1160 = vmatpush.msrb.mxu0 %v6264_v29  ;;  %v993_v58 = vmul.f32 %v6410_v45, %v7104_v44  ;;  %v5965_v45 = vld [vmem:[#allocation7 + $0x10] sm:$0xff] }
 0x31e   :  { %1383 = vmatpush.bf16.msra.mxu2 %v5965_v45 }
 0x31f   :  { %1161 = vmatpush.msrb.mxu0 %v6265_v43 }
 0x320   :  { %5265 = vmatmul.msk.f32.vlgmr.msrb.gmra.mxu0 %vm495_vm0, %v986_v42 }
 0x321   :  { %1327 = vmatpush.bf16.msra.mxu0 %v5963_v61 }
 0x324   :  { %5271 = vmatmul.msk.f32.vlgmr.msrb.gmra.mxu3 %vm495_vm0, %v992_v33 }
 0x325   :  { %1523 = vmatpush.bf16.msrb.mxu3 %v5970_v39 }
 0x328   :  { %5266 = vmatmul.msk.f32.gmra.mxu0 %vm495_vm0, %v987_v24 }
 0x32c   :  { %5272 = vmatmul.msk.f32.gmra.mxu3 %vm495_vm0, %v993_v58  ;;  %v5969_v58 = vld [vmem:[#allocation7 + $0x30] sm:$0xff] }
 0x339   :  { %v1023_v50 = vpop.f32.mrf.mxu0 }
 0x33a   :  { %v1274_v62 = vpack.c.bf16 %v1023_v50, %v1023_v50  ;;  %v5968_v50 = vld [vmem:[#allocation7 + $0x28] sm:$0xff] }
 0x33c   :  { %v1308_v8 = vunpack.c.l.b16 %v1274_v62 }
 0x341   :  { %v1026_v63 = vpop.f32.mrf.mxu0 }
 0x342   :  { %v1275_v5 = vpack.c.bf16 %v1026_v63, %v1026_v63 }
 0x344   :  { %v1309_v40 = vunpack.c.l.b16 %v1275_v5 }
 0x346   :  { %v1310_v15 = vpack.c.b16 %v1309_v40, %v1308_v8 }
 0x348   :  { %5277 = vmatmul.msk.bf16.vlgmr.msra.gmra.mxu0 %vm495_vm0, %v1310_v15 }
 0x350   :  { %v1058_v30 = vpop.f32.mrf.mxu1 }
 0x351   :  { %v1276_v20 = vpack.c.bf16 %v1058_v30, %v1058_v30 }
 0x353   :  { %v931_v14 = vpop.xlane.xlu2 %930  ;;  %v1336_v26 = vunpack.c.l.b16 %v1276_v20 }
 0x354   :  { %6411 = vrcp.f32 %v931_v14 }
 0x358   :  { %v1061_v54 = vpop.f32.mrf.mxu1 }
 0x359   :  { %v1277_v16 = vpack.c.bf16 %v1061_v54, %v1061_v54 }
 0x35a   :  { %v6412_v27 = vpop.eup %6411 }
 0x35b   :  { %v952_v25 = vpop.xlane.xlu2 %951  ;;  %v983_v17 = vmul.f32 %v6412_v27, %v7142_v48 }
 0x35c   :  { %6413 = vrcp.f32 %v952_v25 }
 0x35d   :  { %5262 = vmatmul.msk.f32.gmra.mxu2 %vm495_vm0, %v983_v17 }
 0x362   :  { %v6414_v44 = vpop.eup %6413 }
 0x363   :  { %v990_v38 = vmul.f32 %v6414_v44, %v7149_v56  ;;  %v955_v23 = vpop.xlane.xlu2 %954 }
 0x364   :  { %6415 = vrcp.f32 %v955_v23 }
 0x365   :  { %5269 = vmatmul.msk.f32.vlgmr.msrb.gmra.mxu2 %vm495_vm0, %v990_v38  ;;  %6417 = vrcp.f32 %v946_v21 }
 0x366   :  { %6419 = vrcp.f32 %v949_v19  ;;  %1495 = vmatpush.bf16.msrb.mxu2 %v5969_v58  ;;  %v1093_v61 = vpop.f32.mrf.mxu2 }
 0x367   :  { %v1278_v62 = vpack.c.bf16 %v1093_v61, %v1093_v61 }
 0x369   :  { %v1364_v8 = vunpack.c.l.b16 %v1278_v62 }
 0x36a   :  { %v6416_v28 = vpop.eup %6415 }
 0x36b   :  { %v6268_v1 = vpop.permute.xlu2 %6267  ;;  %v991_v31 = vmul.f32 %v6416_v28, %v7153_v6  ;;  %v6418_v52 = vpop.eup %6417  ;;  %v1337_v6 = vunpack.c.l.b16 %v1277_v16 }
 0x36c   :  { %v6269_v59 = vunpack.i.l.bf16 %v6268_v1  ;;  %v6270_v48 = vunpack.i.h.bf16 %v6268_v1  ;;  %v988_v34 = vmul.f32 %v6418_v52, %v7123_v53  ;;  %v6420_v35 = vpop.eup %6419  ;;  %v5967_v53 = vld [vmem:[#allocation7 + $0x20] sm:$0xff] }
 0x36d   :  { %5270 = vmatmul.msk.f32.gmra.mxu2 %vm495_vm0, %v991_v31  ;;  %v989_v56 = vmul.f32 %v6420_v35, %v7109_v46  ;;  %v1338_v36 = vpack.c.b16 %v1337_v6, %v1336_v26  ;;  %1439 = vmatpush.bf16.msrb.mxu0 %v5967_v53 }
 0x36e   :  { %1195 = vmatpush.msrb.mxu1 %v6269_v59 }
 0x370   :  { %1196 = vmatpush.msrb.mxu1 %v6270_v48 }
 0x371   :  { %5267 = vmatmul.msk.f32.vlgmr.msrb.gmra.mxu1 %vm495_vm0, %v988_v34 }
 0x372   :  { %1355 = vmatpush.bf16.msra.mxu1 %v5964_v2 }
 0x376   :  { %1467 = vmatpush.bf16.msrb.mxu1 %v5968_v50 }
 0x379   :  { %5268 = vmatmul.msk.f32.gmra.mxu1 %vm495_vm0, %v989_v56 }
 0x381   :  { %5282 = vmatmul.msk.bf16.vlgmr.msra.gmra.mxu1 %vm495_vm0, %v1338_v36 }
 0x397   :  { %v1128_v60 = vpop.f32.mrf.mxu3 }
 0x398   :  { %v1280_v3 = vpack.c.bf16 %v1128_v60, %v1128_v60 }
 0x39a   :  { %v1392_v46 = vunpack.c.l.b16 %v1280_v3 }
 0x39d   :  { %v1163_v41 = vpop.f32.mrf.mxu0 }
 0x39e   :  { %v1282_v4 = vpack.c.bf16 %v1163_v41, %v1163_v41 }
 0x39f   :  { %v1131_v55 = vpop.f32.mrf.mxu3 }
 0x3a0   :  { %v1281_v9 = vpack.c.bf16 %v1131_v55, %v1131_v55  ;;  %v1420_v18 = vunpack.c.l.b16 %v1282_v4 }
 0x3a2   :  { %v1393_v13 = vunpack.c.l.b16 %v1281_v9 }
 0x3a4   :  { %v1394_v10 = vpack.c.b16 %v1393_v13, %v1392_v46  ;;  %v6351_v13 = vld [vmem:[%s7969_s5] ss:$0 sm:$0xff] }
 0x3a5   :  { %v1166_v57 = vpop.f32.mrf.mxu0 }
 0x3a6   :  { %v1283_v47 = vpack.c.bf16 %v1166_v57, %v1166_v57  ;;  %5292 = vmatmul.msk.bf16.vlgmr.msra.gmra.mxu3 %vm495_vm0, %v1394_v10 }
 0x3a7   :  { %v1268_v49 = vpop.f32.mrf.mxu3 }
 0x3a8   :  { %v1421_v29 = vunpack.c.l.b16 %v1283_v47  ;;  %v1288_v22 = vpack.c.bf16 %v1268_v49, %v1268_v49 }
 0x3aa   :  { %v1422_v43 = vpack.c.b16 %v1421_v29, %v1420_v18  ;;  %v1504_v33 = vunpack.c.l.b16 %v1288_v22 }
 0x3ac   :  { %5297 = vmatmul.msk.bf16.vlgmr.msrb.gmra.mxu0 %vm495_vm0, %v1422_v43 }
 0x3af   :  { %v1271_v42 = vpop.f32.mrf.mxu3 }
 0x3b0   :  { %v1289_v51 = vpack.c.bf16 %v1271_v42, %v1271_v42 }
 0x3b2   :  { %v1505_v32 = vunpack.c.l.b16 %v1289_v51 }
 0x3b4   :  { %v1506_v24 = vpack.c.b16 %v1505_v32, %v1504_v33 }
 0x3b6   :  { %5312 = vmatmul.msk.bf16.vlgmr.msrb.gmra.mxu3 %vm495_vm0, %v1506_v24  ;;  %v6733_v24 = vmov 128.0  }
 0x3b7   :  { %6421 = vrcp.f32 %v6733_v24 }
 0x3bd   :  { %v6422_v45 = vpop.eup %6421 }
 0x3be   :  { %v1557_v58 = vmul.f32 128.0, %v6422_v45  ;;  %vm1561_vm3 = vweird.f32 %v6422_v45 }
 0x3c0   :  { %v1558_v61 = vsub.f32 1.0, %v1557_v58 }
 0x3c2   :  { %v1559_v50 = vmul.f32 %v6422_v45, %v1558_v61 }
 0x3c4   :  { %v1560_v62 = vadd.f32 %v6422_v45, %v1559_v50 }
 0x3c5   :  { %v1329_v59 = vpop.f32.mrf.mxu0 }
 0x3cd   :  { %v1331_v35 = vpop.f32.mrf.mxu0 }
 0x3e0   :  { %v1096_v63 = vpop.f32.mrf.mxu2 }
 0x3e1   :  { %v1279_v5 = vpack.c.bf16 %v1096_v63, %v1096_v63  ;;  %v7195_v63 = vsel %vm1561_vm3, %v6422_v45, %v1560_v62 }
 0x3e3   :  { %v1365_v40 = vunpack.c.l.b16 %v1279_v5 }
 0x3e5   :  { %v1366_v15 = vpack.c.b16 %v1365_v40, %v1364_v8 }
 0x3e7   :  { %5287 = vmatmul.msk.bf16.vlgmr.msra.gmra.mxu2 %vm495_vm0, %v1366_v15 }
 0x3e8   :  { %v1233_v14 = vpop.f32.mrf.mxu2 }
 0x3e9   :  { %v1286_v25 = vpack.c.bf16 %v1233_v14, %v1233_v14 }
 0x3eb   :  { %v1476_v21 = vunpack.c.l.b16 %v1286_v25  ;;  %v5973_v25 = vld [vmem:[#allocation2 + $0xd0] sm:$0xff] }
 0x3ec   :  { %1716 = vmatpush.bf16.xpose.msra.mxu0 %v5973_v25 }
 0x3ee   :  { %v1198_v27 = vpop.f32.mrf.mxu1 }
 0x3ef   :  { %v1284_v23 = vpack.c.bf16 %v1198_v27, %v1198_v27 }
 0x3f0   :  { %v1236_v17 = vpop.f32.mrf.mxu2 }
 0x3f1   :  { %v1287_v44 = vpack.c.bf16 %v1236_v17, %v1236_v17  ;;  %v1448_v1 = vunpack.c.l.b16 %v1284_v23  ;;  %v5976_v17 = vld [vmem:[#allocation2 + $0xe8] sm:$0xff]  ;;  %v5975_v23 = vld [vmem:[#allocation2 + $0xe0] sm:$0xff] }
 0x3f2   :  { %1748 = vmatpush.bf16.xpose.msra.mxu1 %v5976_v17 }
 0x3f3   :  { %v1477_v38 = vunpack.c.l.b16 %v1287_v44  ;;  %v5979_v44 = vld [vmem:[#allocation2 + $0x100] sm:$0xff] }
 0x3f4   :  { %1780 = vmatpush.bf16.xpose.msra.mxu2 %v5979_v44 }
 0x3f5   :  { %v1478_v28 = vpack.c.b16 %v1477_v38, %v1476_v21  ;;  %v5982_v21 = vld [vmem:[#allocation2 + $0x118] sm:$0xff]  ;;  %v5972_v38 = vld [vmem:[#allocation2 + $0xc8] sm:$0xff] }
 0x3f6   :  { %v1201_v30 = vpop.f32.mrf.mxu1  ;;  %1812 = vmatpush.bf16.xpose.msra.mxu3 %v5982_v21  ;;  %1717 = vmatpush.bf16.xpose.msra.mxu0 %v5972_v38 }
 0x3f7   :  { %v1285_v19 = vpack.c.bf16 %v1201_v30, %v1201_v30  ;;  %5307 = vmatmul.msk.bf16.vlgmr.msrb.gmra.mxu2 %vm495_vm0, %v1478_v28  ;;  %v5978_v28 = vld [vmem:[#allocation2 + $0xf8] sm:$0xff]  ;;  %v5981_v30 = vld [vmem:[#allocation2 + $0x110] sm:$0xff] }
 0x3f9   :  { %v1449_v31 = vunpack.c.l.b16 %v1285_v19 }
 0x3fa   :  { %1749 = vmatpush.bf16.xpose.msra.mxu1 %v5975_v23 }
 0x3fb   :  { %v1450_v52 = vpack.c.b16 %v1449_v31, %v1448_v1 }
 0x3fc   :  { %1781 = vmatpush.bf16.xpose.msra.mxu2 %v5978_v28 }
 0x3fd   :  { %5302 = vmatmul.msk.bf16.vlgmr.msrb.gmra.mxu1 %vm495_vm0, %v1450_v52  ;;  %v5971_v52 = vld [vmem:[#allocation2 + $0xc0] sm:$0xff] }
 0x3fe   :  { %v1357_v48 = vpop.f32.mrf.mxu1  ;;  %1813 = vmatpush.bf16.xpose.msra.mxu3 %v5981_v30  ;;  %1718 = vmatpush.bf16.xpose.msra.mxu0 %v5971_v52 }
 0x3ff   :  { %v1530_v54 = vadd.f32 %v1357_v48, %v1329_v59  ;;  %v5974_v59 = vld [vmem:[#allocation2 + $0xd8] sm:$0xff]  ;;  %v5977_v48 = vld [vmem:[#allocation2 + $0xf0] sm:$0xff] }
 0x402   :  { %1750 = vmatpush.bf16.xpose.msra.mxu1 %v5974_v59 }
 0x404   :  { %1782 = vmatpush.bf16.xpose.msra.mxu2 %v5977_v48 }
 0x406   :  { %v1359_v16 = vpop.f32.mrf.mxu1 }
 0x407   :  { %v1537_v37 = vadd.f32 %v1359_v16, %v1331_v35  ;;  %v5988_v35 = vld [vmem:[#allocation2 + $0x148] sm:$0xff]  ;;  %v5994_v16 = vld [vmem:[#allocation2 + $0x178] sm:$0xff] }
 0x40a   :  { %1876 = vmatpush.bf16.xpose.msrb.mxu1 %v5988_v35  ;;  %v6208_v35 = vld [vmem:[#allocation5 + $0x78] sm:$0xff]  }
 0x429   :  { %v1413_v2 = vpop.f32.mrf.mxu3  ;;  %v1441_v36 = vpop.f32.mrf.mxu0 }
 0x431   :  { %v1415_v20 = vpop.f32.mrf.mxu3  ;;  %v1443_v10 = vpop.f32.mrf.mxu0 }
 0x439   :  { %v1525_v55 = vpop.f32.mrf.mxu3 }
 0x441   :  { %v1527_v42 = vpop.f32.mrf.mxu3 }
 0x46a   :  { %v1385_v34 = vpop.f32.mrf.mxu2 }
 0x46b   :  { %v1531_v56 = vadd.f32 %v1530_v54, %v1385_v34  ;;  %v5985_v34 = vld [vmem:[#allocation2 + $0x130] sm:$0xff]  ;;  %v5991_v54 = vld [vmem:[#allocation2 + $0x160] sm:$0xff] }
 0x46c   :  { %1844 = vmatpush.bf16.xpose.msrb.mxu0 %v5985_v34  ;;  %1908 = vmatpush.bf16.xpose.msrb.mxu2 %v5991_v54  ;;  %v6202_v54 = vld [vmem:[#allocation5 + $0x48] sm:$0xff]  }
 0x46d   :  { %v1532_v26 = vadd.f32 %v1531_v56, %v1413_v2  ;;  %v5980_v2 = vld [vmem:[#allocation2 + $0x108] sm:$0xff] }
 0x46e   :  { %1814 = vmatpush.bf16.xpose.msra.mxu3 %v5980_v2 }
 0x46f   :  { %v1533_v39 = vadd.f32 %v1532_v26, %v1441_v36 }
 0x472   :  { %v1387_v6 = vpop.f32.mrf.mxu2 }
 0x473   :  { %v1538_v53 = vadd.f32 %v1537_v37, %v1387_v6  ;;  %v5984_v37 = vld [vmem:[#allocation2 + $0x128] sm:$0xff] }
 0x474   :  { %1845 = vmatpush.bf16.xpose.msrb.mxu0 %v5984_v37 }
 0x475   :  { %v1539_v9 = vadd.f32 %v1538_v53, %v1415_v20  ;;  %v5987_v53 = vld [vmem:[#allocation2 + $0x140] sm:$0xff] }
 0x476   :  { %1940 = vmatpush.bf16.xpose.msrb.mxu3 %v5994_v16  ;;  %1877 = vmatpush.bf16.xpose.msrb.mxu1 %v5987_v53  ;;  %v6138_v16 = vunpack.c.h.bf16 %v6202_v54  ;;  %v6205_v53 = vld [vmem:[#allocation5 + $0x60] sm:$0xff]  }
 0x477   :  { %v1540_v57 = vadd.f32 %v1539_v9, %v1443_v10 }
 0x47a   :  { %v1469_v60 = vpop.f32.mrf.mxu1  ;;  %v1497_v41 = vpop.f32.mrf.mxu2 }
 0x47b   :  { %v1534_v3 = vadd.f32 %v1533_v39, %v1469_v60  ;;  %v5990_v39 = vld [vmem:[#allocation2 + $0x158] sm:$0xff]  ;;  %v5993_v60 = vld [vmem:[#allocation2 + $0x170] sm:$0xff] }
 0x47c   :  { %1909 = vmatpush.bf16.xpose.msrb.mxu2 %v5990_v39  ;;  %v6207_v39 = vld [vmem:[#allocation5 + $0x70] sm:$0xff]  }
 0x47d   :  { %v1535_v46 = vadd.f32 %v1534_v3, %v1497_v41 }
 0x47e   :  { %1941 = vmatpush.bf16.xpose.msrb.mxu3 %v5993_v60  ;;  %v6149_v60 = vunpack.c.l.bf16 %v6205_v53 }
 0x47f   :  { %v1536_v4 = vadd.f32 %v1535_v46, %v1525_v55  ;;  %v5983_v46 = vld [vmem:[#allocation2 + $0x120] sm:$0xff] }
 0x480   :  { %1846 = vmatpush.bf16.xpose.msrb.mxu0 %v5983_v46 }
 0x481   :  { %v1548_v47 = vadd.f32 %v6351_v13, %v1536_v4 }
 0x482   :  { %v1471_v49 = vpop.f32.mrf.mxu1  ;;  %v1499_v43 = vpop.f32.mrf.mxu2 }
 0x483   :  { %v1541_v18 = vadd.f32 %v1540_v57, %v1471_v49  ;;  %v1550_v29 = vadd.f32 %v1548_v47, %v6837_v11  ;;  %v5989_v57 = vld [vmem:[#allocation2 + $0x150] sm:$0xff]  ;;  %v5992_v47 = vld [vmem:[#allocation2 + $0x168] sm:$0xff] }
 0x484   :  { %1910 = vmatpush.bf16.xpose.msrb.mxu2 %v5989_v57  ;;  %v6137_v57 = vunpack.c.l.bf16 %v6202_v54 }
 0x485   :  { %v1542_v22 = vadd.f32 %v1541_v18, %v1499_v43  ;;  %1552 = vadd.xlane.f32.xlu2 %v1550_v29 }
 0x486   :  { %1942 = vmatpush.bf16.xpose.msrb.mxu3 %v5992_v47 }
 0x487   :  { %v1543_v51 = vadd.f32 %v1542_v22, %v1527_v42 }
 0x489   :  { %v1549_v33 = vadd.f32 %v6351_v13, %v1543_v51  ;;  %v5986_v13 = vld [vmem:[#allocation2 + $0x138] sm:$0xff]  ;;  %v6353_v51 = vld [vmem:[%s7971_s7] ss:$0 sm:$0xff] }
 0x48a   :  { %1878 = vmatpush.bf16.xpose.msrb.mxu1 %v5986_v13 }
 0x48b   :  { %v1551_v32 = vadd.f32 %v1549_v33, %v6839_v12 }
 0x48d   :  { %1554 = vadd.xlane.f32.xlu0 %v1551_v32 }
 0x4f8   :  { %v1553_v11 = vpop.xlane.xlu2 %1552 }
 0x4f9   :  { %v1563_v5 = vmul.f32 %v7195_v63, %v1553_v11 }
 0x4fb   :  { %v7198_v8 = vsub.f32 %v1550_v29, %v1563_v5  ;;  %v6352_v29 = vld [vmem:[%s7970_s6] ss:$0 sm:$0xff] }
 0x4fd   :  { %v1567_v40 = vmul.f32 %v7198_v8, %v7198_v8 }
 0x4ff   :  { %1569 = vadd.xlane.f32.xlu1 %v1567_v40 }
 0x500   :  { %v1555_v12 = vpop.xlane.xlu0 %1554 }
 0x501   :  { %v1564_v15 = vmul.f32 %v7195_v63, %v1555_v12 }
 0x503   :  { %v7203_v14 = vsub.f32 %v1551_v32, %v1564_v15  ;;  %v6203_v15 = vld [vmem:[#allocation5 + $0x50] sm:$0xff]  }
 0x504   :  { %v6141_v25 = vunpack.c.l.bf16 %v6203_v15 }
 0x505   :  { %v1568_v27 = vmul.f32 %v7203_v14, %v7203_v14 }
 0x507   :  { %1571 = vadd.xlane.f32.xlu0 %v1568_v27  ;;  %v6132_v27 = vld [vmem:[#allocation5 + $0x40] sm:$0xff]  }
 0x508   :  { %v6134_v44 = vunpack.c.h.bf16 %v6132_v27 }
 0x572   :  { %v1570_v19 = vpop.xlane.xlu1 %1569 }
 0x573   :  { %v1573_v1 = vmul.f32 %v1570_v19, %v7195_v63 }
 0x575   :  { %v1575_v31 = vadd.f32 1e-05, %v1573_v1 }
 0x577   :  { %6423 = vrsqrt.f32 %v1575_v31  ;;  %vm1583_vm5 = vweird.f32 %v1575_v31 }
 0x57a   :  { %v1572_v56 = vpop.xlane.xlu0 %1571 }
 0x57b   :  { %v1574_v20 = vmul.f32 %v1572_v56, %v7195_v63  ;;  %v6161_v56 = vunpack.c.l.bf16 %v6208_v35 }
 0x57d   :  { %v6424_v6 = vpop.eup %6423  ;;  %v1576_v26 = vadd.f32 1e-05, %v1574_v20 }
 0x57e   :  { %v1578_v36 = vmul.f32 %v6424_v6, %v1575_v31  ;;  %vm1584_vm4 = vweird.f32 %v6424_v6  ;;  %v6142_v31 = vunpack.c.h.bf16 %v6203_v15 }
 0x57f   :  { %6425 = vrsqrt.f32 %v1576_v26  ;;  %vm1585_vm6 = vmor %vm1583_vm5, %vm1584_vm4  ;;  %vm1593_vm8 = vweird.f32 %v1576_v26 }
 0x580   :  { %v1579_v41 = vmul.f32 %v6424_v6, %v1578_v36 }
 0x582   :  { %v1580_v3 = vmul.f32 0.5, %v1579_v41  ;;  %v6158_v41 = vunpack.c.h.bf16 %v6207_v39 }
 0x584   :  { %v1581_v55 = vsub.f32 1.5, %v1580_v3  ;;  %v6133_v3 = vunpack.c.l.bf16 %v6132_v27 }
 0x585   :  { %v6426_v9 = vpop.eup %6425 }
 0x586   :  { %v1582_v4 = vmul.f32 %v6424_v6, %v1581_v55  ;;  %v1588_v10 = vmul.f32 %v6426_v9, %v1576_v26  ;;  %vm1594_vm7 = vweird.f32 %v6426_v9 }
 0x587   :  { %vm1595_vm9 = vmor %vm1593_vm8, %vm1594_vm7  ;;  %vm4532_vm7 = vcmask 1040384  }
 0x588   :  { %v1586_v49 = vsel %vm1585_vm6, %v6424_v6, %v1582_v4  ;;  %v1589_v18 = vmul.f32 %v6426_v9, %v1588_v10  ;;  %v6162_v10 = vunpack.c.h.bf16 %v6208_v35 }
 0x589   :  { %v1597_v43 = vmul.f32 %v1586_v49, %v7198_v8 }
 0x58a   :  { %v1590_v22 = vmul.f32 0.5, %v1589_v18 }
 0x58b   :  { %v1599_v33 = vmul.f32 %v6352_v29, %v1597_v43 }
 0x58c   :  { %v1591_v42 = vsub.f32 1.5, %v1590_v22  ;;  %v6157_v22 = vunpack.c.l.bf16 %v6207_v39 }
 0x58d   :  { %v7216_v45 = vadd.f32 %v6353_v51, %v1599_v33 }
 0x58e   :  { %v1592_v32 = vmul.f32 %v6426_v9, %v1591_v42  ;;  %v6150_v42 = vunpack.c.h.bf16 %v6205_v53 }
 0x58f   :  { %v1603_v50 = vpack.c.bf16 %v7216_v45, %v7216_v45 }
 0x590   :  { %v1596_v24 = vsel %vm1595_vm9, %v6426_v9, %v1592_v32 }
 0x591   :  { %v1598_v58 = vmul.f32 %v1596_v24, %v7203_v14  ;;  %v1689_v5 = vunpack.c.l.b16 %v1603_v50  ;;  %v6204_v14 = vld [vmem:[#allocation5 + $0x58] sm:$0xff]   ;;  %v6206_v24 = vld [vmem:[#allocation5 + $0x68] sm:$0xff]  }
 0x592   :  { %v6145_v17 = vunpack.c.l.bf16 %v6204_v14  ;;  %v6146_v52 = vunpack.c.h.bf16 %v6204_v14 }
 0x593   :  { %v1600_v61 = vmul.f32 %v6352_v29, %v1598_v58  ;;  %v6154_v58 = vunpack.c.h.bf16 %v6206_v24 }
 0x595   :  { %v7221_v62 = vadd.f32 %v6353_v51, %v1600_v61  ;;  %v6153_v61 = vunpack.c.l.bf16 %v6206_v24 }
 0x597   :  { %v1604_v11 = vpack.c.bf16 %v7221_v62, %v7221_v62 }
 0x599   :  { %v1690_v8 = vunpack.c.l.b16 %v1604_v11 }
 0x59b   :  { %v1691_v40 = vpack.c.b16 %v1690_v8, %v1689_v5 }
 0x59d   :  { %1719 = vmatmul.bf16.vlgmr.msra.gmra.mxu0 %v1691_v40  ;;  %1751 = vmatmul.bf16.vlgmr.msra.gmra.mxu1 %v1691_v40 }
 0x59e   :  { %1783 = vmatmul.bf16.vlgmr.msra.gmra.mxu2 %v1691_v40  ;;  %1815 = vmatmul.bf16.vlgmr.msra.gmra.mxu3 %v1691_v40 }
 0x5ad   :  { %1847 = vmatmul.bf16.vlgmr.msrb.gmra.mxu0 %v1691_v40  ;;  %1879 = vmatmul.bf16.vlgmr.msrb.gmra.mxu1 %v1691_v40 }
 0x5ae   :  { %1911 = vmatmul.bf16.vlgmr.msrb.gmra.mxu2 %v1691_v40  ;;  %1943 = vmatmul.bf16.vlgmr.msrb.gmra.mxu3 %v1691_v40 }
 0x61a   :  { %v1720_v12 = vpop.f32.mrf.mxu0  ;;  %v1752_v1 = vpop.f32.mrf.mxu1 }
 0x61b   :  { %v1721_v4 = vadd.f32 %v6133_v3, %v1720_v12  ;;  %v1753_v29 = vadd.f32 %v6137_v57, %v1752_v1 }
 0x621   :  { %v1784_v21 = vpop.f32.mrf.mxu2  ;;  %v1816_v38 = vpop.f32.mrf.mxu3 }
 0x622   :  { %v7225_v23 = vadd.f32 %v6141_v25, %v1784_v21  ;;  %v7227_v28 = vadd.f32 %v6145_v17, %v1816_v38  ;;  %v1722_v30 = vpop.f32.mrf.mxu0  ;;  %v1754_v20 = vpop.f32.mrf.mxu1 }
 0x623   :  { %v7229_v19 = vadd.f32 %v6134_v44, %v1722_v30  ;;  %v7245_v36 = vadd.f32 %v6138_v16, %v1754_v20 }
 0x624   :  { %2062 = vrot.lane.b32.xlu0 %v7227_v28, %s6730_s0  ;;  %2025 = vrot.lane.b32.xlu1 %v7225_v23, %s6730_s0 }
 0x625   :  { %1953 = vrot.lane.b32.xlu2 %v7229_v19, %s6730_s0  ;;  %v6281_v40 = vpack.i.bf16 %v1721_v4, %v7229_v19  ;;  %v6286_v12 = vpack.i.bf16 %v1753_v29, %v7245_v36 }
 0x629   :  { %v1786_v59 = vpop.f32.mrf.mxu2  ;;  %v1818_v48 = vpop.f32.mrf.mxu3 }
 0x62a   :  { %v7237_v2 = vadd.f32 %v6142_v31, %v1786_v59  ;;  %v7239_v34 = vadd.f32 %v6146_v52, %v1818_v48  ;;  %v1848_v55 = vpop.f32.mrf.mxu0  ;;  %v1880_v43 = vpop.f32.mrf.mxu1 }
 0x62b   :  { %v7253_v46 = vadd.f32 %v6149_v60, %v1848_v55  ;;  %v7280_v5 = vadd.f32 %v6153_v61, %v1880_v43 }
 0x62c   :  { %2064 = vrot.lane.b32.xlu0 %v7239_v34, %s6730_s0  ;;  %2027 = vrot.lane.b32.xlu1 %v7237_v2, %s6730_s0  ;;  %v6276_v18 = vpack.i.bf16 %v7227_v28, %v7239_v34  ;;  %v6271_v8 = vpack.i.bf16 %v7225_v23, %v7237_v2 }
 0x631   :  { %v1912_v6 = vpop.f32.mrf.mxu2  ;;  %v1944_v26 = vpop.f32.mrf.mxu3 }
 0x632   :  { %v7247_v37 = vadd.f32 %v6161_v56, %v1944_v26  ;;  %v1850_v51 = vpop.f32.mrf.mxu0  ;;  %v7270_v33 = vadd.f32 %v6157_v22, %v1912_v6  ;;  %v1882_v50 = vpop.f32.mrf.mxu1 }
 0x633   :  { %v7272_v32 = vadd.f32 %v6150_v42, %v1850_v51  ;;  %v7278_v11 = vadd.f32 %v6154_v58, %v1882_v50 }
 0x634   :  { %1990 = vrot.lane.b32.xlu1 %v7245_v36, %s6730_s0  ;;  %2210 = vrot.lane.b32.xlu2 %v7247_v37, %s6730_s0 }
 0x639   :  { %v1914_v9 = vpop.f32.mrf.mxu2  ;;  %v1946_v47 = vpop.f32.mrf.mxu3 }
 0x63a   :  { %v7255_v13 = vadd.f32 %v6158_v41, %v1914_v9  ;;  %v7262_v49 = vadd.f32 %v6162_v10, %v1946_v47 }
 0x63c   :  { %2175 = vrot.lane.b32.xlu0 %v7255_v13, %s6730_s0  ;;  %2099 = vrot.lane.b32.xlu2 %v7253_v46, %s6730_s0 }
 0x63d   :  { %1951 = vrot.lane.b32.xlu1 %v1721_v4, %s6730_s0 }
 0x644   :  { %2212 = vrot.lane.b32.xlu0 %v7262_v49, %s6730_s0  ;;  %6277 = vrot.lane.b32.xlu2 %v6276_v18, %s6731_s1 }
 0x645   :  { %1988 = vrot.lane.b32.xlu1 %v1753_v29, %s6730_s0 }
 0x64c   :  { %2173 = vrot.lane.b32.xlu0 %v7270_v33, %s6730_s0 }
 0x64d   :  { %2101 = vrot.lane.b32.xlu1 %v7272_v32, %s6730_s0 }
 0x654   :  { %2138 = vrot.lane.b32.xlu0 %v7278_v11, %s6730_s0 }
 0x655   :  { %2136 = vrot.lane.b32.xlu1 %v7280_v5, %s6730_s0 }
 0x65c   :  { %6272 = vrot.lane.b32.xlu0 %v6271_v8, %s6731_s1 }
 0x65d   :  { %6282 = vrot.lane.b32.xlu1 %v6281_v40, %s6731_s1 }
 0x664   :  { %6287 = vrot.lane.b32.xlu0 %v6286_v12, %s6731_s1 }
 0x67f   :  { %v1954_v15 = vpop.permute.xlu2 %1953 }
 0x680   :  { %5409 = vmatpush.xpose.msk.msra.mxu0 %vm495_vm0, %v1954_v15 }
 0x68e   :  { %v2211_v44 = vpop.permute.xlu2 %2210 }
 0x696   :  { %v2063_v14 = vpop.permute.xlu0 %2062  ;;  %v2026_v27 = vpop.permute.xlu1 %2025 }
 0x697   :  { %v2100_v38 = vpop.permute.xlu2 %2099 }
 0x69e   :  { %v2065_v25 = vpop.permute.xlu0 %2064  ;;  %v2028_v17 = vpop.permute.xlu1 %2027 }
 0x69f   :  { %5417 = vmatpush.xpose.msk.msra.mxu2 %vm495_vm0, %v2028_v17  ;;  %5421 = vmatpush.xpose.msk.msra.mxu3 %vm495_vm0, %v2065_v25  ;;  %v6278_v31 = vpop.permute.xlu2 %6277 }
 0x6a0   :  { %v6279_v52 = vunpack.i.l.bf16 %v6278_v31  ;;  %v6280_v59 = vunpack.i.h.bf16 %v6278_v31 }
 0x6a3   :  { %5418 = vmatpush.xpose.msk.msra.mxu2 %vm495_vm0, %v2026_v27  ;;  %5422 = vmatpush.xpose.msk.msra.mxu3 %vm495_vm0, %v2063_v14 }
 0x6a6   :  { %5419 = vmatmul.msk.f32.vlgmr.msra.gmra.mxu2 %vm495_vm0, %v7225_v23  ;;  %5423 = vmatmul.msk.f32.vlgmr.msra.gmra.mxu3 %vm495_vm0, %v7227_v28  ;;  %v1991_v21 = vpop.permute.xlu1 %1990 }
 0x6a7   :  { %5413 = vmatpush.xpose.msk.msra.mxu1 %vm495_vm0, %v1991_v21 }
 0x6ae   :  { %5424 = vmatmul.msk.f32.gmra.mxu3 %vm495_vm0, %v7239_v34  ;;  %v2176_v30 = vpop.permute.xlu0 %2175  ;;  %5420 = vmatmul.msk.f32.gmra.mxu2 %vm495_vm0, %v7237_v2 }
 0x6af   :  { %v1952_v1 = vpop.permute.xlu1 %1951  ;;  %5433 = vmatpush.xpose.msk.msrb.mxu2 %vm495_vm0, %v2176_v30 }
 0x6b0   :  { %5410 = vmatpush.xpose.msk.msra.mxu0 %vm495_vm0, %v1952_v1 }
 0x6b3   :  { %5411 = vmatmul.msk.f32.vlgmr.msra.gmra.mxu0 %vm495_vm0, %v1721_v4 }
 0x6b6   :  { %v2213_v23 = vpop.permute.xlu0 %2212 }
 0x6b7   :  { %v1989_v28 = vpop.permute.xlu1 %1988  ;;  %5437 = vmatpush.xpose.msk.msrb.mxu3 %vm495_vm0, %v2213_v23 }
 0x6b8   :  { %5414 = vmatpush.xpose.msk.msra.mxu1 %vm495_vm0, %v1989_v28 }
 0x6bb   :  { %5412 = vmatmul.msk.f32.gmra.mxu0 %vm495_vm0, %v7229_v19  ;;  %5415 = vmatmul.msk.f32.vlgmr.msra.gmra.mxu1 %vm495_vm0, %v1753_v29 }
 0x6bc   :  { %5438 = vmatpush.xpose.msk.msrb.mxu3 %vm495_vm0, %v2211_v44 }
 0x6be   :  { %v2174_v48 = vpop.permute.xlu0 %2173 }
 0x6bf   :  { %5439 = vmatmul.msk.f32.vlgmr.msrb.gmra.mxu3 %vm495_vm0, %v7247_v37  ;;  %v2102_v2 = vpop.permute.xlu1 %2101  ;;  %5434 = vmatpush.xpose.msk.msrb.mxu2 %vm495_vm0, %v2174_v48 }
 0x6c0   :  { %2584 = vmatpush.msra.mxu3 %v6279_v52  ;;  %5425 = vmatpush.xpose.msk.msrb.mxu0 %vm495_vm0, %v2102_v2 }
 0x6c2   :  { %2585 = vmatpush.msra.mxu3 %v6280_v59  ;;  %5435 = vmatmul.msk.f32.vlgmr.msrb.gmra.mxu2 %vm495_vm0, %v7270_v33 }
 0x6c3   :  { %5416 = vmatmul.msk.f32.gmra.mxu1 %vm495_vm0, %v7245_v36 }
 0x6c4   :  { %5426 = vmatpush.xpose.msk.msrb.mxu0 %vm495_vm0, %v2100_v38 }
 0x6c6   :  { %v2139_v19 = vpop.permute.xlu0 %2138 }
 0x6c7   :  { %5427 = vmatmul.msk.f32.vlgmr.msrb.gmra.mxu0 %vm495_vm0, %v7253_v46  ;;  %5440 = vmatmul.msk.f32.gmra.mxu3 %vm495_vm0, %v7262_v49  ;;  %v2137_v34 = vpop.permute.xlu1 %2136 }
 0x6c8   :  { %5429 = vmatpush.xpose.msk.msrb.mxu1 %vm495_vm0, %v2139_v19 }
 0x6ca   :  { %5436 = vmatmul.msk.f32.gmra.mxu2 %vm495_vm0, %v7255_v13 }
 0x6cc   :  { %5430 = vmatpush.xpose.msk.msrb.mxu1 %vm495_vm0, %v2137_v34 }
 0x6ce   :  { %v6273_v35 = vpop.permute.xlu0 %6272 }
 0x6cf   :  { %v6274_v54 = vunpack.i.l.bf16 %v6273_v35  ;;  %5428 = vmatmul.msk.f32.gmra.mxu0 %vm495_vm0, %v7272_v32  ;;  %5431 = vmatmul.msk.f32.vlgmr.msrb.gmra.mxu1 %vm495_vm0, %v7280_v5  ;;  %v6283_v16 = vpop.permute.xlu1 %6282  ;;  %v6275_v20 = vunpack.i.h.bf16 %v6273_v35 }
 0x6d0   :  { %v6284_v56 = vunpack.i.l.bf16 %v6283_v16  ;;  %v6285_v6 = vunpack.i.h.bf16 %v6283_v16 }
 0x6d1   :  { %2549 = vmatpush.msra.mxu2 %v6274_v54 }
 0x6d2   :  { %2479 = vmatpush.msra.mxu0 %v6284_v56 }
 0x6d3   :  { %2550 = vmatpush.msra.mxu2 %v6275_v20 }
 0x6d4   :  { %2480 = vmatpush.msra.mxu0 %v6285_v6 }
 0x6d6   :  { %v6288_v26 = vpop.permute.xlu0 %6287 }
 0x6d7   :  { %v6289_v36 = vunpack.i.l.bf16 %v6288_v26  ;;  %5432 = vmatmul.msk.f32.gmra.mxu1 %vm495_vm0, %v7278_v11  ;;  %v6290_v53 = vunpack.i.h.bf16 %v6288_v26 }
 0x6d9   :  { %2514 = vmatpush.msra.mxu1 %v6289_v36 }
 0x6db   :  { %2515 = vmatpush.msra.mxu1 %v6290_v53 }
 0x729   :  { %v2091_v55 = vpop.f32.mrf.mxu3  ;;  %v2054_v9 = vpop.f32.mrf.mxu2 }
 0x72a   :  { %v2249_v43 = vmul.f32 0.25, %v2054_v9  ;;  %v2251_v22 = vmul.f32 0.25, %v2091_v55 }
 0x72c   :  { %v7355_v8 = vadd.f32 %v2249_v43, %v6966_v0  ;;  %v7358_v40 = vadd.f32 %v2251_v22, %v6966_v0 }
 0x72e   :  { %v2289_v27 = vsel %vm495_vm0, %v7355_v8, -inf  ;;  %v2295_v25 = vsel %vm495_vm0, %v7358_v40, -inf }
 0x730   :  { %v1980_v39 = vpop.f32.mrf.mxu0 }
 0x731   :  { %v2245_v60 = vmul.f32 0.25, %v1980_v39  ;;  %v2094_v24 = vpop.f32.mrf.mxu3  ;;  %v2057_v61 = vpop.f32.mrf.mxu2 }
 0x732   :  { %v2252_v44 = vmul.f32 0.25, %v2094_v24  ;;  %v2250_v34 = vmul.f32 0.25, %v2057_v61  ;;  %v6291_v24 = vpack.i.bf16 %v7270_v33, %v7255_v13 }
 0x733   :  { %v7340_v41 = vadd.f32 %v2245_v60, %v6966_v0 }
 0x734   :  { %v7373_v1 = vadd.f32 %v2252_v44, %v6973_v7  ;;  %v7393_v36 = vadd.f32 %v2250_v34, %v6973_v7 }
 0x735   :  { %v2277_v3 = vsel %vm495_vm0, %v7340_v41, -inf }
 0x736   :  { %2278 = vmax.xlane.f32.xlu1 %v2277_v3  ;;  %v2298_v2 = vsel %vm495_vm0, %v7373_v1, -inf  ;;  %v2292_v55 = vsel %vm495_vm0, %v7393_v36, -inf }
 0x738   :  { %v1983_v4 = vpop.f32.mrf.mxu0  ;;  %v2017_v10 = vpop.f32.mrf.mxu1 }
 0x739   :  { %v2246_v57 = vmul.f32 0.25, %v1983_v4  ;;  %v2247_v47 = vmul.f32 0.25, %v2017_v10 }
 0x73b   :  { %v7345_v18 = vadd.f32 %v2246_v57, %v6973_v7  ;;  %v7348_v29 = vadd.f32 %v2247_v47, %v6966_v0 }
 0x73d   :  { %v2280_v42 = vsel %vm495_vm0, %v7345_v18, -inf  ;;  %v2283_v51 = vsel %vm495_vm0, %v7348_v29, -inf }
 0x73e   :  { %2281 = vmax.xlane.f32.xlu0 %v2280_v42  ;;  %2284 = vmax.xlane.f32.xlu2 %v2283_v51 }
 0x740   :  { %v2020_v58 = vpop.f32.mrf.mxu1 }
 0x741   :  { %v2248_v50 = vmul.f32 0.25, %v2020_v58 }
 0x742   :  { %v2239_v21 = vpop.f32.mrf.mxu3 }
 0x743   :  { %v7361_v12 = vadd.f32 %v2248_v50, %v6973_v7  ;;  %v2259_v43 = vmul.f32 0.25, %v2239_v21 }
 0x744   :  { %v2128_v15 = vpop.f32.mrf.mxu0 }
 0x745   :  { %v2253_v14 = vmul.f32 0.25, %v2128_v15  ;;  %v2286_v17 = vsel %vm495_vm0, %v7361_v12, -inf  ;;  %v2202_v38 = vpop.f32.mrf.mxu2  ;;  %v7415_v42 = vadd.f32 %v2259_v43, %v6966_v0 }
 0x746   :  { %2290 = vmax.xlane.f32.xlu0 %v2289_v27  ;;  %2296 = vmax.xlane.f32.xlu2 %v2295_v25  ;;  %v2257_v31 = vmul.f32 0.25, %v2202_v38 }
 0x747   :  { %2287 = vmax.xlane.f32.xlu1 %v2286_v17  ;;  %v7370_v30 = vadd.f32 %v2253_v14, %v6966_v0  ;;  %v2319_v51 = vsel %vm495_vm0, %v7415_v42, -inf }
 0x748   :  { %v7385_v54 = vadd.f32 %v2257_v31, %v6966_v0 }
 0x749   :  { %v2301_v59 = vsel %vm495_vm0, %v7370_v30, -inf }
 0x74a   :  { %v2242_v16 = vpop.f32.mrf.mxu3  ;;  %v2313_v26 = vsel %vm495_vm0, %v7385_v54, -inf }
 0x74b   :  { %v2260_v6 = vmul.f32 0.25, %v2242_v16 }
 0x74c   :  { %v2131_v23 = vpop.f32.mrf.mxu0  ;;  %v2165_v28 = vpop.f32.mrf.mxu1 }
 0x74d   :  { %v2255_v52 = vmul.f32 0.25, %v2165_v28  ;;  %v2254_v48 = vmul.f32 0.25, %v2131_v23  ;;  %v2205_v20 = vpop.f32.mrf.mxu2  ;;  %v7400_v9 = vadd.f32 %v2260_v6, %v6973_v7 }
 0x74e   :  { %2302 = vmax.xlane.f32.xlu2 %v2301_v59  ;;  %v2258_v53 = vmul.f32 0.25, %v2205_v20 }
 0x74f   :  { %2299 = vmax.xlane.f32.xlu1 %v2298_v2  ;;  %v7380_v19 = vadd.f32 %v2255_v52, %v6966_v0  ;;  %v7388_v56 = vadd.f32 %v2254_v48, %v6973_v7  ;;  %v2322_v10 = vsel %vm495_vm0, %v7400_v9, -inf }
 0x750   :  { %v7403_v4 = vadd.f32 %v2258_v53, %v6973_v7 }
 0x751   :  { %v2307_v35 = vsel %vm495_vm0, %v7380_v19, -inf  ;;  %v2304_v60 = vsel %vm495_vm0, %v7388_v56, -inf }
 0x752   :  { %2308 = vmax.xlane.f32.xlu0 %v2307_v35  ;;  %v2316_v47 = vsel %vm495_vm0, %v7403_v4, -inf }
 0x754   :  { %v2168_v39 = vpop.f32.mrf.mxu1 }
 0x755   :  { %v2256_v3 = vmul.f32 0.25, %v2168_v39 }
 0x756   :  { %2314 = vmax.xlane.f32.xlu2 %v2313_v26 }
 0x757   :  { %2305 = vmax.xlane.f32.xlu1 %v2304_v60  ;;  %v7408_v57 = vadd.f32 %v2256_v3, %v6973_v7 }
 0x759   :  { %v2310_v22 = vsel %vm495_vm0, %v7408_v57, -inf }
 0x75a   :  { %2293 = vmax.xlane.f32.xlu0 %v2292_v55 }
 0x75e   :  { %2323 = vmax.xlane.f32.xlu2 %v2322_v10 }
 0x75f   :  { %2317 = vmax.xlane.f32.xlu1 %v2316_v47 }
 0x762   :  { %2311 = vmax.xlane.f32.xlu0 %v2310_v22 }
 0x76a   :  { %2320 = vmax.xlane.f32.xlu0 %v2319_v51 }
 0x77e   :  { %6292 = vrot.lane.b32.xlu0 %v6291_v24, %s6731_s1 }
 0x7a9   :  { %v2279_v58 = vpop.xlane.xlu1 %2278 }
 0x7aa   :  { %v2325_v61 = vsub.f32 %v7340_v41, %v2279_v58 }
 0x7ac   :  { %v2341_v50 = vmul.f32 1.442695, %v2325_v61 }
 0x7ae   :  { %6427 = vpow2.f32 %v2341_v50 }
 0x7b1   :  { %v2282_v15 = vpop.xlane.xlu0 %2281  ;;  %v2285_v14 = vpop.xlane.xlu2 %2284 }
 0x7b2   :  { %v2326_v27 = vsub.f32 %v7345_v18, %v2282_v15  ;;  %v2327_v25 = vsub.f32 %v7348_v29, %v2285_v14 }
 0x7b4   :  { %v7425_v17 = vpop.eup %6427  ;;  %v2343_v44 = vmul.f32 1.442695, %v2326_v27  ;;  %v2345_v21 = vmul.f32 1.442695, %v2327_v25 }
 0x7b5   :  { %v2373_v13 = vsel %vm495_vm0, %v7425_v17, 0.0 }
 0x7b6   :  { %6429 = vpow2.f32 %v2343_v44  ;;  %2374 = vadd.xlane.f32.xlu2 %v2373_v13 }
 0x7b7   :  { %6431 = vpow2.f32 %v2345_v21 }
 0x7b9   :  { %v2297_v33 = vpop.xlane.xlu2 %2296  ;;  %v2291_v23 = vpop.xlane.xlu0 %2290 }
 0x7ba   :  { %v2331_v41 = vsub.f32 %v7358_v40, %v2297_v33  ;;  %v2288_v38 = vpop.xlane.xlu1 %2287  ;;  %v2329_v48 = vsub.f32 %v7355_v8, %v2291_v23 }
 0x7bb   :  { %v2328_v28 = vsub.f32 %v7361_v12, %v2288_v38 }
 0x7bc   :  { %v7431_v18 = vpop.eup %6429  ;;  %v2353_v29 = vmul.f32 1.442695, %v2331_v41  ;;  %v2349_v40 = vmul.f32 1.442695, %v2329_v48  ;;  %v6301_v48 = vpack.i.bf16 %v7253_v46, %v7272_v32 }
 0x7bd   :  { %v7433_v31 = vpop.eup %6431  ;;  %v2347_v52 = vmul.f32 1.442695, %v2328_v28  ;;  %v2376_v59 = vsel %vm495_vm0, %v7431_v18, 0.0 }
 0x7be   :  { %v2379_v2 = vsel %vm495_vm0, %v7433_v31, 0.0  ;;  %2377 = vadd.xlane.f32.xlu2 %v2376_v59  ;;  %6433 = vpow2.f32 %v2353_v29 }
 0x7bf   :  { %2380 = vadd.xlane.f32.xlu1 %v2379_v2  ;;  %6435 = vpow2.f32 %v2347_v52  ;;  %v6306_v52 = vpack.i.bf16 %v7280_v5, %v7278_v11  ;;  %v6296_v2 = vpack.i.bf16 %v7247_v37, %v7262_v49 }
 0x7c0   :  { %6437 = vpow2.f32 %v2349_v40 }
 0x7c1   :  { %v2303_v34 = vpop.xlane.xlu2 %2302 }
 0x7c2   :  { %v2300_v12 = vpop.xlane.xlu1 %2299  ;;  %v2333_v8 = vsub.f32 %v7370_v30, %v2303_v34 }
 0x7c3   :  { %v2332_v35 = vsub.f32 %v7373_v1, %v2300_v12 }
 0x7c4   :  { %v7441_v16 = vpop.eup %6433  ;;  %v2357_v60 = vmul.f32 1.442695, %v2333_v8 }
 0x7c5   :  { %v2355_v20 = vmul.f32 1.442695, %v2332_v35  ;;  %v2309_v6 = vpop.xlane.xlu0 %2308  ;;  %v7443_v26 = vpop.eup %6435  ;;  %v2391_v53 = vsel %vm495_vm0, %v7441_v16, 0.0 }
 0x7c6   :  { %v2382_v39 = vsel %vm495_vm0, %v7443_v26, 0.0  ;;  %v7450_v3 = vpop.eup %6437  ;;  %v2335_v30 = vsub.f32 %v7380_v19, %v2309_v6 }
 0x7c7   :  { %6439 = vpow2.f32 %v2355_v20  ;;  %2392 = vadd.xlane.f32.xlu1 %v2391_v53  ;;  %2383 = vadd.xlane.f32.xlu2 %v2382_v39  ;;  %v2385_v51 = vsel %vm495_vm0, %v7450_v3, 0.0 }
 0x7c8   :  { %6441 = vpow2.f32 %v2357_v60  ;;  %v2361_v61 = vmul.f32 1.442695, %v2335_v30 }
 0x7c9   :  { %v2315_v10 = vpop.xlane.xlu2 %2314 }
 0x7ca   :  { %v2306_v1 = vpop.xlane.xlu1 %2305  ;;  %v2337_v24 = vsub.f32 %v7385_v54, %v2315_v10 }
 0x7cb   :  { %v2334_v12 = vsub.f32 %v7388_v56, %v2306_v1 }
 0x7cc   :  { %v2365_v19 = vmul.f32 1.442695, %v2337_v24 }
 0x7cd   :  { %v7452_v55 = vpop.eup %6439  ;;  %v2294_v47 = vpop.xlane.xlu0 %2293  ;;  %v2359_v34 = vmul.f32 1.442695, %v2334_v12 }
 0x7ce   :  { %v2330_v43 = vsub.f32 %v7393_v36, %v2294_v47  ;;  %v2394_v22 = vsel %vm495_vm0, %v7452_v55, 0.0  ;;  %v7462_v14 = vpop.eup %6441 }
 0x7cf   :  { %2395 = vadd.xlane.f32.xlu0 %v2394_v22  ;;  %2386 = vadd.xlane.f32.xlu2 %v2385_v51  ;;  %v2397_v27 = vsel %vm495_vm0, %v7462_v14, 0.0 }
 0x7d0   :  { %v2351_v58 = vmul.f32 1.442695, %v2330_v43 }
 0x7d1   :  { %v2324_v5 = vpop.xlane.xlu2 %2323 }
 0x7d2   :  { %6443 = vpow2.f32 %v2351_v58  ;;  %v2318_v50 = vpop.xlane.xlu1 %2317  ;;  %v2340_v35 = vsub.f32 %v7400_v9, %v2324_v5 }
 0x7d3   :  { %v2338_v15 = vsub.f32 %v7403_v4, %v2318_v50  ;;  %6445 = vpow2.f32 %v2361_v61 }
 0x7d4   :  { %v2371_v20 = vmul.f32 1.442695, %v2340_v35 }
 0x7d5   :  { %v2367_v36 = vmul.f32 1.442695, %v2338_v15  ;;  %v2312_v13 = vpop.xlane.xlu0 %2311 }
 0x7d6   :  { %v2336_v32 = vsub.f32 %v7408_v57, %v2312_v13 }
 0x7d7   :  { %6447 = vpow2.f32 %v2367_v36  ;;  %2398 = vadd.xlane.f32.xlu2 %v2397_v27 }
 0x7d8   :  { %v7466_v25 = vpop.eup %6443  ;;  %6449 = vpow2.f32 %v2365_v19  ;;  %v2363_v56 = vmul.f32 1.442695, %v2336_v32 }
 0x7d9   :  { %v2388_v54 = vsel %vm495_vm0, %v7466_v25, 0.0  ;;  %v7470_v44 = vpop.eup %6445 }
 0x7da   :  { %2389 = vadd.xlane.f32.xlu1 %v2388_v54  ;;  %v2403_v41 = vsel %vm495_vm0, %v7470_v44, 0.0 }
 0x7dd   :  { %v7472_v4 = vpop.eup %6447  ;;  %v2321_v23 = vpop.xlane.xlu0 %2320 }
 0x7de   :  { %v7474_v21 = vpop.eup %6449  ;;  %v2412_v33 = vsel %vm495_vm0, %v7472_v4, 0.0  ;;  %v2339_v40 = vsub.f32 %v7415_v42, %v2321_v23 }
 0x7df   :  { %2413 = vadd.xlane.f32.xlu0 %v2412_v33  ;;  %2404 = vadd.xlane.f32.xlu2 %v2403_v41  ;;  %v2409_v38 = vsel %vm495_vm0, %v7474_v21, 0.0 }
 0x7e0   :  { %v2369_v11 = vmul.f32 1.442695, %v2339_v40 }
 0x7e2   :  { %2410 = vadd.xlane.f32.xlu1 %v2409_v38  ;;  %6451 = vpow2.f32 %v2369_v11 }
 0x7e3   :  { %6453 = vpow2.f32 %v2359_v34 }
 0x7e4   :  { %6455 = vpow2.f32 %v2371_v20 }
 0x7e5   :  { %6457 = vpow2.f32 %v2363_v56  ;;  %v5995_v56 = vld [vmem:[#allocation7 + $0x40] sm:$0xff] }
 0x7e8   :  { %v7494_v46 = vpop.eup %6451 }
 0x7e9   :  { %v2415_v37 = vsel %vm495_vm0, %v7494_v46, 0.0  ;;  %v7499_v49 = vpop.eup %6453 }
 0x7ea   :  { %v2400_v42 = vsel %vm495_vm0, %v7499_v49, 0.0  ;;  %v7503_v6 = vpop.eup %6455 }
 0x7eb   :  { %v2418_v9 = vsel %vm495_vm0, %v7503_v6, 0.0  ;;  %v7507_v57 = vpop.eup %6457 }
 0x7ec   :  { %v2406_v39 = vsel %vm495_vm0, %v7507_v57, 0.0 }
 0x7f0   :  { %v6293_v28 = vpop.permute.xlu0 %6292 }
 0x7f1   :  { %v6294_v29 = vunpack.i.l.bf16 %v6293_v28  ;;  %v6295_v59 = vunpack.i.h.bf16 %v6293_v28 }
 0x7f3   :  { %6307 = vrot.lane.b32.xlu0 %v6306_v52, %s6731_s1  ;;  %2689 = vmatpush.msrb.mxu2 %v6294_v29 }
 0x7f5   :  { %2690 = vmatpush.msrb.mxu2 %v6295_v59 }
 0x7f7   :  { %6302 = vrot.lane.b32.xlu2 %v6301_v48, %s6731_s1 }
 0x7fb   :  { %6297 = vrot.lane.b32.xlu1 %v6296_v2, %s6731_s1 }
 0x820   :  { %2416 = vadd.xlane.f32.xlu2 %v2415_v37 }
 0x825   :  { %2401 = vadd.xlane.f32.xlu1 %v2400_v42 }
 0x828   :  { %2419 = vadd.xlane.f32.xlu2 %v2418_v9 }
 0x829   :  { %v2375_v8 = vpop.xlane.xlu2 %2374 }
 0x82a   :  { %6459 = vrcp.f32 %v2375_v8 }
 0x830   :  { %v6460_v53 = vpop.eup %6459  ;;  %2407 = vadd.xlane.f32.xlu2 %v2406_v39  ;;  %v5996_v39 = vld [vmem:[#allocation7 + $0x48] sm:$0xff] }
 0x831   :  { %v2437_v60 = vmul.f32 %v6460_v53, %v7425_v17  ;;  %v2378_v1 = vpop.xlane.xlu2 %2377 }
 0x832   :  { %6461 = vrcp.f32 %v2378_v1  ;;  %v2381_v10 = vpop.xlane.xlu1 %2380 }
 0x833   :  { %6463 = vrcp.f32 %v2381_v10  ;;  %5441 = vmatmul.msk.f32.vlgmr.msra.gmra.mxu0 %vm495_vm0, %v2437_v60  ;;  %v5998_v10 = vld [vmem:[#allocation7 + $0x58] sm:$0xff] }
 0x838   :  { %v6462_v47 = vpop.eup %6461 }
 0x839   :  { %v6464_v30 = vpop.eup %6463  ;;  %v2438_v43 = vmul.f32 %v6462_v47, %v7431_v18 }
 0x83a   :  { %v2439_v22 = vmul.f32 %v6464_v30, %v7433_v31  ;;  %v2393_v51 = vpop.xlane.xlu1 %2392  ;;  %v2384_v24 = vpop.xlane.xlu2 %2383 }
 0x83b   :  { %6465 = vrcp.f32 %v2393_v51  ;;  %5442 = vmatmul.msk.f32.gmra.mxu0 %vm495_vm0, %v2438_v43 }
 0x83c   :  { %6467 = vrcp.f32 %v2384_v24  ;;  %5443 = vmatmul.msk.f32.vlgmr.msra.gmra.mxu1 %vm495_vm0, %v2439_v22  ;;  %v5997_v24 = vld [vmem:[#allocation7 + $0x50] sm:$0xff] }
 0x841   :  { %v6466_v17 = vpop.eup %6465 }
 0x842   :  { %v6468_v58 = vpop.eup %6467  ;;  %v2443_v61 = vmul.f32 %v6466_v17, %v7441_v16  ;;  %v2396_v50 = vpop.xlane.xlu0 %2395 }
 0x843   :  { %v2387_v15 = vpop.xlane.xlu2 %2386  ;;  %6469 = vrcp.f32 %v2396_v50  ;;  %v2440_v19 = vmul.f32 %v6468_v58, %v7443_v26 }
 0x844   :  { %6471 = vrcp.f32 %v2387_v15  ;;  %5447 = vmatmul.msk.f32.vlgmr.msra.gmra.mxu3 %vm495_vm0, %v2443_v61 }
 0x845   :  { %5444 = vmatmul.msk.f32.gmra.mxu1 %vm495_vm0, %v2440_v19 }
 0x849   :  { %v6470_v18 = vpop.eup %6469 }
 0x84a   :  { %v6472_v31 = vpop.eup %6471  ;;  %v2444_v36 = vmul.f32 %v6470_v18, %v7452_v55 }
 0x84b   :  { %v2441_v27 = vmul.f32 %v6472_v31, %v7450_v3  ;;  %v2399_v54 = vpop.xlane.xlu2 %2398  ;;  %v6001_v31 = vld [vmem:[#allocation7 + $0x70] sm:$0xff] }
 0x84c   :  { %5448 = vmatmul.msk.f32.gmra.mxu3 %vm495_vm0, %v2444_v36 }
 0x84d   :  { %5445 = vmatmul.msk.f32.vlgmr.msra.gmra.mxu2 %vm495_vm0, %v2441_v27  ;;  %v2390_v16 = vpop.xlane.xlu1 %2389 }
 0x84e   :  { %6473 = vrcp.f32 %v2390_v16  ;;  %2843 = vmatpush.bf16.msra.mxu2 %v5997_v24 }
 0x84f   :  { %6475 = vrcp.f32 %v2399_v54 }
 0x852   :  { %v2414_v38 = vpop.xlane.xlu0 %2413 }
 0x853   :  { %v2405_v13 = vpop.xlane.xlu2 %2404 }
 0x854   :  { %v6474_v26 = vpop.eup %6473 }
 0x855   :  { %v2411_v33 = vpop.xlane.xlu1 %2410  ;;  %v2442_v41 = vmul.f32 %v6474_v26, %v7466_v25  ;;  %v6476_v55 = vpop.eup %6475 }
 0x856   :  { %6477 = vrcp.f32 %v2411_v33  ;;  %v2445_v59 = vmul.f32 %v6476_v55, %v7462_v14 }
 0x857   :  { %5446 = vmatmul.msk.f32.gmra.mxu2 %vm495_vm0, %v2442_v41  ;;  %6479 = vrcp.f32 %v2414_v38 }
 0x858   :  { %6481 = vrcp.f32 %v2405_v13 }
 0x85b   :  { %v6303_v23 = vpop.permute.xlu2 %6302 }
 0x85c   :  { %v6478_v3 = vpop.eup %6477  ;;  %v6304_v28 = vunpack.i.l.bf16 %v6303_v23  ;;  %v6305_v52 = vunpack.i.h.bf16 %v6303_v23 }
 0x85d   :  { %v2449_v29 = vmul.f32 %v6478_v3, %v7474_v21  ;;  %v6480_v25 = vpop.eup %6479 }
 0x85e   :  { %2619 = vmatpush.msrb.mxu0 %v6304_v28  ;;  %v2450_v2 = vmul.f32 %v6480_v25, %v7472_v4  ;;  %v6482_v40 = vpop.eup %6481 }
 0x85f   :  { %5453 = vmatmul.msk.f32.vlgmr.msrb.gmra.mxu2 %vm495_vm0, %v2449_v29  ;;  %v2447_v21 = vmul.f32 %v6482_v40, %v7470_v44  ;;  %v5999_v40 = vld [vmem:[#allocation7 + $0x60] sm:$0xff] }
 0x860   :  { %2620 = vmatpush.msrb.mxu0 %v6305_v52  ;;  %2955 = vmatpush.bf16.msrb.mxu2 %v6001_v31 }
 0x861   :  { %5449 = vmatmul.msk.f32.vlgmr.msrb.gmra.mxu0 %vm495_vm0, %v2445_v59 }
 0x862   :  { %2787 = vmatpush.bf16.msra.mxu0 %v5995_v56 }
 0x865   :  { %v6308_v48 = vpop.permute.xlu0 %6307 }
 0x866   :  { %v6309_v12 = vunpack.i.l.bf16 %v6308_v48  ;;  %v6310_v11 = vunpack.i.h.bf16 %v6308_v48  ;;  %2899 = vmatpush.bf16.msrb.mxu0 %v5999_v40 }
 0x867   :  { %5454 = vmatmul.msk.f32.gmra.mxu2 %vm495_vm0, %v2450_v2 }
 0x868   :  { %2654 = vmatpush.msrb.mxu1 %v6309_v12  ;;  %v6002_v12 = vld [vmem:[#allocation7 + $0x78] sm:$0xff] }
 0x86a   :  { %2655 = vmatpush.msrb.mxu1 %v6310_v11  ;;  %v6000_v11 = vld [vmem:[#allocation7 + $0x68] sm:$0xff] }
 0x86b   :  { %5451 = vmatmul.msk.f32.vlgmr.msrb.gmra.mxu1 %vm495_vm0, %v2447_v21 }
 0x86c   :  { %2815 = vmatpush.bf16.msra.mxu1 %v5996_v39 }
 0x86d   :  { %v6298_v14 = vpop.permute.xlu1 %6297 }
 0x86e   :  { %v6299_v5 = vunpack.i.l.bf16 %v6298_v14  ;;  %v6300_v34 = vunpack.i.h.bf16 %v6298_v14 }
 0x870   :  { %2724 = vmatpush.msrb.mxu3 %v6299_v5  ;;  %2927 = vmatpush.bf16.msrb.mxu1 %v6000_v11 }
 0x872   :  { %2725 = vmatpush.msrb.mxu3 %v6300_v34 }
 0x874   :  { %2871 = vmatpush.bf16.msra.mxu3 %v5998_v10 }
 0x893   :  { %v2417_v35 = vpop.xlane.xlu2 %2416 }
 0x894   :  { %6483 = vrcp.f32 %v2417_v35 }
 0x898   :  { %v2402_v20 = vpop.xlane.xlu1 %2401 }
 0x899   :  { %6485 = vrcp.f32 %v2402_v20 }
 0x89a   :  { %v6484_v4 = vpop.eup %6483 }
 0x89b   :  { %v2451_v32 = vmul.f32 %v6484_v4, %v7494_v46  ;;  %v2420_v37 = vpop.xlane.xlu2 %2419 }
 0x89c   :  { %6487 = vrcp.f32 %v2420_v37 }
 0x89d   :  { %5455 = vmatmul.msk.f32.vlgmr.msrb.gmra.mxu3 %vm495_vm0, %v2451_v32 }
 0x89e   :  { %2983 = vmatpush.bf16.msrb.mxu3 %v6002_v12 }
 0x89f   :  { %v6486_v44 = vpop.eup %6485 }
 0x8a0   :  { %v2446_v42 = vmul.f32 %v6486_v44, %v7499_v49 }
 0x8a2   :  { %5450 = vmatmul.msk.f32.gmra.mxu0 %vm495_vm0, %v2446_v42  ;;  %v6488_v9 = vpop.eup %6487 }
 0x8a3   :  { %v2408_v8 = vpop.xlane.xlu2 %2407  ;;  %v2452_v53 = vmul.f32 %v6488_v9, %v7503_v6 }
 0x8a4   :  { %6489 = vrcp.f32 %v2408_v8 }
 0x8a5   :  { %5456 = vmatmul.msk.f32.gmra.mxu3 %vm495_vm0, %v2452_v53 }
 0x8aa   :  { %v6490_v46 = vpop.eup %6489 }
 0x8ab   :  { %v2448_v60 = vmul.f32 %v6490_v46, %v7507_v57 }
 0x8ad   :  { %5452 = vmatmul.msk.f32.gmra.mxu1 %vm495_vm0, %v2448_v60 }
 0x8b0   :  { %v2482_v1 = vpop.f32.mrf.mxu0 }
 0x8b1   :  { %v2733_v49 = vpack.c.bf16 %v2482_v1, %v2482_v1 }
 0x8b3   :  { %v2768_v22 = vunpack.c.l.b16 %v2733_v49 }
 0x8b8   :  { %v2485_v47 = vpop.f32.mrf.mxu0 }
 0x8b9   :  { %v2734_v30 = vpack.c.bf16 %v2485_v47, %v2485_v47  ;;  %v2517_v43 = vpop.f32.mrf.mxu1 }
 0x8ba   :  { %v2735_v17 = vpack.c.bf16 %v2517_v43, %v2517_v43 }
 0x8bb   :  { %v2769_v51 = vunpack.c.l.b16 %v2734_v30 }
 0x8bc   :  { %v2796_v57 = vunpack.c.l.b16 %v2735_v17 }
 0x8bd   :  { %v2770_v6 = vpack.c.b16 %v2769_v51, %v2768_v22 }
 0x8bf   :  { %5461 = vmatmul.msk.bf16.vlgmr.msra.gmra.mxu0 %vm495_vm0, %v2770_v6 }
 0x8c2   :  { %v2520_v58 = vpop.f32.mrf.mxu1 }
 0x8c3   :  { %v2736_v61 = vpack.c.bf16 %v2520_v58, %v2520_v58 }
 0x8c5   :  { %v2797_v50 = vunpack.c.l.b16 %v2736_v61 }
 0x8c7   :  { %v2798_v15 = vpack.c.b16 %v2797_v50, %v2796_v57  ;;  %v2587_v19 = vpop.f32.mrf.mxu3 }
 0x8c8   :  { %v2739_v18 = vpack.c.bf16 %v2587_v19, %v2587_v19 }
 0x8c9   :  { %5466 = vmatmul.msk.bf16.vlgmr.msra.gmra.mxu1 %vm495_vm0, %v2798_v15 }
 0x8ca   :  { %v2852_v54 = vunpack.c.l.b16 %v2739_v18 }
 0x8cf   :  { %v2590_v36 = vpop.f32.mrf.mxu3 }
 0x8d0   :  { %v2740_v27 = vpack.c.bf16 %v2590_v36, %v2590_v36  ;;  %v2552_v16 = vpop.f32.mrf.mxu2 }
 0x8d1   :  { %v2737_v33 = vpack.c.bf16 %v2552_v16, %v2552_v16  ;;  %v6354_v16 = vld [vmem:[%s7969_s5 + $0x1] ss:$0 sm:$0xff] }
 0x8d2   :  { %v2853_v13 = vunpack.c.l.b16 %v2740_v27 }
 0x8d3   :  { %v2824_v55 = vunpack.c.l.b16 %v2737_v33 }
 0x8d4   :  { %v2854_v26 = vpack.c.b16 %v2853_v13, %v2852_v54 }
 0x8d6   :  { %5476 = vmatmul.msk.bf16.vlgmr.msra.gmra.mxu3 %vm495_vm0, %v2854_v26 }
 0x8da   :  { %v2555_v41 = vpop.f32.mrf.mxu2 }
 0x8db   :  { %v2738_v38 = vpack.c.bf16 %v2555_v41, %v2555_v41 }
 0x8dd   :  { %v2825_v23 = vunpack.c.l.b16 %v2738_v38 }
 0x8de   :  { %v2622_v21 = vpop.f32.mrf.mxu0 }
 0x8df   :  { %v2826_v3 = vpack.c.b16 %v2825_v23, %v2824_v55  ;;  %v2741_v14 = vpack.c.bf16 %v2622_v21, %v2622_v21 }
 0x8e1   :  { %5471 = vmatmul.msk.bf16.vlgmr.msra.gmra.mxu2 %vm495_vm0, %v2826_v3  ;;  %v2880_v20 = vunpack.c.l.b16 %v2741_v14 }
 0x8e2   :  { %v2692_v28 = vpop.f32.mrf.mxu2 }
 0x8e3   :  { %v2745_v29 = vpack.c.bf16 %v2692_v28, %v2692_v28 }
 0x8e5   :  { %v2936_v25 = vunpack.c.l.b16 %v2745_v29 }
 0x8e8   :  { %v2657_v32 = vpop.f32.mrf.mxu1 }
 0x8e9   :  { %v2743_v42 = vpack.c.bf16 %v2657_v32, %v2657_v32  ;;  %v6004_v32 = vld [vmem:[#allocation2 + $0x188] sm:$0xff] }
 0x8ea   :  { %v2695_v52 = vpop.f32.mrf.mxu2 }
 0x8eb   :  { %v2746_v59 = vpack.c.bf16 %v2695_v52, %v2695_v52  ;;  %v2908_v60 = vunpack.c.l.b16 %v2743_v42 }
 0x8ed   :  { %v2937_v48 = vunpack.c.l.b16 %v2746_v59 }
 0x8ef   :  { %v2938_v2 = vpack.c.b16 %v2937_v48, %v2936_v25 }
 0x8f1   :  { %5491 = vmatmul.msk.bf16.vlgmr.msrb.gmra.mxu2 %vm495_vm0, %v2938_v2 }
 0x91f   :  { %v2625_v5 = vpop.f32.mrf.mxu0 }
 0x920   :  { %v2742_v34 = vpack.c.bf16 %v2625_v5, %v2625_v5  ;;  %v2727_v35 = vpop.f32.mrf.mxu3 }
 0x921   :  { %v2747_v56 = vpack.c.bf16 %v2727_v35, %v2727_v35  ;;  %v6008_v35 = vld [vmem:[#allocation2 + $0x1a8] sm:$0xff] }
 0x922   :  { %v2881_v4 = vunpack.c.l.b16 %v2742_v34  ;;  %3202 = vmatpush.bf16.xpose.msra.mxu1 %v6008_v35 }
 0x923   :  { %v2964_v53 = vunpack.c.l.b16 %v2747_v56  ;;  %v6010_v56 = vld [vmem:[#allocation2 + $0x1b8] sm:$0xff] }
 0x924   :  { %v2882_v37 = vpack.c.b16 %v2881_v4, %v2880_v20  ;;  %v6011_v20 = vld [vmem:[#allocation2 + $0x1c0] sm:$0xff]  ;;  %v6014_v4 = vld [vmem:[#allocation2 + $0x1d8] sm:$0xff] }
 0x925   :  { %3234 = vmatpush.bf16.xpose.msra.mxu2 %v6011_v20  ;;  %3266 = vmatpush.bf16.xpose.msra.mxu3 %v6014_v4 }
 0x926   :  { %5481 = vmatmul.msk.bf16.vlgmr.msrb.gmra.mxu0 %vm495_vm0, %v2882_v37  ;;  %v6007_v37 = vld [vmem:[#allocation2 + $0x1a0] sm:$0xff] }
 0x928   :  { %v2730_v44 = vpop.f32.mrf.mxu3 }
 0x929   :  { %v2748_v9 = vpack.c.bf16 %v2730_v44, %v2730_v44  ;;  %v6013_v44 = vld [vmem:[#allocation2 + $0x1d0] sm:$0xff] }
 0x92a   :  { %v2660_v8 = vpop.f32.mrf.mxu1  ;;  %3203 = vmatpush.bf16.xpose.msra.mxu1 %v6007_v37 }
 0x92b   :  { %v2965_v39 = vunpack.c.l.b16 %v2748_v9  ;;  %v2744_v46 = vpack.c.bf16 %v2660_v8, %v2660_v8  ;;  %v6003_v8 = vld [vmem:[#allocation2 + $0x180] sm:$0xff] }
 0x92d   :  { %v2966_v1 = vpack.c.b16 %v2965_v39, %v2964_v53  ;;  %v2909_v10 = vunpack.c.l.b16 %v2744_v46  ;;  %3235 = vmatpush.bf16.xpose.msra.mxu2 %v6010_v56  ;;  %3267 = vmatpush.bf16.xpose.msra.mxu3 %v6013_v44  ;;  %v6006_v53 = vld [vmem:[#allocation2 + $0x198] sm:$0xff]  ;;  %v6009_v39 = vld [vmem:[#allocation2 + $0x1b0] sm:$0xff]  ;;  %v6012_v46 = vld [vmem:[#allocation2 + $0x1c8] sm:$0xff] }
 0x92f   :  { %v2910_v49 = vpack.c.b16 %v2909_v10, %v2908_v60  ;;  %5496 = vmatmul.msk.bf16.vlgmr.msrb.gmra.mxu3 %vm495_vm0, %v2966_v1  ;;  %v6017_v60 = vld [vmem:[#allocation2 + $0x1f0] sm:$0xff]  ;;  %v6020_v1 = vld [vmem:[#allocation2 + $0x208] sm:$0xff] }
 0x931   :  { %5486 = vmatmul.msk.bf16.vlgmr.msrb.gmra.mxu1 %vm495_vm0, %v2910_v49  ;;  %v6023_v49 = vld [vmem:[#allocation2 + $0x220] sm:$0xff] }
 0x932   :  { %3204 = vmatpush.bf16.xpose.msra.mxu1 %v6006_v53 }
 0x935   :  { %3236 = vmatpush.bf16.xpose.msra.mxu2 %v6009_v39  ;;  %3268 = vmatpush.bf16.xpose.msra.mxu3 %v6012_v46  ;;  %v6164_v39 = vld [vmem:[#allocation5 + $0x80] sm:$0xff]   ;;  %v6209_v46 = vld [vmem:[#allocation5 + $0x88] sm:$0xff]  }
 0x93a   :  { %3330 = vmatpush.bf16.xpose.msrb.mxu1 %v6020_v1  ;;  %v6170_v1 = vunpack.c.h.bf16 %v6209_v46 }
 0x93c   :  { %v2789_v47 = vpop.f32.mrf.mxu0 }
 0x93d   :  { %3362 = vmatpush.bf16.xpose.msrb.mxu2 %v6023_v49 }
 0x944   :  { %v2791_v22 = vpop.f32.mrf.mxu0 }
 0x946   :  { %v2817_v43 = vpop.f32.mrf.mxu1 }
 0x947   :  { %v2990_v24 = vadd.f32 %v2817_v43, %v2789_v47  ;;  %v6026_v47 = vld [vmem:[#allocation2 + $0x238] sm:$0xff] }
 0x948   :  { %3394 = vmatpush.bf16.xpose.msrb.mxu3 %v6026_v47 }
 0x94e   :  { %v2819_v17 = vpop.f32.mrf.mxu1 }
 0x94f   :  { %v2997_v15 = vadd.f32 %v2819_v17, %v2791_v22  ;;  %v6022_v17 = vld [vmem:[#allocation2 + $0x218] sm:$0xff] }
 0x950   :  { %3363 = vmatpush.bf16.xpose.msrb.mxu2 %v6022_v17 }
 0x959   :  { %v2873_v51 = vpop.f32.mrf.mxu3 }
 0x961   :  { %v2875_v57 = vpop.f32.mrf.mxu3 }
 0x964   :  { %v2845_v30 = vpop.f32.mrf.mxu2 }
 0x965   :  { %v2991_v58 = vadd.f32 %v2990_v24, %v2845_v30  ;;  %v6019_v24 = vld [vmem:[#allocation2 + $0x200] sm:$0xff] }
 0x966   :  { %3331 = vmatpush.bf16.xpose.msrb.mxu1 %v6019_v24 }
 0x967   :  { %v2992_v50 = vadd.f32 %v2991_v58, %v2873_v51 }
 0x96c   :  { %v2847_v6 = vpop.f32.mrf.mxu2 }
 0x96d   :  { %v2998_v36 = vadd.f32 %v2997_v15, %v2847_v6  ;;  %v6016_v6 = vld [vmem:[#allocation2 + $0x1e8] sm:$0xff]  ;;  %v6015_v15 = vld [vmem:[#allocation2 + $0x1e0] sm:$0xff] }
 0x96f   :  { %v2999_v33 = vadd.f32 %v2998_v36, %v2875_v57  ;;  %v6024_v36 = vld [vmem:[#allocation2 + $0x228] sm:$0xff] }
 0x974   :  { %v2957_v18 = vpop.f32.mrf.mxu2 }
 0x97c   :  { %v2959_v29 = vpop.f32.mrf.mxu2 }
 0x9a3   :  { %v2901_v61 = vpop.f32.mrf.mxu0 }
 0x9a4   :  { %v2993_v19 = vadd.f32 %v2992_v50, %v2901_v61  ;;  %v6025_v61 = vld [vmem:[#allocation2 + $0x230] sm:$0xff] }
 0x9a5   :  { %3395 = vmatpush.bf16.xpose.msrb.mxu3 %v6025_v61 }
 0x9ab   :  { %v2903_v13 = vpop.f32.mrf.mxu0 }
 0x9ac   :  { %v3000_v38 = vadd.f32 %v2999_v33, %v2903_v13 }
 0x9ad   :  { %3396 = vmatpush.bf16.xpose.msrb.mxu3 %v6024_v36 }
 0x9ae   :  { %v2929_v31 = vpop.f32.mrf.mxu1 }
 0x9af   :  { %v2994_v27 = vadd.f32 %v2993_v19, %v2929_v31  ;;  %v6018_v19 = vld [vmem:[#allocation2 + $0x1f8] sm:$0xff]  ;;  %v6021_v31 = vld [vmem:[#allocation2 + $0x210] sm:$0xff] }
 0x9b0   :  { %3332 = vmatpush.bf16.xpose.msrb.mxu1 %v6018_v19  ;;  %3364 = vmatpush.bf16.xpose.msrb.mxu2 %v6021_v31  ;;  %v6169_v31 = vunpack.c.l.bf16 %v6209_v46 }
 0x9b1   :  { %v2995_v54 = vadd.f32 %v2994_v27, %v2957_v18 }
 0x9b2   :  { %v2985_v26 = vpop.f32.mrf.mxu3 }
 0x9b3   :  { %v2996_v41 = vadd.f32 %v2995_v54, %v2985_v26 }
 0x9b5   :  { %v3009_v55 = vadd.f32 %v6354_v16, %v2996_v41 }
 0x9b6   :  { %v2931_v23 = vpop.f32.mrf.mxu1 }
 0x9b7   :  { %v3001_v3 = vadd.f32 %v3000_v38, %v2931_v23  ;;  %v3011_v28 = vadd.f32 %v3009_v55, %v7216_v45  ;;  %v6565_v55 = vld [vmem:[%s7970_s6] ss:$0 sm:$0xff] }
 0x9b9   :  { %3013 = vadd.xlane.f32.xlu0 %v3011_v28  ;;  %v3002_v52 = vadd.f32 %v3001_v3, %v2959_v29  ;;  %v6566_v29 = vld [vmem:[%s7971_s7] ss:$0 sm:$0xff] }
 0x9ba   :  { %v2987_v59 = vpop.f32.mrf.mxu3 }
 0x9bb   :  { %v3003_v25 = vadd.f32 %v3002_v52, %v2987_v59 }
 0x9bd   :  { %v3010_v48 = vadd.f32 %v6354_v16, %v3003_v25 }
 0x9bf   :  { %v3012_v2 = vadd.f32 %v3010_v48, %v7221_v62  ;;  %v6005_v62 = vld [vmem:[#allocation2 + $0x190] sm:$0xff] }
 0x9c0   :  { %3170 = vmatpush.bf16.xpose.msra.mxu0 %v6005_v62 }
 0x9c1   :  { %3015 = vadd.xlane.f32.xlu1 %v3012_v2 }
 0x9c8   :  { %3171 = vmatpush.bf16.xpose.msra.mxu0 %v6004_v32 }
 0x9d0   :  { %3172 = vmatpush.bf16.xpose.msra.mxu0 %v6003_v8 }
 0x9d8   :  { %3298 = vmatpush.bf16.xpose.msrb.mxu0 %v6017_v60  ;;  %v6166_v60 = vunpack.c.h.bf16 %v6164_v39 }
 0x9e0   :  { %3299 = vmatpush.bf16.xpose.msrb.mxu0 %v6016_v6  ;;  %v6215_v6 = vld [vmem:[#allocation5 + $0xb8] sm:$0xff]  }
 0x9e1   :  { %v6194_v17 = vunpack.c.h.bf16 %v6215_v6 }
 0x9e8   :  { %3300 = vmatpush.bf16.xpose.msrb.mxu0 %v6015_v15 }
 0xa2c   :  { %v3014_v40 = vpop.xlane.xlu0 %3013 }
 0xa2d   :  { %v3017_v12 = vmul.f32 %v3014_v40, %v7195_v63 }
 0xa2f   :  { %v7557_v11 = vsub.f32 %v3011_v28, %v3017_v12 }
 0xa31   :  { %v3021_v21 = vmul.f32 %v7557_v11, %v7557_v11 }
 0xa33   :  { %3023 = vadd.xlane.f32.xlu1 %v3021_v21 }
 0xa34   :  { %v3016_v14 = vpop.xlane.xlu1 %3015 }
 0xa35   :  { %v3018_v45 = vmul.f32 %v3016_v14, %v7195_v63  ;;  %v6210_v14 = vld [vmem:[#allocation5 + $0x90] sm:$0xff]  }
 0xa36   :  { %v6174_v56 = vunpack.c.h.bf16 %v6210_v14 }
 0xa37   :  { %v7562_v5 = vsub.f32 %v3012_v2, %v3018_v45  ;;  %v6211_v45 = vld [vmem:[#allocation5 + $0x98] sm:$0xff]  }
 0xa38   :  { %v6178_v44 = vunpack.c.h.bf16 %v6211_v45 }
 0xa39   :  { %v3022_v34 = vmul.f32 %v7562_v5, %v7562_v5 }
 0xa3b   :  { %3025 = vadd.xlane.f32.xlu1 %v3022_v34  ;;  %v6177_v34 = vunpack.c.l.bf16 %v6211_v45 }
 0xaa6   :  { %v3024_v42 = vpop.xlane.xlu1 %3023 }
 0xaa7   :  { %v3027_v9 = vmul.f32 %v3024_v42, %v7195_v63 }
 0xaa9   :  { %v3029_v10 = vadd.f32 1e-05, %v3027_v9 }
 0xaab   :  { %6491 = vrsqrt.f32 %v3029_v10  ;;  %vm3037_vm11 = vweird.f32 %v3029_v10 }
 0xaae   :  { %v3026_v30 = vpop.xlane.xlu1 %3025 }
 0xaaf   :  { %v3028_v43 = vmul.f32 %v3026_v30, %v7195_v63 }
 0xab1   :  { %v6492_v22 = vpop.eup %6491  ;;  %v3030_v51 = vadd.f32 1e-05, %v3028_v43 }
 0xab2   :  { %v3032_v58 = vmul.f32 %v6492_v22, %v3029_v10  ;;  %vm3038_vm10 = vweird.f32 %v6492_v22 }
 0xab3   :  { %6493 = vrsqrt.f32 %v3030_v51  ;;  %vm3039_vm12 = vmor %vm3037_vm11, %vm3038_vm10  ;;  %vm3047_vm14 = vweird.f32 %v3030_v51 }
 0xab4   :  { %v3033_v57 = vmul.f32 %v6492_v22, %v3032_v58  ;;  %v6165_v58 = vunpack.c.l.bf16 %v6164_v39 }
 0xab6   :  { %v3034_v50 = vmul.f32 0.5, %v3033_v57 }
 0xab8   :  { %v3035_v18 = vsub.f32 1.5, %v3034_v50 }
 0xab9   :  { %v6494_v27 = vpop.eup %6493 }
 0xaba   :  { %v3036_v54 = vmul.f32 %v6492_v22, %v3035_v18  ;;  %v3042_v16 = vmul.f32 %v6494_v27, %v3030_v51  ;;  %vm3048_vm13 = vweird.f32 %v6494_v27  ;;  %v6214_v51 = vld [vmem:[#allocation5 + $0xb0] sm:$0xff]  }
 0xabb   :  { %vm3049_vm15 = vmor %vm3047_vm14, %vm3048_vm13  ;;  %v6190_v24 = vunpack.c.h.bf16 %v6214_v51 }
 0xabc   :  { %v3040_v13 = vsel %vm3039_vm12, %v6492_v22, %v3036_v54  ;;  %v3043_v26 = vmul.f32 %v6494_v27, %v3042_v16  ;;  %v6189_v54 = vunpack.c.l.bf16 %v6214_v51 }
 0xabd   :  { %v3051_v33 = vmul.f32 %v3040_v13, %v7557_v11 }
 0xabe   :  { %v3044_v41 = vmul.f32 0.5, %v3043_v26  ;;  %v6212_v26 = vld [vmem:[#allocation5 + $0xa0] sm:$0xff]  }
 0xabf   :  { %v3053_v23 = vmul.f32 %v6565_v55, %v3051_v33 }
 0xac0   :  { %v3045_v38 = vsub.f32 1.5, %v3044_v41  ;;  %v6181_v41 = vunpack.c.l.bf16 %v6212_v26 }
 0xac1   :  { %v7575_v52 = vadd.f32 %v6566_v29, %v3053_v23 }
 0xac2   :  { %v3046_v3 = vmul.f32 %v6494_v27, %v3045_v38  ;;  %v6213_v38 = vld [vmem:[#allocation5 + $0xa8] sm:$0xff]  }
 0xac3   :  { %v3057_v48 = vpack.c.bf16 %v7575_v52, %v7575_v52 }
 0xac4   :  { %v3050_v28 = vsel %vm3049_vm15, %v6494_v27, %v3046_v3  ;;  %v6193_v27 = vunpack.c.l.bf16 %v6215_v6  ;;  %v6186_v3 = vunpack.c.h.bf16 %v6213_v38 }
 0xac5   :  { %v3052_v59 = vmul.f32 %v3050_v28, %v7562_v5  ;;  %v3143_v12 = vunpack.c.l.b16 %v3057_v48  ;;  %v6173_v5 = vunpack.c.l.bf16 %v6210_v14  ;;  %v6185_v48 = vunpack.c.l.bf16 %v6213_v38 }
 0xac7   :  { %v3054_v25 = vmul.f32 %v6565_v55, %v3052_v59  ;;  %v6182_v55 = vunpack.c.h.bf16 %v6212_v26 }
 0xac9   :  { %v7580_v2 = vadd.f32 %v6566_v29, %v3054_v25 }
 0xacb   :  { %v3058_v40 = vpack.c.bf16 %v7580_v2, %v7580_v2 }
 0xacd   :  { %v3144_v11 = vunpack.c.l.b16 %v3058_v40 }
 0xacf   :  { %v3145_v21 = vpack.c.b16 %v3144_v11, %v3143_v12 }
 0xad1   :  { %3173 = vmatmul.bf16.vlgmr.msra.gmra.mxu0 %v3145_v21  ;;  %3205 = vmatmul.bf16.vlgmr.msra.gmra.mxu1 %v3145_v21 }
 0xad2   :  { %3237 = vmatmul.bf16.vlgmr.msra.gmra.mxu2 %v3145_v21  ;;  %3269 = vmatmul.bf16.vlgmr.msra.gmra.mxu3 %v3145_v21 }
 0xae1   :  { %3301 = vmatmul.bf16.vlgmr.msrb.gmra.mxu0 %v3145_v21  ;;  %3333 = vmatmul.bf16.vlgmr.msrb.gmra.mxu1 %v3145_v21 }
 0xae2   :  { %3365 = vmatmul.bf16.vlgmr.msrb.gmra.mxu2 %v3145_v21  ;;  %3397 = vmatmul.bf16.vlgmr.msrb.gmra.mxu3 %v3145_v21 }
 0xb4e   :  { %v3174_v32 = vpop.f32.mrf.mxu0  ;;  %v3206_v37 = vpop.f32.mrf.mxu1 }
 0xb4f   :  { %v7612_v19 = vadd.f32 %v6165_v58, %v3174_v32  ;;  %v7620_v16 = vadd.f32 %v6169_v31, %v3206_v37 }
 0xb55   :  { %v3238_v62 = vpop.f32.mrf.mxu2  ;;  %v3270_v35 = vpop.f32.mrf.mxu3 }
 0xb56   :  { %v7584_v20 = vadd.f32 %v6173_v5, %v3238_v62  ;;  %v7586_v4 = vadd.f32 %v6177_v34, %v3270_v35  ;;  %v3176_v10 = vpop.f32.mrf.mxu0  ;;  %v3208_v49 = vpop.f32.mrf.mxu1 }
 0xb57   :  { %v7600_v43 = vadd.f32 %v6166_v60, %v3176_v10  ;;  %v7602_v22 = vadd.f32 %v6170_v1, %v3208_v49 }
 0xb58   :  { %3516 = vrot.lane.b32.xlu2 %v7586_v4, %s6730_s0  ;;  %3479 = vrot.lane.b32.xlu0 %v7584_v20, %s6730_s0 }
 0xb59   :  { %v6326_v14 = vpack.i.bf16 %v7620_v16, %v7602_v22  ;;  %v6321_v45 = vpack.i.bf16 %v7612_v19, %v7600_v43 }
 0xb5d   :  { %v3240_v42 = vpop.f32.mrf.mxu2  ;;  %v3272_v9 = vpop.f32.mrf.mxu3 }
 0xb5e   :  { %v7592_v8 = vadd.f32 %v6174_v56, %v3240_v42  ;;  %v7594_v53 = vadd.f32 %v6178_v44, %v3272_v9  ;;  %v3302_v18 = vpop.f32.mrf.mxu0  ;;  %v3334_v36 = vpop.f32.mrf.mxu1 }
 0xb5f   :  { %v7632_v29 = vadd.f32 %v6181_v41, %v3302_v18  ;;  %v7644_v40 = vadd.f32 %v6185_v48, %v3334_v36 }
 0xb60   :  { %3518 = vrot.lane.b32.xlu1 %v7594_v53, %s6730_s0  ;;  %3481 = vrot.lane.b32.xlu2 %v7592_v8, %s6730_s0  ;;  %v6316_v12 = vpack.i.bf16 %v7586_v4, %v7594_v53  ;;  %v6311_v11 = vpack.i.bf16 %v7584_v20, %v7592_v8 }
 0xb65   :  { %v3366_v47 = vpop.f32.mrf.mxu2  ;;  %v3398_v30 = vpop.f32.mrf.mxu3 }
 0xb66   :  { %v7622_v13 = vadd.f32 %v6193_v27, %v3398_v30  ;;  %v7624_v33 = vadd.f32 %v6189_v54, %v3366_v47  ;;  %v3304_v23 = vpop.f32.mrf.mxu0  ;;  %v3336_v28 = vpop.f32.mrf.mxu1 }
 0xb67   :  { %v7634_v59 = vadd.f32 %v6182_v55, %v3304_v23  ;;  %v7636_v25 = vadd.f32 %v6186_v3, %v3336_v28 }
 0xb68   :  { %3444 = vrot.lane.b32.xlu2 %v7602_v22, %s6730_s0  ;;  %3407 = vrot.lane.b32.xlu1 %v7600_v43, %s6730_s0 }
 0xb6d   :  { %v3368_v61 = vpop.f32.mrf.mxu2  ;;  %v3400_v57 = vpop.f32.mrf.mxu3 }
 0xb6e   :  { %v7608_v50 = vadd.f32 %v6190_v24, %v3368_v61  ;;  %v7610_v15 = vadd.f32 %v6194_v17, %v3400_v57 }
 0xb70   :  { %3629 = vrot.lane.b32.xlu0 %v7608_v50, %s6730_s0  ;;  %3666 = vrot.lane.b32.xlu2 %v7610_v15, %s6730_s0  ;;  %v6331_v21 = vpack.i.bf16 %v7624_v33, %v7608_v50 }
 0xb71   :  { %3405 = vrot.lane.b32.xlu1 %v7612_v19, %s6730_s0 }
 0xb78   :  { %3664 = vrot.lane.b32.xlu2 %v7622_v13, %s6730_s0  ;;  %3442 = vrot.lane.b32.xlu0 %v7620_v16, %s6730_s0 }
 0xb79   :  { %3627 = vrot.lane.b32.xlu1 %v7624_v33, %s6730_s0 }
 0xb80   :  { %3555 = vrot.lane.b32.xlu0 %v7634_v59, %s6730_s0  ;;  %3553 = vrot.lane.b32.xlu2 %v7632_v29, %s6730_s0 }
 0xb81   :  { %3592 = vrot.lane.b32.xlu1 %v7636_v25, %s6730_s0 }
 0xb88   :  { %3590 = vrot.lane.b32.xlu0 %v7644_v40, %s6730_s0  ;;  %6317 = vrot.lane.b32.xlu2 %v6316_v12, %s6731_s1 }
 0xb89   :  { %6312 = vrot.lane.b32.xlu1 %v6311_v11, %s6731_s1 }
 0xb90   :  { %6332 = vrot.lane.b32.xlu0 %v6331_v21, %s6731_s1  ;;  %6327 = vrot.lane.b32.xlu2 %v6326_v14, %s6731_s1 }
 0xb91   :  { %6322 = vrot.lane.b32.xlu1 %v6321_v45, %s6731_s1 }
 0xbb2   :  { %v3517_v5 = vpop.permute.xlu2 %3516 }
 0xbba   :  { %v3482_v34 = vpop.permute.xlu2 %3481 }
 0xbbb   :  { %5602 = vmatpush.xpose.msk.msra.mxu2 %vm495_vm0, %v3482_v34 }
 0xbc2   :  { %v3445_v62 = vpop.permute.xlu2 %3444 }
 0xbc3   :  { %5598 = vmatpush.xpose.msk.msra.mxu1 %vm495_vm0, %v3445_v62 }
 0xbca   :  { %v3480_v35 = vpop.permute.xlu0 %3479  ;;  %v3667_v32 = vpop.permute.xlu2 %3666 }
 0xbcb   :  { %5603 = vmatpush.xpose.msk.msra.mxu2 %vm495_vm0, %v3480_v35 }
 0xbce   :  { %5604 = vmatmul.msk.f32.vlgmr.msra.gmra.mxu2 %vm495_vm0, %v7584_v20 }
 0xbd2   :  { %v3519_v37 = vpop.permute.xlu1 %3518  ;;  %v3665_v56 = vpop.permute.xlu2 %3664 }
 0xbd3   :  { %5606 = vmatpush.xpose.msk.msra.mxu3 %vm495_vm0, %v3519_v37 }
 0xbd6   :  { %5605 = vmatmul.msk.f32.gmra.mxu2 %vm495_vm0, %v7592_v8 }
 0xbd7   :  { %5607 = vmatpush.xpose.msk.msra.mxu3 %vm495_vm0, %v3517_v5 }
 0xbda   :  { %5608 = vmatmul.msk.f32.vlgmr.msra.gmra.mxu3 %vm495_vm0, %v7586_v4  ;;  %v3554_v44 = vpop.permute.xlu2 %3553  ;;  %v3408_v42 = vpop.permute.xlu1 %3407 }
 0xbdb   :  { %5622 = vmatpush.xpose.msk.msrb.mxu3 %vm495_vm0, %v3667_v32  ;;  %5594 = vmatpush.xpose.msk.msra.mxu0 %vm495_vm0, %v3408_v42 }
 0xbdf   :  { %5623 = vmatpush.xpose.msk.msrb.mxu3 %vm495_vm0, %v3665_v56 }
 0xbe2   :  { %5609 = vmatmul.msk.f32.gmra.mxu3 %vm495_vm0, %v7594_v53  ;;  %v3630_v20 = vpop.permute.xlu0 %3629  ;;  %v6318_v9 = vpop.permute.xlu2 %6317 }
 0xbe3   :  { %v6319_v39 = vunpack.i.l.bf16 %v6318_v9  ;;  %v3406_v8 = vpop.permute.xlu1 %3405  ;;  %5618 = vmatpush.xpose.msk.msrb.mxu2 %vm495_vm0, %v3630_v20  ;;  %v6320_v46 = vunpack.i.h.bf16 %v6318_v9 }
 0xbe4   :  { %5595 = vmatpush.xpose.msk.msra.mxu0 %vm495_vm0, %v3406_v8 }
 0xbe5   :  { %4038 = vmatpush.msra.mxu3 %v6319_v39 }
 0xbe7   :  { %5596 = vmatmul.msk.f32.vlgmr.msra.gmra.mxu0 %vm495_vm0, %v7612_v19  ;;  %4039 = vmatpush.msra.mxu3 %v6320_v46 }
 0xbea   :  { %5624 = vmatmul.msk.f32.vlgmr.msrb.gmra.mxu3 %vm495_vm0, %v7622_v13  ;;  %v3443_v4 = vpop.permute.xlu0 %3442  ;;  %v6328_v10 = vpop.permute.xlu2 %6327 }
 0xbeb   :  { %v3628_v60 = vpop.permute.xlu1 %3627  ;;  %5599 = vmatpush.xpose.msk.msra.mxu1 %vm495_vm0, %v3443_v4  ;;  %v6329_v49 = vunpack.i.l.bf16 %v6328_v10  ;;  %v6330_v51 = vunpack.i.h.bf16 %v6328_v10 }
 0xbec   :  { %5619 = vmatpush.xpose.msk.msrb.mxu2 %vm495_vm0, %v3628_v60 }
 0xbee   :  { %5600 = vmatmul.msk.f32.vlgmr.msra.gmra.mxu1 %vm495_vm0, %v7620_v16 }
 0xbef   :  { %5597 = vmatmul.msk.f32.gmra.mxu0 %vm495_vm0, %v7600_v43  ;;  %5620 = vmatmul.msk.f32.vlgmr.msrb.gmra.mxu2 %vm495_vm0, %v7624_v33 }
 0xbf2   :  { %5625 = vmatmul.msk.f32.gmra.mxu3 %vm495_vm0, %v7610_v15  ;;  %v3556_v53 = vpop.permute.xlu0 %3555 }
 0xbf3   :  { %v3593_v1 = vpop.permute.xlu1 %3592  ;;  %5610 = vmatpush.xpose.msk.msrb.mxu0 %vm495_vm0, %v3556_v53 }
 0xbf4   :  { %5614 = vmatpush.xpose.msk.msrb.mxu1 %vm495_vm0, %v3593_v1 }
 0xbf6   :  { %5601 = vmatmul.msk.f32.gmra.mxu1 %vm495_vm0, %v7602_v22 }
 0xbf7   :  { %5621 = vmatmul.msk.f32.gmra.mxu2 %vm495_vm0, %v7608_v50  ;;  %5611 = vmatpush.xpose.msk.msrb.mxu0 %vm495_vm0, %v3554_v44 }
 0xbfa   :  { %v3591_v47 = vpop.permute.xlu0 %3590  ;;  %5612 = vmatmul.msk.f32.vlgmr.msrb.gmra.mxu0 %vm495_vm0, %v7632_v29 }
 0xbfb   :  { %v6313_v30 = vpop.permute.xlu1 %6312  ;;  %5615 = vmatpush.xpose.msk.msrb.mxu1 %vm495_vm0, %v3591_v47 }
 0xbfc   :  { %v6314_v43 = vunpack.i.l.bf16 %v6313_v30  ;;  %v6315_v6 = vunpack.i.h.bf16 %v6313_v30 }
 0xbfe   :  { %4003 = vmatpush.msra.mxu2 %v6314_v43  ;;  %5616 = vmatmul.msk.f32.vlgmr.msrb.gmra.mxu1 %vm495_vm0, %v7644_v40 }
 0xbff   :  { %3968 = vmatpush.msra.mxu1 %v6329_v49 }
 0xc00   :  { %4004 = vmatpush.msra.mxu2 %v6315_v6 }
 0xc01   :  { %3969 = vmatpush.msra.mxu1 %v6330_v51 }
 0xc02   :  { %v6333_v22 = vpop.permute.xlu0 %6332  ;;  %5613 = vmatmul.msk.f32.gmra.mxu0 %vm495_vm0, %v7634_v59 }
 0xc03   :  { %v6334_v24 = vunpack.i.l.bf16 %v6333_v22  ;;  %v6323_v17 = vpop.permute.xlu1 %6322  ;;  %v6335_v61 = vunpack.i.h.bf16 %v6333_v22 }
 0xc04   :  { %v6324_v58 = vunpack.i.l.bf16 %v6323_v17  ;;  %v6325_v57 = vunpack.i.h.bf16 %v6323_v17 }
 0xc05   :  { %4143 = vmatpush.msrb.mxu2 %v6334_v24 }
 0xc06   :  { %3933 = vmatpush.msra.mxu0 %v6324_v58  ;;  %5617 = vmatmul.msk.f32.gmra.mxu1 %vm495_vm0, %v7636_v25 }
 0xc07   :  { %4144 = vmatpush.msrb.mxu2 %v6335_v61 }
 0xc08   :  { %3934 = vmatpush.msra.mxu0 %v6325_v57 }
 0xc51   :  { %v3508_v36 = vpop.f32.mrf.mxu2 }
 0xc52   :  { %v3703_v28 = vmul.f32 0.25, %v3508_v36 }
 0xc54   :  { %v7730_v45 = vadd.f32 %v3703_v28, %v6966_v0 }
 0xc56   :  { %v3743_v56 = vsel %vm495_vm0, %v7730_v45, -inf }
 0xc59   :  { %v3511_v12 = vpop.f32.mrf.mxu2 }
 0xc5a   :  { %v3704_v47 = vmul.f32 0.25, %v3511_v12 }
 0xc5c   :  { %v7763_v51 = vadd.f32 %v3704_v47, %v6973_v7 }
 0xc5d   :  { %v3545_v18 = vpop.f32.mrf.mxu3 }
 0xc5e   :  { %v3705_v55 = vmul.f32 0.25, %v3545_v18 }
 0xc60   :  { %v7727_v21 = vadd.f32 %v3705_v55, %v6966_v0 }
 0xc62   :  { %v3749_v32 = vsel %vm495_vm0, %v7727_v21, -inf }
 0xc64   :  { %v3434_v50 = vpop.f32.mrf.mxu0 }
 0xc65   :  { %v3699_v19 = vmul.f32 0.25, %v3434_v50  ;;  %v3548_v23 = vpop.f32.mrf.mxu3 }
 0xc66   :  { %v3706_v34 = vmul.f32 0.25, %v3548_v23  ;;  %v6336_v23 = vpack.i.bf16 %v7622_v13, %v7610_v15 }
 0xc67   :  { %v7712_v31 = vadd.f32 %v3699_v19, %v6966_v0  ;;  %v3746_v19 = vsel %vm495_vm0, %v7763_v51, -inf }
 0xc68   :  { %v7742_v9 = vadd.f32 %v3706_v34, %v6973_v7 }
 0xc69   :  { %v3731_v27 = vsel %vm495_vm0, %v7712_v31, -inf }
 0xc6a   :  { %3732 = vmax.xlane.f32.xlu0 %v3731_v27  ;;  %v3752_v60 = vsel %vm495_vm0, %v7742_v9, -inf }
 0xc6b   :  { %v3471_v54 = vpop.f32.mrf.mxu1 }
 0xc6c   :  { %v3437_v16 = vpop.f32.mrf.mxu0  ;;  %v3701_v26 = vmul.f32 0.25, %v3471_v54 }
 0xc6d   :  { %v3700_v33 = vmul.f32 0.25, %v3437_v16  ;;  %v3693_v44 = vpop.f32.mrf.mxu3 }
 0xc6e   :  { %v7717_v41 = vadd.f32 %v3701_v26, %v6966_v0  ;;  %v3713_v26 = vmul.f32 0.25, %v3693_v44 }
 0xc6f   :  { %v7720_v38 = vadd.f32 %v3700_v33, %v6973_v7 }
 0xc70   :  { %v3737_v3 = vsel %vm495_vm0, %v7717_v41, -inf  ;;  %v7787_v55 = vadd.f32 %v3713_v26, %v6966_v0 }
 0xc71   :  { %3738 = vmax.xlane.f32.xlu2 %v3737_v3  ;;  %v3734_v48 = vsel %vm495_vm0, %v7720_v38, -inf }
 0xc72   :  { %3735 = vmax.xlane.f32.xlu1 %v3734_v48  ;;  %v3656_v42 = vpop.f32.mrf.mxu2 }
 0xc73   :  { %v3474_v11 = vpop.f32.mrf.mxu1  ;;  %v3711_v53 = vmul.f32 0.25, %v3656_v42 }
 0xc74   :  { %v3702_v14 = vmul.f32 0.25, %v3474_v11 }
 0xc75   :  { %v7757_v30 = vadd.f32 %v3711_v53, %v6966_v0  ;;  %v3696_v6 = vpop.f32.mrf.mxu3 }
 0xc76   :  { %v7733_v5 = vadd.f32 %v3702_v14, %v6973_v7  ;;  %v3714_v17 = vmul.f32 0.25, %v3696_v6 }
 0xc77   :  { %v3582_v62 = vpop.f32.mrf.mxu0  ;;  %v3767_v57 = vsel %vm495_vm0, %v7757_v30, -inf }
 0xc78   :  { %v3707_v35 = vmul.f32 0.25, %v3582_v62  ;;  %v3740_v37 = vsel %vm495_vm0, %v7733_v5, -inf  ;;  %v7772_v18 = vadd.f32 %v3714_v17, %v6973_v7 }
 0xc79   :  { %3750 = vmax.xlane.f32.xlu2 %v3749_v32  ;;  %3741 = vmax.xlane.f32.xlu0 %v3740_v37 }
 0xc7a   :  { %3744 = vmax.xlane.f32.xlu1 %v3743_v56  ;;  %v7745_v39 = vadd.f32 %v3707_v35, %v6966_v0  ;;  %v3659_v22 = vpop.f32.mrf.mxu2  ;;  %v3776_v54 = vsel %vm495_vm0, %v7772_v18, -inf }
 0xc7b   :  { %v3619_v20 = vpop.f32.mrf.mxu1  ;;  %v3712_v58 = vmul.f32 0.25, %v3659_v22 }
 0xc7c   :  { %v3709_v8 = vmul.f32 0.25, %v3619_v20  ;;  %v3755_v10 = vsel %vm495_vm0, %v7745_v39, -inf }
 0xc7d   :  { %v7775_v36 = vadd.f32 %v3712_v58, %v6973_v7 }
 0xc7e   :  { %v7748_v46 = vadd.f32 %v3709_v8, %v6966_v0 }
 0xc7f   :  { %v3585_v4 = vpop.f32.mrf.mxu0  ;;  %v3770_v16 = vsel %vm495_vm0, %v7775_v36, -inf }
 0xc80   :  { %v3708_v1 = vmul.f32 0.25, %v3585_v4  ;;  %v3761_v49 = vsel %vm495_vm0, %v7748_v46, -inf }
 0xc81   :  { %3753 = vmax.xlane.f32.xlu0 %v3752_v60  ;;  %3756 = vmax.xlane.f32.xlu2 %v3755_v10 }
 0xc82   :  { %3762 = vmax.xlane.f32.xlu1 %v3761_v49  ;;  %v7760_v43 = vadd.f32 %v3708_v1, %v6973_v7 }
 0xc83   :  { %v3622_v24 = vpop.f32.mrf.mxu1 }
 0xc84   :  { %v3758_v61 = vsel %vm495_vm0, %v7760_v43, -inf  ;;  %v3710_v50 = vmul.f32 0.25, %v3622_v24 }
 0xc86   :  { %v7778_v27 = vadd.f32 %v3710_v50, %v6973_v7  ;;  %v3773_v7 = vsel %vm495_vm0, %v7787_v55, -inf }
 0xc88   :  { %v3764_v33 = vsel %vm495_vm0, %v7778_v27, -inf }
 0xc89   :  { %3759 = vmax.xlane.f32.xlu0 %v3758_v61  ;;  %3768 = vmax.xlane.f32.xlu2 %v3767_v57 }
 0xc8a   :  { %3747 = vmax.xlane.f32.xlu1 %v3746_v19 }
 0xc91   :  { %3777 = vmax.xlane.f32.xlu2 %v3776_v54  ;;  %3771 = vmax.xlane.f32.xlu0 %v3770_v16 }
 0xc92   :  { %3765 = vmax.xlane.f32.xlu1 %v3764_v33 }
 0xc9a   :  { %3774 = vmax.xlane.f32.xlu1 %v3773_v7 }
 0xcb3   :  { %6337 = vrot.lane.b32.xlu1 %v6336_v23, %s6731_s1 }
 0xcdd   :  { %v3733_v3 = vpop.xlane.xlu0 %3732 }
 0xcde   :  { %v3779_v28 = vsub.f32 %v7712_v31, %v3733_v3 }
 0xce0   :  { %v3795_v48 = vmul.f32 1.442695, %v3779_v28  ;;  %v6341_v28 = vpack.i.bf16 %v7632_v29, %v7634_v59 }
 0xce2   :  { %6495 = vpow2.f32 %v3795_v48 }
 0xce4   :  { %v3739_v12 = vpop.xlane.xlu2 %3738 }
 0xce5   :  { %v3781_v11 = vsub.f32 %v7717_v41, %v3739_v12  ;;  %v3736_v14 = vpop.xlane.xlu1 %3735 }
 0xce6   :  { %v3780_v34 = vsub.f32 %v7720_v38, %v3736_v14 }
 0xce7   :  { %v3799_v0 = vmul.f32 1.442695, %v3781_v11 }
 0xce8   :  { %v7797_v62 = vpop.eup %6495  ;;  %v3797_v13 = vmul.f32 1.442695, %v3780_v34 }
 0xce9   :  { %6497 = vpow2.f32 %v3799_v0  ;;  %v3827_v15 = vsel %vm495_vm0, %v7797_v62, 0.0 }
 0xcea   :  { %3828 = vadd.xlane.f32.xlu2 %v3827_v15  ;;  %6499 = vpow2.f32 %v3797_v13 }
 0xcec   :  { %v3751_v35 = vpop.xlane.xlu2 %3750  ;;  %v3742_v32 = vpop.xlane.xlu0 %3741 }
 0xced   :  { %v3745_v31 = vpop.xlane.xlu1 %3744  ;;  %v3782_v41 = vsub.f32 %v7733_v5, %v3742_v32  ;;  %v3785_v60 = vsub.f32 %v7727_v21, %v3751_v35 }
 0xcee   :  { %v3783_v37 = vsub.f32 %v7730_v45, %v3745_v31 }
 0xcef   :  { %v7802_v56 = vpop.eup %6497  ;;  %v3801_v42 = vmul.f32 1.442695, %v3782_v41  ;;  %v3807_v10 = vmul.f32 1.442695, %v3785_v60 }
 0xcf0   :  { %v3803_v44 = vmul.f32 1.442695, %v3783_v37  ;;  %v3833_v38 = vsel %vm495_vm0, %v7802_v56, 0.0  ;;  %v7807_v4 = vpop.eup %6499 }
 0xcf1   :  { %3834 = vadd.xlane.f32.xlu0 %v3833_v38  ;;  %v3830_v45 = vsel %vm495_vm0, %v7807_v4, 0.0 }
 0xcf2   :  { %6501 = vpow2.f32 %v3803_v44  ;;  %v6346_v44 = vpack.i.bf16 %v7644_v40, %v7636_v25 }
 0xcf3   :  { %6503 = vpow2.f32 %v3801_v42 }
 0xcf4   :  { %v3754_v20 = vpop.xlane.xlu0 %3753  ;;  %v3757_v8 = vpop.xlane.xlu2 %3756  ;;  %6505 = vpow2.f32 %v3807_v10 }
 0xcf5   :  { %v3763_v5 = vpop.xlane.xlu1 %3762  ;;  %v3787_v21 = vsub.f32 %v7745_v39, %v3757_v8 }
 0xcf6   :  { %v3789_v31 = vsub.f32 %v7748_v46, %v3763_v5 }
 0xcf7   :  { %v3811_v58 = vmul.f32 1.442695, %v3787_v21 }
 0xcf8   :  { %v7812_v53 = vpop.eup %6501  ;;  %v3815_v37 = vmul.f32 1.442695, %v3789_v31 }
 0xcf9   :  { %3831 = vadd.xlane.f32.xlu0 %v3830_v45  ;;  %v3839_v1 = vsel %vm495_vm0, %v7812_v53, 0.0  ;;  %v7816_v6 = vpop.eup %6503 }
 0xcfa   :  { %3840 = vadd.xlane.f32.xlu2 %v3839_v1  ;;  %v3836_v17 = vsel %vm495_vm0, %v7816_v6, 0.0  ;;  %v7822_v50 = vpop.eup %6505 }
 0xcfb   :  { %v3845_v26 = vsel %vm495_vm0, %v7822_v50, 0.0 }
 0xcfc   :  { %v3760_v49 = vpop.xlane.xlu0 %3759  ;;  %v3769_v47 = vpop.xlane.xlu2 %3768 }
 0xcfd   :  { %v3791_v22 = vsub.f32 %v7757_v30, %v3769_v47  ;;  %v3748_v61 = vpop.xlane.xlu1 %3747  ;;  %v3788_v39 = vsub.f32 %v7760_v43, %v3760_v49 }
 0xcfe   :  { %v3784_v54 = vsub.f32 %v7763_v51, %v3748_v61  ;;  %v3786_v51 = vsub.f32 %v7742_v9, %v3754_v20 }
 0xcff   :  { %v3819_v24 = vmul.f32 1.442695, %v3791_v22  ;;  %v3813_v23 = vmul.f32 1.442695, %v3788_v39 }
 0xd00   :  { %v3805_v7 = vmul.f32 1.442695, %v3784_v54  ;;  %v3809_v12 = vmul.f32 1.442695, %v3786_v51 }
 0xd01   :  { %3837 = vadd.xlane.f32.xlu0 %v3836_v17  ;;  %6507 = vpow2.f32 %v3819_v24 }
 0xd02   :  { %6509 = vpow2.f32 %v3811_v58 }
 0xd04   :  { %v3772_v57 = vpop.xlane.xlu0 %3771  ;;  %v3778_v42 = vpop.xlane.xlu2 %3777 }
 0xd05   :  { %v3792_v19 = vsub.f32 %v7775_v36, %v3772_v57  ;;  %v3766_v11 = vpop.xlane.xlu1 %3765  ;;  %v3794_v8 = vsub.f32 %v7772_v18, %v3778_v42 }
 0xd07   :  { %v3821_v30 = vmul.f32 1.442695, %v3792_v19  ;;  %v7826_v16 = vpop.eup %6507  ;;  %v3825_v60 = vmul.f32 1.442695, %v3794_v8 }
 0xd08   :  { %v3863_v33 = vsel %vm495_vm0, %v7826_v16, 0.0  ;;  %v7833_v36 = vpop.eup %6509 }
 0xd09   :  { %3846 = vadd.xlane.f32.xlu0 %v3845_v26  ;;  %6511 = vpow2.f32 %v3821_v30  ;;  %3864 = vadd.xlane.f32.xlu1 %v3863_v33  ;;  %v3851_v43 = vsel %vm495_vm0, %v7833_v36, 0.0 }
 0xd0a   :  { %6513 = vpow2.f32 %v3805_v7 }
 0xd0b   :  { %6515 = vpow2.f32 %v3813_v23 }
 0xd0c   :  { %6517 = vpow2.f32 %v3809_v12 }
 0xd0d   :  { %v3775_v34 = vpop.xlane.xlu1 %3774  ;;  %6519 = vpow2.f32 %v3815_v37 }
 0xd0e   :  { %v3793_v41 = vsub.f32 %v7787_v55, %v3775_v34  ;;  %v3790_v55 = vsub.f32 %v7778_v27, %v3766_v11 }
 0xd0f   :  { %v7836_v3 = vpop.eup %6511 }
 0xd10   :  { %v3866_v48 = vsel %vm495_vm0, %v7836_v3, 0.0  ;;  %v7845_v9 = vpop.eup %6513  ;;  %v3823_v38 = vmul.f32 1.442695, %v3793_v41  ;;  %v3817_v40 = vmul.f32 1.442695, %v3790_v55 }
 0xd11   :  { %3852 = vadd.xlane.f32.xlu0 %v3851_v43  ;;  %3867 = vadd.xlane.f32.xlu1 %v3866_v48  ;;  %v7847_v14 = vpop.eup %6515  ;;  %v3842_v0 = vsel %vm495_vm0, %v7845_v9, 0.0 }
 0xd12   :  { %6342 = vrot.lane.b32.xlu2 %v6341_v28, %s6731_s1  ;;  %v3854_v29 = vsel %vm495_vm0, %v7847_v14, 0.0  ;;  %v7853_v59 = vpop.eup %6517  ;;  %6521 = vpow2.f32 %v3823_v38 }
 0xd13   :  { %v3848_v15 = vsel %vm495_vm0, %v7853_v59, 0.0  ;;  %v7862_v20 = vpop.eup %6519  ;;  %6523 = vpow2.f32 %v3825_v60 }
 0xd14   :  { %v3857_v46 = vsel %vm495_vm0, %v7862_v20, 0.0  ;;  %6525 = vpow2.f32 %v3817_v40  ;;  %v6028_v40 = vld [vmem:[#allocation7 + $0x88] sm:$0xff] }
 0xd18   :  { %v7867_v45 = vpop.eup %6521 }
 0xd19   :  { %3843 = vadd.xlane.f32.xlu0 %v3842_v0  ;;  %3855 = vadd.xlane.f32.xlu1 %v3854_v29  ;;  %v3869_v25 = vsel %vm495_vm0, %v7867_v45, 0.0  ;;  %v7872_v5 = vpop.eup %6523 }
 0xd1a   :  { %v3872_v18 = vsel %vm495_vm0, %v7872_v5, 0.0  ;;  %v7876_v1 = vpop.eup %6525 }
 0xd1b   :  { %v3860_v10 = vsel %vm495_vm0, %v7876_v1, 0.0 }
 0xd21   :  { %3849 = vadd.xlane.f32.xlu0 %v3848_v15 }
 0xd25   :  { %v6338_v13 = vpop.permute.xlu1 %6337 }
 0xd26   :  { %v6339_v35 = vunpack.i.l.bf16 %v6338_v13  ;;  %v6340_v32 = vunpack.i.h.bf16 %v6338_v13 }
 0xd28   :  { %4178 = vmatpush.msrb.mxu3 %v6339_v35 }
 0xd2a   :  { %4179 = vmatpush.msrb.mxu3 %v6340_v32 }
 0xd35   :  { %6347 = vrot.lane.b32.xlu0 %v6346_v44, %s6731_s1 }
 0xd3b   :  { %3858 = vadd.xlane.f32.xlu2 %v3857_v46 }
 0xd43   :  { %3870 = vadd.xlane.f32.xlu2 %v3869_v25  ;;  %v6027_v25 = vld [vmem:[#allocation7 + $0x80] sm:$0xff] }
 0xd4b   :  { %3873 = vadd.xlane.f32.xlu2 %v3872_v18 }
 0xd53   :  { %3861 = vadd.xlane.f32.xlu2 %v3860_v10 }
 0xd5d   :  { %v3829_v49 = vpop.xlane.xlu2 %3828 }
 0xd5e   :  { %6527 = vrcp.f32 %v3829_v49 }
 0xd64   :  { %v6528_v27 = vpop.eup %6527  ;;  %v3835_v47 = vpop.xlane.xlu0 %3834 }
 0xd65   :  { %v3891_v22 = vmul.f32 %v6528_v27, %v7797_v62  ;;  %6529 = vrcp.f32 %v3835_v47 }
 0xd67   :  { %5626 = vmatmul.msk.f32.vlgmr.msra.gmra.mxu0 %vm495_vm0, %v3891_v22 }
 0xd6b   :  { %v6530_v21 = vpop.eup %6529 }
 0xd6c   :  { %v3893_v24 = vmul.f32 %v6530_v21, %v7802_v56  ;;  %v3832_v17 = vpop.xlane.xlu0 %3831 }
 0xd6d   :  { %6531 = vrcp.f32 %v3832_v17  ;;  %v3841_v58 = vpop.xlane.xlu2 %3840 }
 0xd6e   :  { %5628 = vmatmul.msk.f32.vlgmr.msra.gmra.mxu1 %vm495_vm0, %v3893_v24  ;;  %6533 = vrcp.f32 %v3841_v58  ;;  %v6029_v58 = vld [vmem:[#allocation7 + $0x90] sm:$0xff] }
 0xd73   :  { %v6532_v61 = vpop.eup %6531 }
 0xd74   :  { %v3838_v57 = vpop.xlane.xlu0 %3837  ;;  %v3892_v19 = vmul.f32 %v6532_v61, %v7807_v4  ;;  %v6534_v54 = vpop.eup %6533 }
 0xd75   :  { %6535 = vrcp.f32 %v3838_v57  ;;  %v3895_v62 = vmul.f32 %v6534_v54, %v7812_v53  ;;  %v6343_v30 = vpop.permute.xlu2 %6342  ;;  %v6030_v54 = vld [vmem:[#allocation7 + $0x98] sm:$0xff] }
 0xd76   :  { %5627 = vmatmul.msk.f32.gmra.mxu0 %vm495_vm0, %v3892_v19  ;;  %v6344_v39 = vunpack.i.l.bf16 %v6343_v30  ;;  %v6345_v56 = vunpack.i.h.bf16 %v6343_v30  ;;  %v6033_v30 = vld [vmem:[#allocation7 + $0xb0] sm:$0xff] }
 0xd77   :  { %5630 = vmatmul.msk.f32.vlgmr.msra.gmra.mxu2 %vm495_vm0, %v3895_v62 }
 0xd78   :  { %4073 = vmatpush.msrb.mxu0 %v6344_v39  ;;  %4297 = vmatpush.bf16.msra.mxu2 %v6029_v58 }
 0xd7a   :  { %4074 = vmatpush.msrb.mxu0 %v6345_v56 }
 0xd7b   :  { %v6536_v26 = vpop.eup %6535 }
 0xd7c   :  { %v3847_v33 = vpop.xlane.xlu0 %3846  ;;  %v3894_v7 = vmul.f32 %v6536_v26, %v7816_v6  ;;  %v3865_v23 = vpop.xlane.xlu1 %3864  ;;  %4241 = vmatpush.bf16.msra.mxu0 %v6027_v25 }
 0xd7d   :  { %6537 = vrcp.f32 %v3847_v33 }
 0xd7e   :  { %5629 = vmatmul.msk.f32.gmra.mxu1 %vm495_vm0, %v3894_v7 }
 0xd83   :  { %v6538_v4 = vpop.eup %6537 }
 0xd84   :  { %v3897_v53 = vmul.f32 %v6538_v4, %v7822_v50  ;;  %v3853_v51 = vpop.xlane.xlu0 %3852  ;;  %v3868_v43 = vpop.xlane.xlu1 %3867 }
 0xd85   :  { %6539 = vrcp.f32 %v3853_v51 }
 0xd86   :  { %5632 = vmatmul.msk.f32.vlgmr.msra.gmra.mxu3 %vm495_vm0, %v3897_v53 }
 0xd87   :  { %4325 = vmatpush.bf16.msra.mxu3 %v6030_v54 }
 0xd8b   :  { %v6540_v28 = vpop.eup %6539 }
 0xd8c   :  { %v3899_v48 = vmul.f32 %v6540_v28, %v7833_v36  ;;  %v3844_v12 = vpop.xlane.xlu0 %3843  ;;  %v3856_v11 = vpop.xlane.xlu1 %3855 }
 0xd8d   :  { %6541 = vrcp.f32 %v3844_v12 }
 0xd8e   :  { %6543 = vrcp.f32 %v3856_v11  ;;  %5634 = vmatmul.msk.f32.vlgmr.msrb.gmra.mxu0 %vm495_vm0, %v3899_v48 }
 0xd8f   :  { %6545 = vrcp.f32 %v3865_v23 }
 0xd93   :  { %v6542_v6 = vpop.eup %6541 }
 0xd94   :  { %v6544_v0 = vpop.eup %6543  ;;  %v3850_v29 = vpop.xlane.xlu0 %3849  ;;  %v3896_v50 = vmul.f32 %v6542_v6, %v7845_v9 }
 0xd95   :  { %6547 = vrcp.f32 %v3850_v29  ;;  %v3900_v34 = vmul.f32 %v6544_v0, %v7847_v14  ;;  %v6546_v36 = vpop.eup %6545 }
 0xd96   :  { %5631 = vmatmul.msk.f32.gmra.mxu2 %vm495_vm0, %v3896_v50  ;;  %6549 = vrcp.f32 %v3868_v43  ;;  %v3903_v13 = vmul.f32 %v6546_v36, %v7826_v16 }
 0xd97   :  { %5635 = vmatmul.msk.f32.gmra.mxu0 %vm495_vm0, %v3900_v34 }
 0xd9b   :  { %v6548_v15 = vpop.eup %6547 }
 0xd9c   :  { %v3898_v35 = vmul.f32 %v6548_v15, %v7853_v59  ;;  %v6550_v32 = vpop.eup %6549 }
 0xd9d   :  { %v3904_v9 = vmul.f32 %v6550_v32, %v7836_v3 }
 0xd9e   :  { %5633 = vmatmul.msk.f32.gmra.mxu3 %vm495_vm0, %v3898_v35  ;;  %5638 = vmatmul.msk.f32.vlgmr.msrb.gmra.mxu2 %vm495_vm0, %v3903_v13 }
 0xd9f   :  { %4409 = vmatpush.bf16.msrb.mxu2 %v6033_v30 }
 0xda6   :  { %5639 = vmatmul.msk.f32.gmra.mxu2 %vm495_vm0, %v3904_v9 }
 0xda7   :  { %v6348_v14 = vpop.permute.xlu0 %6347 }
 0xda8   :  { %v6349_v31 = vunpack.i.l.bf16 %v6348_v14  ;;  %v6350_v37 = vunpack.i.h.bf16 %v6348_v14 }
 0xdaa   :  { %4108 = vmatpush.msrb.mxu1 %v6349_v31 }
 0xdac   :  { %4109 = vmatpush.msrb.mxu1 %v6350_v37  ;;  %v6034_v37 = vld [vmem:[#allocation7 + $0xb8] sm:$0xff] }
 0xdae   :  { %v3859_v41 = vpop.xlane.xlu2 %3858  ;;  %4269 = vmatpush.bf16.msra.mxu1 %v6028_v40 }
 0xdaf   :  { %6551 = vrcp.f32 %v3859_v41  ;;  %v6032_v41 = vld [vmem:[#allocation7 + $0xa8] sm:$0xff] }
 0xdb5   :  { %v6552_v44 = vpop.eup %6551 }
 0xdb6   :  { %v3901_v16 = vmul.f32 %v6552_v44, %v7862_v20  ;;  %v3871_v59 = vpop.xlane.xlu2 %3870 }
 0xdb7   :  { %6553 = vrcp.f32 %v3871_v59 }
 0xdb8   :  { %5636 = vmatmul.msk.f32.vlgmr.msrb.gmra.mxu1 %vm495_vm0, %v3901_v16 }
 0xdb9   :  { %4381 = vmatpush.bf16.msrb.mxu1 %v6032_v41  ;;  %v5805_v41 = vld [vmem:[#allocation8 + $0xe8] sm:$0xf] }
 0xdbd   :  { %v6554_v38 = vpop.eup %6553 }
 0xdbe   :  { %v3905_v42 = vmul.f32 %v6554_v38, %v7867_v45  ;;  %v3874_v3 = vpop.xlane.xlu2 %3873 }
 0xdbf   :  { %6555 = vrcp.f32 %v3874_v3 }
 0xdc0   :  { %5640 = vmatmul.msk.f32.vlgmr.msrb.gmra.mxu3 %vm495_vm0, %v3905_v42 }
 0xdc1   :  { %4437 = vmatpush.bf16.msrb.mxu3 %v6034_v37  ;;  %v5799_v37 = vld [vmem:[#allocation8 + $0xf0] sm:$0xf0] }
 0xdc5   :  { %v6556_v8 = vpop.eup %6555 }
 0xdc6   :  { %v3862_v46 = vpop.xlane.xlu2 %3861  ;;  %v3906_v60 = vmul.f32 %v6556_v8, %v7872_v5  ;;  %v6031_v5 = vld [vmem:[#allocation7 + $0xa0] sm:$0xff] }
 0xdc7   :  { %6557 = vrcp.f32 %v3862_v46  ;;  %4353 = vmatpush.bf16.msrb.mxu0 %v6031_v5 }
 0xdc8   :  { %5641 = vmatmul.msk.f32.gmra.mxu3 %vm495_vm0, %v3906_v60 }
 0xdcd   :  { %v6558_v55 = vpop.eup %6557 }
 0xdce   :  { %v3902_v20 = vmul.f32 %v6558_v55, %v7876_v1 }
 0xdd0   :  { %5637 = vmatmul.msk.f32.gmra.mxu1 %vm495_vm0, %v3902_v20 }
 0xde4   :  { %v3936_v45 = vpop.f32.mrf.mxu0 }
 0xde5   :  { %v4187_v18 = vpack.c.bf16 %v3936_v45, %v3936_v45 }
 0xde7   :  { %v4222_v47 = vunpack.c.l.b16 %v4187_v18 }
 0xdeb   :  { %v3971_v10 = vpop.f32.mrf.mxu1 }
 0xdec   :  { %v4189_v24 = vpack.c.bf16 %v3971_v10, %v3971_v10 }
 0xdee   :  { %v4250_v61 = vunpack.c.l.b16 %v4189_v24 }
 0xdf3   :  { %v3939_v49 = vpop.f32.mrf.mxu0 }
 0xdf4   :  { %v4188_v27 = vpack.c.bf16 %v3939_v49, %v3939_v49 }
 0xdf6   :  { %v4223_v22 = vunpack.c.l.b16 %v4188_v27 }
 0xdf8   :  { %v4224_v21 = vpack.c.b16 %v4223_v22, %v4222_v47 }
 0xdfa   :  { %5646 = vmatmul.msk.bf16.vlgmr.msra.gmra.mxu0 %vm495_vm0, %v4224_v21  ;;  %v4006_v39 = vpop.f32.mrf.mxu2 }
 0xdfb   :  { %v3974_v1 = vpop.f32.mrf.mxu1  ;;  %v4191_v4 = vpack.c.bf16 %v4006_v39, %v4006_v39 }
 0xdfc   :  { %v4190_v17 = vpack.c.bf16 %v3974_v1, %v3974_v1 }
 0xdfd   :  { %v4278_v48 = vunpack.c.l.b16 %v4191_v4 }
 0xdfe   :  { %v4251_v57 = vunpack.c.l.b16 %v4190_v17 }
 0xe00   :  { %v4252_v19 = vpack.c.b16 %v4251_v57, %v4250_v61 }
 0xe02   :  { %5651 = vmatmul.msk.bf16.vlgmr.msra.gmra.mxu1 %vm495_vm0, %v4252_v19 }
 0xe09   :  { %v4041_v53 = vpop.f32.mrf.mxu3 }
 0xe0a   :  { %v4193_v6 = vpack.c.bf16 %v4041_v53, %v4041_v53 }
 0xe0b   :  { %v4076_v62 = vpop.f32.mrf.mxu0 }
 0xe0c   :  { %v4195_v56 = vpack.c.bf16 %v4076_v62, %v4076_v62  ;;  %v4306_v34 = vunpack.c.l.b16 %v4193_v6 }
 0xe0e   :  { %v4334_v7 = vunpack.c.l.b16 %v4195_v56 }
 0xe14   :  { %v4079_v26 = vpop.f32.mrf.mxu0 }
 0xe15   :  { %v4196_v33 = vpack.c.bf16 %v4079_v26, %v4079_v26  ;;  %v6355_v26 = vld [vmem:[%s7969_s5 + $0x2] ss:$0 sm:$0xff] }
 0xe17   :  { %v4335_v23 = vunpack.c.l.b16 %v4196_v33 }
 0xe19   :  { %v4336_v51 = vpack.c.b16 %v4335_v23, %v4334_v7  ;;  %v4009_v43 = vpop.f32.mrf.mxu2 }
 0xe1a   :  { %v4192_v28 = vpack.c.bf16 %v4009_v43, %v4009_v43 }
 0xe1b   :  { %5666 = vmatmul.msk.bf16.vlgmr.msrb.gmra.mxu0 %vm495_vm0, %v4336_v51 }
 0xe1c   :  { %v4279_v12 = vunpack.c.l.b16 %v4192_v28 }
 0xe1e   :  { %v4280_v11 = vpack.c.b16 %v4279_v12, %v4278_v48 }
 0xe20   :  { %5656 = vmatmul.msk.bf16.vlgmr.msra.gmra.mxu2 %vm495_vm0, %v4280_v11 }
 0xe21   :  { %v4044_v0 = vpop.f32.mrf.mxu3  ;;  %v4146_v29 = vpop.f32.mrf.mxu2 }
 0xe22   :  { %v4194_v50 = vpack.c.bf16 %v4044_v0, %v4044_v0  ;;  %v4199_v13 = vpack.c.bf16 %v4146_v29, %v4146_v29 }
 0xe24   :  { %v4307_v36 = vunpack.c.l.b16 %v4194_v50  ;;  %v4390_v9 = vunpack.c.l.b16 %v4199_v13 }
 0xe26   :  { %v4308_v15 = vpack.c.b16 %v4307_v36, %v4306_v34 }
 0xe28   :  { %5661 = vmatmul.msk.bf16.vlgmr.msra.gmra.mxu3 %vm495_vm0, %v4308_v15 }
 0xe29   :  { %v4149_v35 = vpop.f32.mrf.mxu2 }
 0xe2a   :  { %v4200_v32 = vpack.c.bf16 %v4149_v35, %v4149_v35 }
 0xe2c   :  { %v4391_v14 = vunpack.c.l.b16 %v4200_v32 }
 0xe2e   :  { %v4392_v31 = vpack.c.b16 %v4391_v14, %v4390_v9  ;;  %v6065_v9 = vld [vmem:[#allocation8 + $0xec] sm:$0xf0]  ;;  %v6063_v14 = vld [vmem:[#allocation8 + $0xe4] sm:$0xf] }
 0xe30   :  { %5676 = vmatmul.msk.bf16.vlgmr.msrb.gmra.mxu2 %vm495_vm0, %v4392_v31 }
 0xe35   :  { %v4111_v16 = vpop.f32.mrf.mxu1 }
 0xe36   :  { %v4197_v42 = vpack.c.bf16 %v4111_v16, %v4111_v16  ;;  %v5802_v16 = vor.u32 %v6063_v14, %v5799_v37  ;;  %v6045_v37 = vld [vmem:[#allocation8 + $0x4c] sm:$0xf0] }
 0xe38   :  { %v4362_v20 = vunpack.c.l.b16 %v4197_v42  ;;  %v5807_v42 = vld [vmem:[#allocation8 + $0xf8] sm:$0xf0]  ;;  %4750 = vmatpush.bf16.msra.mxu1 %v5802_v16 }
 0xe43   :  { %v4181_v44 = vpop.f32.mrf.mxu3 }
 0xe44   :  { %v4201_v59 = vpack.c.bf16 %v4181_v44, %v4181_v44  ;;  %v6066_v44 = vld [vmem:[#allocation8 + $0xf4] sm:$0xf0] }
 0xe46   :  { %v4418_v46 = vunpack.c.l.b16 %v4201_v59  ;;  %v5806_v59 = vor.u32 %v6066_v44, %v5805_v41  ;;  %v6043_v41 = vld [vmem:[#allocation8 + $0x44] sm:$0xf] }
 0xe48   :  { %4763 = vmatpush.bf16.msra.mxu2 %v5806_v59  ;;  %v5719_v59 = vld [vmem:[#allocation8 + $0x50] sm:$0xf0] }
 0xe4b   :  { %v4184_v38 = vpop.f32.mrf.mxu3 }
 0xe4c   :  { %v4202_v3 = vpack.c.bf16 %v4184_v38, %v4184_v38  ;;  %v6064_v38 = vld [vmem:[#allocation8 + $0xec] sm:$0xf] }
 0xe4d   :  { %v4114_v8 = vpop.f32.mrf.mxu1 }
 0xe4e   :  { %v4419_v60 = vunpack.c.l.b16 %v4202_v3  ;;  %v4198_v55 = vpack.c.bf16 %v4114_v8, %v4114_v8  ;;  %v5810_v3 = vor.u32 %v6064_v38, %v5807_v42  ;;  %v5781_v8 = vld [vmem:[#allocation8 + $0xc0] sm:$0xf]  ;;  %v5725_v38 = vld [vmem:[#allocation8 + $0x48] sm:$0xf]  ;;  %v6046_v42 = vld [vmem:[#allocation8 + $0x54] sm:$0xf0] }
 0xe50   :  { %v4420_v25 = vpack.c.b16 %v4419_v60, %v4418_v46  ;;  %v4363_v40 = vunpack.c.l.b16 %v4198_v55  ;;  %v6061_v46 = vld [vmem:[#allocation8 + $0xcc] sm:$0xf0]  ;;  %v6059_v60 = vld [vmem:[#allocation8 + $0xc4] sm:$0xf]  ;;  %4776 = vmatpush.bf16.msra.mxu3 %v5810_v3  ;;  %v5722_v3 = vor.u32 %v6043_v41, %v5719_v59  ;;  %v6080_v59 = vld [vmem:[#allocation10 + $0x68] sm:$0xff] }
 0xe51   :  { %v5782_v55 = vor.u32 %v6061_v46, %v5781_v8  ;;  %v5726_v8 = vor.u32 %v6046_v42, %v5725_v38  ;;  %v6044_v46 = vld [vmem:[#allocation8 + $0x4c] sm:$0xf] }
 0xe52   :  { %v4364_v45 = vpack.c.b16 %v4363_v40, %v4362_v20  ;;  %5681 = vmatmul.msk.bf16.vlgmr.msrb.gmra.mxu3 %vm495_vm0, %v4420_v25  ;;  %v5783_v20 = vld [vmem:[#allocation8 + $0xd0] sm:$0xf0]  ;;  %v5789_v25 = vld [vmem:[#allocation8 + $0xc8] sm:$0xf]  ;;  %v6062_v40 = vld [vmem:[#allocation8 + $0xd4] sm:$0xf0] }
 0xe54   :  { %5671 = vmatmul.msk.bf16.vlgmr.msrb.gmra.mxu1 %vm495_vm0, %v4364_v45  ;;  %v5786_v45 = vor.u32 %v6059_v60, %v5783_v20  ;;  %v5727_v60 = vld [vmem:[#allocation8 + $0x58] sm:$0xf0] }
 0xe56   :  { %4751 = vmatpush.bf16.msra.mxu1 %v5786_v45  ;;  %v5701_v45 = vld [vmem:[#allocation8 + $0x20] sm:$0xf] }
 0xe77   :  { %v4243_v18 = vpop.f32.mrf.mxu0 }
 0xe7f   :  { %v4271_v49 = vpop.f32.mrf.mxu1  ;;  %v4245_v47 = vpop.f32.mrf.mxu0 }
 0xe80   :  { %v4444_v5 = vadd.f32 %v4271_v49, %v4243_v18  ;;  %v5790_v18 = vor.u32 %v6062_v40, %v5789_v25  ;;  %v5791_v49 = vld [vmem:[#allocation8 + $0xd8] sm:$0xf0]  ;;  %v5730_v25 = vor.u32 %v6044_v46, %v5727_v60 }
 0xe82   :  { %4764 = vmatpush.bf16.msra.mxu2 %v5790_v18  ;;  %v6039_v18 = vld [vmem:[#allocation8 + $0x24] sm:$0xf] }
 0xe87   :  { %v4273_v21 = vpop.f32.mrf.mxu1 }
 0xe88   :  { %v4451_v61 = vadd.f32 %v4273_v21, %v4245_v47  ;;  %v5765_v47 = vld [vmem:[#allocation8 + $0xa0] sm:$0xf] }
 0xe98   :  { %v4355_v17 = vpop.f32.mrf.mxu0 }
 0xea0   :  { %v4357_v23 = vpop.f32.mrf.mxu0 }
 0xea3   :  { %v4299_v10 = vpop.f32.mrf.mxu2 }
 0xea4   :  { %v4445_v24 = vadd.f32 %v4444_v5, %v4299_v10  ;;  %v6060_v10 = vld [vmem:[#allocation8 + $0xcc] sm:$0xf]  ;;  %v6055_v5 = vld [vmem:[#allocation8 + $0xa4] sm:$0xf] }
 0xeab   :  { %v4327_v27 = vpop.f32.mrf.mxu3  ;;  %v4301_v22 = vpop.f32.mrf.mxu2 }
 0xeac   :  { %v4446_v1 = vadd.f32 %v4445_v24, %v4327_v27  ;;  %v4452_v62 = vadd.f32 %v4451_v61, %v4301_v22  ;;  %v5794_v27 = vor.u32 %v6060_v10, %v5791_v49  ;;  %v6057_v22 = vld [vmem:[#allocation8 + $0xac] sm:$0xf0]  ;;  %v5767_v24 = vld [vmem:[#allocation8 + $0xb0] sm:$0xf0] }
 0xead   :  { %v5766_v21 = vor.u32 %v6057_v22, %v5765_v47  ;;  %v5703_v49 = vld [vmem:[#allocation8 + $0x30] sm:$0xf0] }
 0xeae   :  { %v4447_v57 = vadd.f32 %v4446_v1, %v4355_v17  ;;  %4777 = vmatpush.bf16.msra.mxu3 %v5794_v27  ;;  %v5773_v1 = vld [vmem:[#allocation8 + $0xa8] sm:$0xf]  ;;  %v6058_v17 = vld [vmem:[#allocation8 + $0xb4] sm:$0xf0]  ;;  %v5706_v22 = vor.u32 %v6039_v18, %v5703_v49  ;;  %v6095_v18 = vld [vmem:[#allocation10 + $0xe0] sm:$0xff] }
 0xeaf   :  { %v5774_v61 = vor.u32 %v6058_v17, %v5773_v1  ;;  %v5709_v27 = vld [vmem:[#allocation8 + $0x28] sm:$0xf] }
 0xeb1   :  { %4765 = vmatpush.bf16.msra.mxu2 %v5774_v61  ;;  %v6037_v61 = vld [vmem:[#allocation8 + $0xc] sm:$0xf0] }
 0xeb3   :  { %v4329_v58 = vpop.f32.mrf.mxu3  ;;  %v4411_v19 = vpop.f32.mrf.mxu2 }
 0xeb4   :  { %v4453_v39 = vadd.f32 %v4452_v62, %v4329_v58  ;;  %v5770_v58 = vor.u32 %v6055_v5, %v5767_v24  ;;  %v6042_v5 = vld [vmem:[#allocation8 + $0x34] sm:$0xf0]  ;;  %v5711_v24 = vld [vmem:[#allocation8 + $0x38] sm:$0xf0] }
 0xeb5   :  { %v5710_v1 = vor.u32 %v6042_v5, %v5709_v27 }
 0xeb6   :  { %v4454_v53 = vadd.f32 %v4453_v39, %v4357_v23  ;;  %4752 = vmatpush.bf16.msra.mxu1 %v5770_v58  ;;  %v6053_v39 = vld [vmem:[#allocation8 + $0x8c] sm:$0xf0]  ;;  %v5757_v23 = vld [vmem:[#allocation8 + $0x88] sm:$0xf]  ;;  %v5685_v58 = vld [vmem:[#allocation8] sm:$0xf] }
 0xebb   :  { %v4413_v48 = vpop.f32.mrf.mxu2 }
 0xed1   :  { %v4383_v54 = vpop.f32.mrf.mxu1 }
 0xed2   :  { %v4448_v30 = vadd.f32 %v4447_v57, %v4383_v54  ;;  %v6056_v57 = vld [vmem:[#allocation8 + $0xac] sm:$0xf] }
 0xed4   :  { %v4449_v56 = vadd.f32 %v4448_v30, %v4411_v19  ;;  %v5775_v19 = vld [vmem:[#allocation8 + $0xb8] sm:$0xf0]  ;;  %v5749_v30 = vld [vmem:[#allocation8 + $0x80] sm:$0xf] }
 0xed5   :  { %v4439_v33 = vpop.f32.mrf.mxu3  ;;  %v5778_v54 = vor.u32 %v6056_v57, %v5775_v19  ;;  %v6035_v57 = vld [vmem:[#allocation8 + $0x4] sm:$0xf] }
 0xed6   :  { %v4450_v7 = vadd.f32 %v4449_v56, %v4439_v33  ;;  %v6051_v56 = vld [vmem:[#allocation8 + $0x84] sm:$0xf]  ;;  %v5750_v33 = vor.u32 %v6053_v39, %v5749_v30  ;;  %v5693_v30 = vld [vmem:[#allocation8 + $0x8] sm:$0xf] }
 0xed7   :  { %4778 = vmatpush.bf16.msra.mxu3 %v5778_v54  ;;  %v5686_v54 = vor.u32 %v6037_v61, %v5685_v58  ;;  %v6069_v58 = vld [vmem:[#allocation10 + $0x10] sm:$0xff] }
 0xed8   :  { %v4463_v4 = vadd.f32 %v6355_v26, %v4450_v7  ;;  %v5751_v7 = vld [vmem:[#allocation8 + $0x90] sm:$0xf0] }
 0xed9   :  { %v4385_v51 = vpop.f32.mrf.mxu1  ;;  %v6077_v61 = vld [vmem:[#allocation10 + $0x50] sm:$0xff] }
 0xeda   :  { %v4455_v43 = vadd.f32 %v4454_v53, %v4385_v51  ;;  %v4465_v28 = vadd.f32 %v4463_v4, %v7575_v52  ;;  %v6054_v4 = vld [vmem:[#allocation8 + $0x94] sm:$0xf0]  ;;  %v5754_v53 = vor.u32 %v6051_v56, %v5751_v7 }
 0xedb   :  { %v5758_v51 = vor.u32 %v6054_v4, %v5757_v23  ;;  %v6038_v56 = vld [vmem:[#allocation8 + $0x14] sm:$0xf0] }
 0xedc   :  { %4467 = vadd.xlane.f32.xlu0 %v4465_v28  ;;  %v4456_v12 = vadd.f32 %v4455_v43, %v4413_v48  ;;  %v6052_v43 = vld [vmem:[#allocation8 + $0x8c] sm:$0xf]  ;;  %4753 = vmatpush.bf16.msra.mxu1 %v5754_v53  ;;  %v5694_v23 = vor.u32 %v6038_v56, %v5693_v30 }
 0xedd   :  { %v4441_v11 = vpop.f32.mrf.mxu3  ;;  %4766 = vmatpush.bf16.msra.mxu2 %v5758_v51 }
 0xede   :  { %v4457_v6 = vadd.f32 %v4456_v12, %v4441_v11  ;;  %v5733_v11 = vld [vmem:[#allocation8 + $0x60] sm:$0xf] }
 0xee0   :  { %v4464_v0 = vadd.f32 %v6355_v26, %v4457_v6  ;;  %v6049_v6 = vld [vmem:[#allocation8 + $0x6c] sm:$0xf0] }
 0xee2   :  { %v4466_v29 = vadd.f32 %v4464_v0, %v7580_v2  ;;  %v5797_v2 = vld [vmem:[#allocation8 + $0xe0] sm:$0xf]  ;;  %v6047_v0 = vld [vmem:[#allocation8 + $0x64] sm:$0xf] }
 0xee3   :  { %v5798_v31 = vor.u32 %v6065_v9, %v5797_v2  ;;  %v5743_v2 = vld [vmem:[#allocation8 + $0x78] sm:$0xf0] }
 0xee4   :  { %4469 = vadd.xlane.f32.xlu1 %v4466_v29 }
 0xee5   :  { %4737 = vmatpush.bf16.msra.mxu0 %v5798_v31  ;;  %v5717_v31 = vld [vmem:[#allocation8 + $0x40] sm:$0xf] }
 0xee6   :  { %v5718_v16 = vor.u32 %v6045_v37, %v5717_v31  ;;  %v6568_v31 = vld [vmem:[%s7971_s7] ss:$0 sm:$0xff] }
 0xee9   :  { %4738 = vmatpush.bf16.msra.mxu0 %v5782_v55 }
 0xeed   :  { %4739 = vmatpush.bf16.msra.mxu0 %v5766_v21  ;;  %v6040_v21 = vld [vmem:[#allocation8 + $0x2c] sm:$0xf] }
 0xeee   :  { %v5714_v17 = vor.u32 %v6040_v21, %v5711_v24  ;;  %v6094_v21 = vld [vmem:[#allocation10 + $0xd8] sm:$0xff] }
 0xef1   :  { %4740 = vmatpush.bf16.msra.mxu0 %v5750_v33  ;;  %v5695_v33 = vld [vmem:[#allocation8 + $0x18] sm:$0xf0] }
 0xf4f   :  { %v4468_v50 = vpop.xlane.xlu0 %4467 }
 0xf50   :  { %v4471_v34 = vmul.f32 %v4468_v50, %v7195_v63  ;;  %v5735_v50 = vld [vmem:[#allocation8 + $0x70] sm:$0xf0] }
 0xf52   :  { %v7926_v36 = vsub.f32 %v4465_v28, %v4471_v34  ;;  %v5759_v28 = vld [vmem:[#allocation8 + $0x98] sm:$0xf0]  ;;  %v5741_v34 = vld [vmem:[#allocation8 + $0x68] sm:$0xf] }
 0xf53   :  { %v5762_v12 = vor.u32 %v6052_v43, %v5759_v28  ;;  %v6734_v28 = vmov 8.0  }
 0xf54   :  { %v4475_v15 = vmul.f32 %v7926_v36, %v7926_v36 }
 0xf55   :  { %4779 = vmatpush.bf16.msra.mxu3 %v5762_v12 }
 0xf56   :  { %4477 = vadd.xlane.f32.xlu1 %v4475_v15  ;;  %v6050_v15 = vld [vmem:[#allocation8 + $0x74] sm:$0xf0] }
 0xf57   :  { %v4470_v13 = vpop.xlane.xlu1 %4469 }
 0xf58   :  { %v4472_v52 = vmul.f32 %v4470_v13, %v7195_v63  ;;  %v5738_v13 = vor.u32 %v6047_v0, %v5735_v50  ;;  %v6074_v0 = vld [vmem:[#allocation10 + $0x38] sm:$0xff] }
 0xf5a   :  { %v7931_v35 = vsub.f32 %v4466_v29, %v4472_v52  ;;  %v5734_v29 = vor.u32 %v6049_v6, %v5733_v11  ;;  %v5742_v52 = vor.u32 %v6050_v15, %v5741_v34  ;;  %4754 = vmatpush.bf16.msra.mxu1 %v5738_v13  ;;  %v6090_v34 = vld [vmem:[#allocation10 + $0xb8] sm:$0xff] }
 0xf5b   :  { %v6098_v15 = vld [vmem:[#allocation10 + $0xf8] sm:$0xff] }
 0xf5c   :  { %v4476_v32 = vmul.f32 %v7931_v35, %v7931_v35  ;;  %4741 = vmatpush.bf16.msra.mxu0 %v5734_v29  ;;  %4767 = vmatpush.bf16.msra.mxu2 %v5742_v52  ;;  %v6082_v29 = vld [vmem:[#allocation10 + $0x78] sm:$0xff]  ;;  %v6073_v52 = vld [vmem:[#allocation10 + $0x30] sm:$0xff] }
 0xf5e   :  { %4479 = vadd.xlane.f32.xlu2 %v4476_v32  ;;  %v6048_v32 = vld [vmem:[#allocation8 + $0x6c] sm:$0xf]  ;;  %4755 = vmatpush.bf16.msra.mxu1 %v5722_v3 }
 0xf5f   :  { %v5746_v9 = vor.u32 %v6048_v32, %v5743_v2  ;;  %v6081_v32 = vld [vmem:[#allocation10 + $0x70] sm:$0xff]  ;;  %v6088_v3 = vld [vmem:[#allocation10 + $0xa8] sm:$0xff] }
 0xf60   :  { %4742 = vmatpush.bf16.msra.mxu0 %v5718_v16  ;;  %4768 = vmatpush.bf16.msra.mxu2 %v5726_v8  ;;  %v6072_v16 = vld [vmem:[#allocation10 + $0x28] sm:$0xff] }
 0xf61   :  { %4780 = vmatpush.bf16.msra.mxu3 %v5746_v9  ;;  %v6089_v9 = vld [vmem:[#allocation10 + $0xb0] sm:$0xff]  ;;  %v6096_v8 = vld [vmem:[#allocation10 + $0xe8] sm:$0xff] }
 0xf62   :  { %4756 = vmatpush.bf16.msra.mxu1 %v5706_v22  ;;  %v6078_v22 = vld [vmem:[#allocation10 + $0x58] sm:$0xff] }
 0xf64   :  { %4769 = vmatpush.bf16.msra.mxu2 %v5710_v1 }
 0xf65   :  { %4781 = vmatpush.bf16.msra.mxu3 %v5730_v25 }
 0xf68   :  { %4770 = vmatpush.bf16.msra.mxu2 %v5694_v23  ;;  %v6068_v23 = vld [vmem:[#allocation10 + $0x8] sm:$0xff] }
 0xf69   :  { %4782 = vmatpush.bf16.msra.mxu3 %v5714_v17 }
 0xf6c   :  { %5083 = vmatpush.bf16.msrb.mxu2 %v6090_v34 }
 0xf70   :  { %5084 = vmatpush.bf16.msrb.mxu2 %v6089_v9 }
 0xf74   :  { %5085 = vmatpush.bf16.msrb.mxu2 %v6088_v3 }
 0xfc9   :  { %v4478_v62 = vpop.xlane.xlu1 %4477 }
 0xfca   :  { %v4481_v26 = vmul.f32 %v4478_v62, %v7195_v63  ;;  %v5687_v62 = vld [vmem:[#allocation8 + $0x10] sm:$0xf0] }
 0xfcb   :  { %v5690_v39 = vor.u32 %v6035_v57, %v5687_v62 }
 0xfcc   :  { %v7936_v48 = vadd.f32 1e-05, %v4481_v26  ;;  %v6036_v26 = vld [vmem:[#allocation8 + $0xc] sm:$0xf] }
 0xfcd   :  { %v5698_v4 = vor.u32 %v6036_v26, %v5695_v33  ;;  %4757 = vmatpush.bf16.msra.mxu1 %v5690_v39 }
 0xfce   :  { %6559 = vrsqrt.f32 %v7936_v48  ;;  %vm4491_vm1 = vweird.f32 %v7936_v48 }
 0xfcf   :  { %4783 = vmatpush.bf16.msra.mxu3 %v5698_v4  ;;  %v6076_v4 = vld [vmem:[#allocation10 + $0x48] sm:$0xff] }
 0xfd1   :  { %v4480_v14 = vpop.xlane.xlu2 %4479  ;;  %5070 = vmatpush.bf16.msrb.mxu1 %v6082_v29  ;;  %v4567_v29 = vld [vmem:[%s7973_s9] sm:$0xf] }
 0xfd2   :  { %v4482_v44 = vmul.f32 %v4480_v14, %v7195_v63  ;;  %v6041_v63 = vld [vmem:[#allocation8 + $0x2c] sm:$0xf0]  ;;  %v4570_v34 = vperm.slane %v4567_v29, 1  ;;  %v4571_v9 = vperm.slane %v4567_v29, 2 }
 0xfd3   :  { %v5702_v10 = vor.u32 %v6041_v63, %v5701_v45  ;;  %5096 = vmatpush.bf16.msrb.mxu3 %v6098_v15  ;;  %v6087_v63 = vld [vmem:[#allocation10 + $0xa0] sm:$0xff] }
 0xfd4   :  { %v6560_v55 = vpop.eup %6559  ;;  %v7940_v20 = vadd.f32 1e-05, %v4482_v44  ;;  %5086 = vmatpush.bf16.msrb.mxu2 %v6087_v63 }
 0xfd5   :  { %v4486_v40 = vmul.f32 %v6560_v55, %v7936_v48  ;;  %4743 = vmatpush.bf16.msra.mxu0 %v5702_v10  ;;  %vm4492_vm0 = vweird.f32 %v6560_v55  ;;  %v6567_v48 = vld [vmem:[%s7970_s6] ss:$0 sm:$0xff]  ;;  %5071 = vmatpush.bf16.msrb.mxu1 %v6081_v32 }
 0xfd6   :  { %6561 = vrsqrt.f32 %v7940_v20  ;;  %vm4493_vm2 = vmor %vm4491_vm1, %vm4492_vm0  ;;  %vm4501_vm4 = vweird.f32 %v7940_v20 }
 0xfd7   :  { %v4487_v47 = vmul.f32 %v6560_v55, %v4486_v40  ;;  %6563 = vrcp.f32 %v6734_v28  ;;  %v6079_v40 = vld [vmem:[#allocation10 + $0x60] sm:$0xff] }
 0xfd8   :  { %v6075_v28 = vld [vmem:[#allocation10 + $0x40] sm:$0xff] }
 0xfd9   :  { %v4488_v19 = vmul.f32 0.5, %v4487_v47  ;;  %4744 = vmatpush.bf16.msra.mxu0 %v5686_v54  ;;  %5072 = vmatpush.bf16.msrb.mxu1 %v6080_v59  ;;  %v6070_v47 = vld [vmem:[#allocation10 + $0x18] sm:$0xff] }
 0xfdb   :  { %v4489_v7 = vsub.f32 1.5, %v4488_v19 }
 0xfdc   :  { %v6562_v53 = vpop.eup %6561 }
 0xfdd   :  { %v4490_v51 = vmul.f32 %v6560_v55, %v4489_v7  ;;  %v4496_v43 = vmul.f32 %v6562_v53, %v7940_v20  ;;  %5057 = vmatpush.bf16.msrb.mxu0 %v6074_v0  ;;  %vm4502_vm3 = vweird.f32 %v6562_v53  ;;  %v6564_v14 = vpop.eup %6563  ;;  %v6071_v20 = vld [vmem:[#allocation10 + $0x20] sm:$0xff]  ;;  %5073 = vmatpush.bf16.msrb.mxu1 %v6079_v40 }
 0xfde   :  { %vm4503_vm5 = vmor %vm4501_vm4, %vm4502_vm3  ;;  %v4518_v42 = vmul.f32 8.0, %v6564_v14  ;;  %vm4522_vm6 = vweird.f32 %v6564_v14  ;;  %v6091_v0 = vld [vmem:[#allocation10 + $0xc0] sm:$0xff] }
 0xfdf   :  { %v4494_v12 = vsel %vm4493_vm2, %v6560_v55, %v4490_v51  ;;  %v4497_v11 = vmul.f32 %v6562_v53, %v4496_v43  ;;  %v6093_v51 = vld [vmem:[#allocation10 + $0xd0] sm:$0xff]  ;;  %v6067_v43 = vld [vmem:[#allocation10] sm:$0xff] }
 0xfe0   :  { %v4505_v6 = vmul.f32 %v4494_v12, %v7926_v36  ;;  %v6097_v36 = vld [vmem:[#allocation10 + $0xf0] sm:$0xff]  ;;  %v4519_v45 = vsub.f32 1.0, %v4518_v42  ;;  %v6084_v12 = vld [vmem:[#allocation10 + $0x88] sm:$0xff]  ;;  %v6356_v40 = vld [vmem:[%s7975_s11] ss:$0 sm:$0xff] }
 0xfe1   :  { %v4498_v50 = vmul.f32 0.5, %v4497_v11  ;;  %5058 = vmatpush.bf16.msrb.mxu0 %v6073_v52  ;;  %5097 = vmatpush.bf16.msrb.mxu3 %v6097_v36  ;;  %v6092_v11 = vld [vmem:[#allocation10 + $0xc8] sm:$0xff]  ;;  %v4572_v36 = vperm.slane %v4567_v29, 3 }
 0xfe2   :  { %v4507_v13 = vmul.f32 %v6567_v48, %v4505_v6  ;;  %v4520_v5 = vmul.f32 %v6564_v14, %v4519_v45  ;;  %5074 = vmatpush.bf16.msrb.mxu1 %v6078_v22  ;;  %v6083_v6 = vld [vmem:[#allocation10 + $0x80] sm:$0xff] }
 0xfe3   :  { %v4499_v2 = vsub.f32 1.5, %v4498_v50  ;;  %v4569_v50 = vperm.slane %v4567_v29, 0 }
 0xfe4   :  { %v4509_v37 = vadd.f32 %v6568_v31, %v4507_v13  ;;  %v4521_v57 = vadd.f32 %v6564_v14, %v4520_v5 }
 0xfe5   :  { %v4500_v41 = vmul.f32 %v6562_v53, %v4499_v2  ;;  %5059 = vmatpush.bf16.msrb.mxu0 %v6072_v16  ;;  %5098 = vmatpush.bf16.msrb.mxu3 %v6096_v8 }
 0xfe6   :  { %v4511_v44 = vrot.slane %v4509_v37, 4  ;;  %5075 = vmatpush.bf16.msrb.mxu1 %v6077_v61  ;;  %v4523_v30 = vsel %vm4522_vm6, %v6564_v14, %v4521_v57 }
 0xfe7   :  { %v4504_v38 = vsel %vm4503_vm5, %v6562_v53, %v4500_v41  ;;  %v6085_v53 = vld [vmem:[#allocation10 + $0x90] sm:$0xff] }
 0xfe8   :  { %v4512_v46 = vadd.f32 %v4511_v44, %v4509_v37  ;;  %v4506_v60 = vmul.f32 %v4504_v38, %v7931_v35  ;;  %v6086_v35 = vld [vmem:[#allocation10 + $0x98] sm:$0xff] }
 0xfe9   :  { %5060 = vmatpush.bf16.msrb.mxu0 %v6071_v20  ;;  %5099 = vmatpush.bf16.msrb.mxu3 %v6095_v18 }
 0xfea   :  { %v4513_v55 = vrot.slane %v4512_v46, 2  ;;  %v4508_v25 = vmul.f32 %v6567_v48, %v4506_v60  ;;  %5087 = vmatpush.bf16.msrb.mxu2 %v6086_v35  ;;  %5076 = vmatpush.bf16.msrb.mxu1 %v6076_v4 }
 0xfec   :  { %v4510_v10 = vadd.f32 %v6568_v31, %v4508_v25  ;;  %v4514_v49 = vadd.f32 %v4513_v55, %v4512_v46 }
 0xfed   :  { %5061 = vmatpush.bf16.msrb.mxu0 %v6070_v47  ;;  %5100 = vmatpush.bf16.msrb.mxu3 %v6094_v21 }
 0xfee   :  { %v4525_v27 = vrot.slane %v4510_v10, 4  ;;  %v4515_v1 = vrot.slane %v4514_v49, 1  ;;  %5088 = vmatpush.bf16.msrb.mxu2 %v6085_v53  ;;  %5077 = vmatpush.bf16.msrb.mxu1 %v6075_v28 }
 0xff0   :  { %v4526_v24 = vadd.f32 %v4525_v27, %v4510_v10  ;;  %v4516_v62 = vadd.f32 %v4515_v1, %v4514_v49 }
 0xff1   :  { %5062 = vmatpush.bf16.msrb.mxu0 %v6069_v58  ;;  %5101 = vmatpush.bf16.msrb.mxu3 %v6093_v51 }
 0xff2   :  { %v4527_v17 = vrot.slane %v4526_v24, 2  ;;  %v4524_v56 = vmul.f32 %v4523_v30, %v4516_v62  ;;  %5089 = vmatpush.bf16.msrb.mxu2 %v6084_v12 }
 0xff4   :  { %v4528_v19 = vadd.f32 %v4527_v17, %v4526_v24 }
 0xff5   :  { %5063 = vmatpush.bf16.msrb.mxu0 %v6068_v23  ;;  %5102 = vmatpush.bf16.msrb.mxu3 %v6092_v11 }
 0xff6   :  { %v4529_v54 = vrot.slane %v4528_v19, 1  ;;  %5090 = vmatpush.bf16.msrb.mxu2 %v6083_v6 }
 0xff8   :  { %v4530_v39 = vadd.f32 %v4529_v54, %v4528_v19 }
 0xff9   :  { %5064 = vmatpush.bf16.msrb.mxu0 %v6067_v43  ;;  %5103 = vmatpush.bf16.msrb.mxu3 %v6091_v0 }
 0xffa   :  { %v4531_v26 = vmul.f32 %v4530_v39, %v4523_v30 }
 0xffc   :  { %v4533_v33 = vsel %vm4532_vm7, %v4524_v56, %v4531_v26 }
 0xffd   :  { %v4534_v7 = vpack.c.bf16 %v4533_v33, %v4533_v33 }
 0xfff   :  { %4745 = vmatmul.bf16.vlgmr.msra.gmra.mxu0 %v4534_v7  ;;  %4758 = vmatmul.bf16.vlgmr.msra.gmra.mxu1 %v4534_v7 }
0x1000   :  { %4771 = vmatmul.bf16.vlgmr.msra.gmra.mxu2 %v4534_v7  ;;  %4784 = vmatmul.bf16.vlgmr.msra.gmra.mxu3 %v4534_v7 }
0x107c   :  { %v4746_v15 = vpop.f32.mrf.mxu0  ;;  %v4759_v48 = vpop.f32.mrf.mxu1 }
0x107d   :  { %v4747_v13 = vadd.f32 %v4746_v15, %v4569_v50  ;;  %v4760_v52 = vadd.f32 %v4759_v48, %v4570_v34 }
0x107f   :  { %v4789_v32 = vmax.f32 %v4747_v13, 0.0  ;;  %v4790_v2 = vmax.f32 %v4760_v52, 0.0 }
0x1081   :  { %v4793_v14 = vpack.c.bf16 %v4789_v32, %v4789_v32  ;;  %v4794_v31 = vpack.c.bf16 %v4790_v2, %v4790_v2 }
0x1083   :  { %v4772_v37 = vpop.f32.mrf.mxu2  ;;  %v4785_v41 = vpop.f32.mrf.mxu3  ;;  %5065 = vmatmul.bf16.vlgmr.msrb.gmra.mxu0 %v4793_v14  ;;  %5078 = vmatmul.bf16.vlgmr.msrb.gmra.mxu1 %v4794_v31 }
0x1084   :  { %v4773_v44 = vadd.f32 %v4772_v37, %v4571_v9  ;;  %v4786_v16 = vadd.f32 %v4785_v41, %v4572_v36  ;;  %v4748_v59 = vpop.f32.mrf.mxu0  ;;  %v4761_v38 = vpop.f32.mrf.mxu1 }
0x1086   :  { %v4791_v42 = vmax.f32 %v4773_v44, 0.0  ;;  %v4792_v3 = vmax.f32 %v4786_v16, 0.0 }
0x1088   :  { %v4795_v8 = vpack.c.bf16 %v4791_v42, %v4791_v42  ;;  %v4796_v46 = vpack.c.bf16 %v4792_v3, %v4792_v3 }
0x108a   :  { %5091 = vmatmul.bf16.vlgmr.msrb.gmra.mxu2 %v4795_v8  ;;  %5104 = vmatmul.bf16.vlgmr.msrb.gmra.mxu3 %v4796_v46 }
0x108b   :  { %v4774_v60 = vpop.f32.mrf.mxu2  ;;  %v4787_v55 = vpop.f32.mrf.mxu3 }
0x1100   :  { %v5066_v25 = vpop.f32.mrf.mxu0  ;;  %v5079_v20 = vpop.f32.mrf.mxu1 }
0x1101   :  { %v5067_v45 = vadd.f32 %v6356_v40, %v5066_v25 }
0x1103   :  { %v5080_v10 = vadd.f32 %v5079_v20, %v5067_v45 }
0x1108   :  { %v5068_v63 = vpop.f32.mrf.mxu0  ;;  %v5081_v18 = vpop.f32.mrf.mxu1 }
0x110d   :  { %v5092_v49 = vpop.f32.mrf.mxu2  ;;  %v5105_v27 = vpop.f32.mrf.mxu3 }
0x110e   :  { %v5093_v47 = vadd.f32 %v5092_v49, %v5080_v10 }
0x1110   :  { %v5106_v22 = vadd.f32 %v5105_v27, %v5093_v47 }
0x1112   :  { %5109 = vst [vmem:[#allocation11] sm:$0x3] %v5106_v22 }
0x1113   :  { %5120 = dma.vmem_to_hbm [thread:$0]  %s5116_s29, 32, %s5118_s14, [#allocation4]  }
0x1115   :  { %v5094_v5 = vpop.f32.mrf.mxu2  ;;  %v5107_v35 = vpop.f32.mrf.mxu3 }
0x1116   :  { %6719 = dma.done.wait [#allocation4], 32  }
0x1117   :  { %6720 = vsyncadd [#allocation4], 4294967264 }
0x1118   :  { %5125 = vsyncpa [#allocation3], 1 }
0x1119   :  { %5126 = vsyncpa [#allocation6], 1 }
0x111a   :  { %5127 = vsyncpa [#allocation9], 1 }
0x111b   :  { %5128 = vsyncpa [#allocation4], 1 }

</bundles_post_ra>
